<compile_context>
chip_gen: v6e
topology: v6e:2x2x1
jax: 0.10.0
libtpu: 0.0.40
codegen_flags: <defaults>
</compile_context>

<pallas_src>
import functools

import jax
import jax.numpy as jnp
from jax import lax
from jax.experimental import pallas as pl
from jax.experimental.pallas import tpu as pltpu


_VMEM = pl.BlockSpec(memory_space=pltpu.MemorySpace.VMEM)


def _round_up(x, m):
    return ((x + m - 1) // m) * m


# --------------------------- fused decoder kernel ---------------------------

def _decoder_kernel(xcol_ref, emb_ref, qyb_ref,
                    wenc_ref, benc_ref, wdec_ref, bdec_ref,
                    w1ih0_ref, w1hh0_ref, w1cat_ref, b1_ref,
                    w2ih0_ref, w2hh0_ref, w2cat_ref, b2_ref,
                    linw_ref, linb_ref,
                    o_ref,
                    pad_sc, x1g_sc, predg_sc, y_sc,
                    *, K, dil, q, back_len):
    # xcol_ref : (B*q, K*(Cx+Cy))  encoder im2col (batch folded into M)
    # emb_ref  : (B*q, E)          emb flattened (row = b*q + t)
    # qyb_ref  : (B, T1, Cy)       query_y[:, :, :back_len], time-major
    # wenc_ref : (K*(Cx+Cy), E)    fused xconv+yconv weight      benc: (1, E)
    # wdec_ref : (nlayer, K*E, E)  dilated-layer im2col weights  bdec: (nlayer, 1, E)
    # w1ih0    : (Cy, 4H)  w1hh0: (H, 4H)  w1cat: (2, 2H, 4H)  b1: (3, 4H)
    # w2ih0    : (E,  4H)  w2hh0: (H, 4H)  w2cat: (2, 2H, 4H)  b2: (3, 4H)
    # linw     : (endo, E)  linb: (endo, 1)
    # o_ref    : (B, endo, T2)
    # pad_sc   : (B*Pb, E)      x1g_sc: (T1, B, 4H)   predg_sc: (T2, B, 4H)
    # y_sc     : (T2, B, H)
    B, T1, _ = qyb_ref.shape
    E = emb_ref.shape[1]
    H = w1hh0_ref.shape[0]
    nlayer = wdec_ref.shape[0]
    T2 = q - back_len

    lp = (dil * (K - 1)) // 2
    spad = _round_up(max(lp, 1), 8)          # 8-aligned left halo
    Pb = pad_sc.shape[0] // B                # per-batch padded block length
    base = spad - lp                         # first-tap read offset within a block

    # ---- (1) conv encoder: one im2col dot over all batches ----
    h = (jnp.dot(xcol_ref[...], wenc_ref[...], preferred_element_type=jnp.float32)
         + benc_ref[...] + emb_ref[...])                                 # (B*q, E)

    # ---- (2) residual dilated conv blocks ----
    # TODO(synk): MyDecoder's definition is not provided in the reference source;
    # stand-in combines (emb, val_emb_x, val_emb_y) and applies `nlayer` dilated
    # same-padded residual Conv1d+ReLU blocks, consistent with its ctor args.
    pad_sc[...] = jnp.zeros_like(pad_sc)     # halos zeroed once; interior rewritten
    for l in range(nlayer):
        for b in range(B):                   # aligned (offset % 8 == 0) block stores
            pad_sc[b * Pb + spad:b * Pb + spad + q, :] = h[b * q:(b + 1) * q, :]
        taps = []
        for k in range(K):
            rows = [pad_sc[b * Pb + base + k * dil:b * Pb + base + k * dil + q, :]
                    for b in range(B)]
            taps.append(jnp.concatenate(rows, axis=0) if B > 1 else rows[0])
        cols = jnp.concatenate(taps, axis=-1)                            # (B*q, K*E)
        acc = (jnp.dot(cols, wdec_ref[l], preferred_element_type=jnp.float32)
               + bdec_ref[l])
        h = h + jnp.maximum(acc, 0.0)

    # ---- (3) LSTM layer-0 input projections hoisted out of the recurrences ----
    w1ih0 = w1ih0_ref[...]
    b1_0 = b1_ref[0:1, :]
    for b in range(B):
        x1g_sc[:, b, :] = (jnp.dot(qyb_ref[b], w1ih0,
                                   preferred_element_type=jnp.float32) + b1_0)
    w2ih0 = w2ih0_ref[...]
    b2_0 = b2_ref[0:1, :]
    for b in range(B):
        tail = h[b * q + back_len:(b + 1) * q, :]                        # (T2, E)
        predg_sc[:, b, :] = (jnp.dot(tail, w2ih0,
                                     preferred_element_type=jnp.float32) + b2_0)

    # ---- shared gate math: one sigmoid over the full 4H gates, one tanh slice ----
    def gates(g, c):                          # gate order i | f | g | o (PyTorch)
        sg = jax.nn.sigmoid(g)
        gc = jnp.tanh(g[:, 2 * H:3 * H])
        c_new = sg[:, H:2 * H] * c + sg[:, 0:H] * gc
        h_new = sg[:, 3 * H:4 * H] * jnp.tanh(c_new)
        return h_new, c_new

    # ---- (4) lstm1 over the back window (weights hoisted, per stack) ----
    w1hh0 = w1hh0_ref[...]
    w1c1 = w1cat_ref[0]
    w1c2 = w1cat_ref[1]
    b1_1 = b1_ref[1:2, :]
    b1_2 = b1_ref[2:3, :]

    def step1(t, carry):
        h1, c1, h2, c2, h3, c3 = carry
        g1 = x1g_sc[t] + jnp.dot(h1, w1hh0, preferred_element_type=jnp.float32)
        h1, c1 = gates(g1, c1)
        g2 = (jnp.dot(jnp.concatenate([h1, h2], axis=-1), w1c1,
                      preferred_element_type=jnp.float32) + b1_1)
        h2, c2 = gates(g2, c2)
        g3 = (jnp.dot(jnp.concatenate([h2, h3], axis=-1), w1c2,
                      preferred_element_type=jnp.float32) + b1_2)
        h3, c3 = gates(g3, c3)
        return h1, c1, h2, c2, h3, c3

    z = jnp.zeros((B, H), jnp.float32)
    carry = lax.fori_loop(0, T1, step1, (z, z, z, z, z, z), unroll=True)

    # ---- (5) lstm2 over the prediction tail, seeded with lstm1's (h, c) ----
    w2hh0 = w2hh0_ref[...]
    w2c1 = w2cat_ref[0]
    w2c2 = w2cat_ref[1]
    b2_1 = b2_ref[1:2, :]
    b2_2 = b2_ref[2:3, :]

    def step2(t, carry):
        h1, c1, h2, c2, h3, c3 = carry
        g1 = predg_sc[t] + jnp.dot(h1, w2hh0, preferred_element_type=jnp.float32)
        h1, c1 = gates(g1, c1)
        g2 = (jnp.dot(jnp.concatenate([h1, h2], axis=-1), w2c1,
                      preferred_element_type=jnp.float32) + b2_1)
        h2, c2 = gates(g2, c2)
        g3 = (jnp.dot(jnp.concatenate([h2, h3], axis=-1), w2c2,
                      preferred_element_type=jnp.float32) + b2_2)
        h3, c3 = gates(g3, c3)
        y_sc[t] = h3
        return h1, c1, h2, c2, h3, c3

    _ = lax.fori_loop(0, T2, step2, carry, unroll=True)

    # ---- (6) output Linear, written directly in the module's (B, endo, T2) layout ----
    linw = linw_ref[...]
    linb = linb_ref[...]
    for b in range(B):
        yb = y_sc[:, b, :]                                               # (T2, H)
        rs = lax.dot_general(linw, yb, (((1,), (1,)), ((), ())),
                             preferred_element_type=jnp.float32)         # (endo, T2)
        o_ref[b] = rs + linb


# ------------------------------- wrapper / glue -------------------------------

def decoder_forward(params, emb, query_x, query_y, *, back_len, nlayer, dilation):
    B, Cx, q = query_x.shape
    Cy = query_y.shape[1]
    E = emb.shape[2]
    K = params['xconv_w'].shape[2]
    Cxy = Cx + Cy
    H = E
    T1 = back_len
    T2 = q - back_len
    endo = params['lin_w'].shape[0]

    # -- tiny input-layout prep (fused by XLA, feeds the single kernel) --
    lp1 = (K - 1) // 2                      # 'same' padding (odd K)
    qxT = jnp.transpose(query_x, (0, 2, 1))                              # (B, q, Cx)
    qyT = jnp.transpose(query_y, (0, 2, 1))                              # (B, q, Cy)
    qxy = jnp.pad(jnp.concatenate([qxT, qyT], axis=-1),
                  ((0, 0), (lp1, K - 1 - lp1), (0, 0)))                  # (B, q+K-1, Cxy)
    xcol = jnp.concatenate([qxy[:, k:k + q, :] for k in range(K)],
                           axis=-1).reshape(B * q, K * Cxy)              # encoder im2col
    emb2 = emb.reshape(B * q, E)
    qyb = qyT[:, :back_len, :]                                           # (B, T1, Cy)

    # -- weight prep --
    wx = jnp.transpose(params['xconv_w'], (2, 1, 0))                     # (K, Cx, E)
    wy = jnp.transpose(params['yconv_w'], (2, 1, 0))                     # (K, Cy, E)
    wenc = jnp.concatenate([wx, wy], axis=1).reshape(K * Cxy, E)
    benc = (params['xconv_b'] + params['yconv_b']).reshape(1, E)
    wdec = jnp.transpose(jnp.stack(params['dec_w']),
                         (0, 3, 2, 1)).reshape(nlayer, K * E, E)
    bdec = jnp.stack(params['dec_b']).reshape(nlayer, 1, E)

    l1, l2 = params['lstm1'], params['lstm2']
    w1ih0 = l1[0]['wihT']                                                # (endo, 4H)
    w1hh0 = l1[0]['whhT']                                                # (H, 4H)
    w1cat = jnp.stack([jnp.concatenate([l1[i]['wihT'], l1[i]['whhT']], axis=0)
                       for i in (1, 2)])                                 # (2, 2H, 4H)
    b1 = jnp.concatenate([lp_['bias'] for lp_ in l1], axis=0)            # (3, 4H)
    w2ih0 = l2[0]['wihT']                                                # (E, 4H)
    w2hh0 = l2[0]['whhT']
    w2cat = jnp.stack([jnp.concatenate([l2[i]['wihT'], l2[i]['whhT']], axis=0)
                       for i in (1, 2)])
    b2 = jnp.concatenate([lp_['bias'] for lp_ in l2], axis=0)
    linw = params['lin_w']                                               # (endo, E)
    linb = params['lin_b'].reshape(endo, 1)

    # -- dilated-conv scratch geometry: 8-aligned halos, zeroed once in-kernel --
    lp = (dilation * (K - 1)) // 2
    rp = dilation * (K - 1) - lp
    spad = _round_up(max(lp, 1), 8)
    epad = _round_up(max(rp, 1), 8)
    Pb = spad + q + epad

    kern = functools.partial(_decoder_kernel, K=K, dil=dilation, q=q,
                             back_len=back_len)
    return pl.pallas_call(
        kern,
        out_shape=jax.ShapeDtypeStruct((B, endo, T2), jnp.float32),
        in_specs=[_VMEM] * 17,
        out_specs=_VMEM,
        scratch_shapes=[
            pltpu.VMEM((B * Pb, E), jnp.float32),      # dilated-conv padded blocks
            pltpu.VMEM((T1, B, 4 * H), jnp.float32),   # lstm1 layer-0 input gates
            pltpu.VMEM((T2, B, 4 * H), jnp.float32),   # lstm2 layer-0 input gates
            pltpu.VMEM((T2, B, H), jnp.float32),       # lstm2 top-layer outputs
        ],
    )(xcol, emb2, qyb, wenc, benc, wdec, bdec,
      w1ih0, w1hh0, w1cat, b1, w2ih0, w2hh0, w2cat, b2, linw, linb)


# ------------------------------- params / driver -------------------------------

def _init(key, shape, scale=0.1):
    return scale * jax.random.normal(key, shape, dtype=jnp.float32)


def init_params(key, endo_dim, max_exo_num, enc_dim, K, nlayer):
    keys = iter(jax.random.split(key, 128))
    p = {}
    p['xconv_w'] = _init(next(keys), (enc_dim, max_exo_num, K))
    p['xconv_b'] = _init(next(keys), (enc_dim,))
    p['yconv_w'] = _init(next(keys), (enc_dim, endo_dim, K))
    p['yconv_b'] = _init(next(keys), (enc_dim,))
    p['dec_w'] = [_init(next(keys), (enc_dim, enc_dim, K)) for _ in range(nlayer)]
    p['dec_b'] = [_init(next(keys), (enc_dim,)) for _ in range(nlayer)]

    def lstm_params(in_dim, H, num_layers=3):
        layers = []
        for li in range(num_layers):
            d = in_dim if li == 0 else H
            wih = _init(next(keys), (4 * H, d))
            whh = _init(next(keys), (4 * H, H))
            bih = _init(next(keys), (4 * H,))
            bhh = _init(next(keys), (4 * H,))
            layers.append(dict(wihT=wih.T, whhT=whh.T,
                               bias=(bih + bhh).reshape(1, 4 * H)))
        return layers

    p['lstm1'] = lstm_params(endo_dim, enc_dim)      # nn.LSTM(endo_dim, enc_dim, 3)
    p['lstm2'] = lstm_params(enc_dim, enc_dim)       # nn.LSTM(enc_dim, enc_dim, 3)
    p['lin_w'] = _init(next(keys), (endo_dim, enc_dim))   # Linear(enc_dim, endo_dim)
    p['lin_b'] = _init(next(keys), (endo_dim,))
    return p


if __name__ == "__main__":
    endo_dim, back_len, max_exo_num, enc_dim = 4, 8, 3, 32
    kernel_size, nlayer, dilation = 3, 2, 2
    b, q = 2, 16

    key = jax.random.PRNGKey(0)
    k_in, k_par = jax.random.split(key)
    ke, kx, ky = jax.random.split(k_in, 3)
    emb = jax.random.normal(ke, (b, q, enc_dim), jnp.float32)
    query_x = jax.random.normal(kx, (b, max_exo_num, q), jnp.float32)
    query_y = jax.random.normal(ky, (b, endo_dim, q), jnp.float32)

    params = init_params(k_par, endo_dim, max_exo_num, enc_dim, kernel_size, nlayer)

    fwd = jax.jit(functools.partial(decoder_forward, back_len=back_len,
                                    nlayer=nlayer, dilation=dilation))
    out = jax.block_until_ready(fwd(params, emb, query_x, query_y))
    assert out.shape == (b, endo_dim, q - back_len), out.shape
    assert bool(jnp.all(jnp.isfinite(out)))
    print("KERNEL_OK")
</pallas_src>

<mosaic_0001>
module attributes {stable_mosaic.version = 11 : i64} {
  func.func @_decoder_kernel(%arg0: memref<32x21xf32, #tpu.memory_space<vmem>>, %arg1: memref<32x32xf32, #tpu.memory_space<vmem>>, %arg2: memref<2x8x4xf32, #tpu.memory_space<vmem>>, %arg3: memref<21x32xf32, #tpu.memory_space<vmem>>, %arg4: memref<1x32xf32, #tpu.memory_space<vmem>>, %arg5: memref<2x96x32xf32, #tpu.memory_space<vmem>>, %arg6: memref<2x1x32xf32, #tpu.memory_space<vmem>>, %arg7: memref<4x128xf32, #tpu.memory_space<vmem>>, %arg8: memref<32x128xf32, #tpu.memory_space<vmem>>, %arg9: memref<2x64x128xf32, #tpu.memory_space<vmem>>, %arg10: memref<3x128xf32, #tpu.memory_space<vmem>>, %arg11: memref<32x128xf32, #tpu.memory_space<vmem>>, %arg12: memref<32x128xf32, #tpu.memory_space<vmem>>, %arg13: memref<2x64x128xf32, #tpu.memory_space<vmem>>, %arg14: memref<3x128xf32, #tpu.memory_space<vmem>>, %arg15: memref<4x32xf32, #tpu.memory_space<vmem>>, %arg16: memref<4x1xf32, #tpu.memory_space<vmem>>, %arg17: memref<2x4x8xf32, #tpu.memory_space<vmem>>, %arg18: memref<64x32xf32, #tpu.memory_space<vmem>>, %arg19: memref<8x2x128xf32, #tpu.memory_space<vmem>>, %arg20: memref<8x2x128xf32, #tpu.memory_space<vmem>>, %arg21: memref<8x2x32xf32, #tpu.memory_space<vmem>>) attributes {dimension_semantics = [], scalar_prefetch = 0 : i64, scratch_operands = 4 : i64, tpu.core_type = #tpu.core_type<tc>} {
    %c0 = arith.constant 0 : index
    %c0_0 = arith.constant 0 : index
    %0 = vector.load %arg0[%c0, %c0_0] : memref<32x21xf32, #tpu.memory_space<vmem>>, vector<32x21xf32>
    %c0_1 = arith.constant 0 : index
    %c0_2 = arith.constant 0 : index
    %1 = vector.load %arg3[%c0_1, %c0_2] : memref<21x32xf32, #tpu.memory_space<vmem>>, vector<21x32xf32>
    %cst = arith.constant dense<0.000000e+00> : vector<32x32xf32>
    %2 = tpu.matmul %0, %1, %cst {dimension_numbers = #tpu.dot_dimension_numbers<[1], [0], [0], [1], [0, 0, 1, 1], [], []>} : vector<32x21xf32>, vector<21x32xf32>, vector<32x32xf32> -> vector<32x32xf32>
    %c0_3 = arith.constant 0 : index
    %c0_4 = arith.constant 0 : index
    %3 = vector.load %arg4[%c0_3, %c0_4] : memref<1x32xf32, #tpu.memory_space<vmem>>, vector<1x32xf32>
    %4 = vector.broadcast %3 : vector<1x32xf32> to vector<32x32xf32>
    %5 = arith.addf %2, %4 : vector<32x32xf32>
    %c0_5 = arith.constant 0 : index
    %c0_6 = arith.constant 0 : index
    %6 = vector.load %arg1[%c0_5, %c0_6] : memref<32x32xf32, #tpu.memory_space<vmem>>, vector<32x32xf32>
    %7 = arith.addf %5, %6 : vector<32x32xf32>
    %cst_7 = arith.constant 0.000000e+00 : f32
    %8 = vector.broadcast %cst_7 : f32 to vector<64x32xf32>
    %c0_8 = arith.constant 0 : index
    %c0_9 = arith.constant 0 : index
    %9 = vector.load %arg18[%c0_8, %c0_9] : memref<64x32xf32, #tpu.memory_space<vmem>>, vector<64x32xf32>
    tpu.vector_store %arg18[%c0_8, %c0_9], %8 {strides = array<i32>} : memref<64x32xf32, #tpu.memory_space<vmem>>, vector<64x32xf32>,
    %10 = vector.extract_strided_slice %7 {offsets = [0, 0], sizes = [16, 32], strides = [1, 1]} : vector<32x32xf32> to vector<16x32xf32>
    %c8 = arith.constant 8 : index
    %c0_10 = arith.constant 0 : index
    %11 = vector.load %arg18[%c8, %c0_10] : memref<64x32xf32, #tpu.memory_space<vmem>>, vector<16x32xf32>
    tpu.vector_store %arg18[%c8, %c0_10], %10 {strides = array<i32>} : memref<64x32xf32, #tpu.memory_space<vmem>>, vector<16x32xf32>,
    %12 = vector.extract_strided_slice %7 {offsets = [16, 0], sizes = [16, 32], strides = [1, 1]} : vector<32x32xf32> to vector<16x32xf32>
    %c40 = arith.constant 40 : index
    %c0_11 = arith.constant 0 : index
    %13 = vector.load %arg18[%c40, %c0_11] : memref<64x32xf32, #tpu.memory_space<vmem>>, vector<16x32xf32>
    tpu.vector_store %arg18[%c40, %c0_11], %12 {strides = array<i32>} : memref<64x32xf32, #tpu.memory_space<vmem>>, vector<16x32xf32>,
    %c6 = arith.constant 6 : index
    %c0_12 = arith.constant 0 : index
    %14 = vector.load %arg18[%c6, %c0_12] : memref<64x32xf32, #tpu.memory_space<vmem>>, vector<16x32xf32>
    %c38 = arith.constant 38 : index
    %c0_13 = arith.constant 0 : index
    %15 = vector.load %arg18[%c38, %c0_13] : memref<64x32xf32, #tpu.memory_space<vmem>>, vector<16x32xf32>
    %16 = tpu.concatenate %14, %15 in 0 : vector<16x32xf32>, vector<16x32xf32> -> vector<32x32xf32>
    %c8_14 = arith.constant 8 : index
    %c0_15 = arith.constant 0 : index
    %17 = vector.load %arg18[%c8_14, %c0_15] : memref<64x32xf32, #tpu.memory_space<vmem>>, vector<16x32xf32>
    %c40_16 = arith.constant 40 : index
    %c0_17 = arith.constant 0 : index
    %18 = vector.load %arg18[%c40_16, %c0_17] : memref<64x32xf32, #tpu.memory_space<vmem>>, vector<16x32xf32>
    %19 = tpu.concatenate %17, %18 in 0 : vector<16x32xf32>, vector<16x32xf32> -> vector<32x32xf32>
    %c10 = arith.constant 10 : index
    %c0_18 = arith.constant 0 : index
    %20 = vector.load %arg18[%c10, %c0_18] : memref<64x32xf32, #tpu.memory_space<vmem>>, vector<16x32xf32>
    %c42 = arith.constant 42 : index
    %c0_19 = arith.constant 0 : index
    %21 = vector.load %arg18[%c42, %c0_19] : memref<64x32xf32, #tpu.memory_space<vmem>>, vector<16x32xf32>
    %22 = tpu.concatenate %20, %21 in 0 : vector<16x32xf32>, vector<16x32xf32> -> vector<32x32xf32>
    %23 = tpu.concatenate %16, %19, %22 in 1 : vector<32x32xf32>, vector<32x32xf32>, vector<32x32xf32> -> vector<32x96xf32>
    %c0_20 = arith.constant 0 : index
    %c0_21 = arith.constant 0 : index
    %c0_22 = arith.constant 0 : index
    %24 = vector.load %arg5[%c0_20, %c0_21, %c0_22] : memref<2x96x32xf32, #tpu.memory_space<vmem>>, vector<1x96x32xf32>
    %25 = vector.shape_cast %24 : vector<1x96x32xf32> to vector<96x32xf32>
    %cst_23 = arith.constant dense<0.000000e+00> : vector<32x32xf32>
    %26 = tpu.matmul %23, %25, %cst_23 {dimension_numbers = #tpu.dot_dimension_numbers<[1], [0], [0], [1], [0, 0, 1, 1], [], []>} : vector<32x96xf32>, vector<96x32xf32>, vector<32x32xf32> -> vector<32x32xf32>
    %c0_24 = arith.constant 0 : index
    %c0_25 = arith.constant 0 : index
    %c0_26 = arith.constant 0 : index
    %27 = vector.load %arg6[%c0_24, %c0_25, %c0_26] : memref<2x1x32xf32, #tpu.memory_space<vmem>>, vector<1x1x32xf32>
    %28 = vector.shape_cast %27 : vector<1x1x32xf32> to vector<1x32xf32>
    %29 = vector.broadcast %28 : vector<1x32xf32> to vector<32x32xf32>
    %30 = arith.addf %26, %29 : vector<32x32xf32>
    %cst_27 = arith.constant 0.000000e+00 : f32
    %31 = vector.broadcast %cst_27 : f32 to vector<32x32xf32>
    %32 = arith.maximumf %30, %31 : vector<32x32xf32>
    %33 = arith.addf %7, %32 : vector<32x32xf32>
    %34 = vector.extract_strided_slice %33 {offsets = [0, 0], sizes = [16, 32], strides = [1, 1]} : vector<32x32xf32> to vector<16x32xf32>
    %c8_28 = arith.constant 8 : index
    %c0_29 = arith.constant 0 : index
    %35 = vector.load %arg18[%c8_28, %c0_29] : memref<64x32xf32, #tpu.memory_space<vmem>>, vector<16x32xf32>
    tpu.vector_store %arg18[%c8_28, %c0_29], %34 {strides = array<i32>} : memref<64x32xf32, #tpu.memory_space<vmem>>, vector<16x32xf32>,
    %36 = vector.extract_strided_slice %33 {offsets = [16, 0], sizes = [16, 32], strides = [1, 1]} : vector<32x32xf32> to vector<16x32xf32>
    %c40_30 = arith.constant 40 : index
    %c0_31 = arith.constant 0 : index
    %37 = vector.load %arg18[%c40_30, %c0_31] : memref<64x32xf32, #tpu.memory_space<vmem>>, vector<16x32xf32>
    tpu.vector_store %arg18[%c40_30, %c0_31], %36 {strides = array<i32>} : memref<64x32xf32, #tpu.memory_space<vmem>>, vector<16x32xf32>,
    %c6_32 = arith.constant 6 : index
    %c0_33 = arith.constant 0 : index
    %38 = vector.load %arg18[%c6_32, %c0_33] : memref<64x32xf32, #tpu.memory_space<vmem>>, vector<16x32xf32>
    %c38_34 = arith.constant 38 : index
    %c0_35 = arith.constant 0 : index
    %39 = vector.load %arg18[%c38_34, %c0_35] : memref<64x32xf32, #tpu.memory_space<vmem>>, vector<16x32xf32>
    %40 = tpu.concatenate %38, %39 in 0 : vector<16x32xf32>, vector<16x32xf32> -> vector<32x32xf32>
    %c8_36 = arith.constant 8 : index
    %c0_37 = arith.constant 0 : index
    %41 = vector.load %arg18[%c8_36, %c0_37] : memref<64x32xf32, #tpu.memory_space<vmem>>, vector<16x32xf32>
    %c40_38 = arith.constant 40 : index
    %c0_39 = arith.constant 0 : index
    %42 = vector.load %arg18[%c40_38, %c0_39] : memref<64x32xf32, #tpu.memory_space<vmem>>, vector<16x32xf32>
    %43 = tpu.concatenate %41, %42 in 0 : vector<16x32xf32>, vector<16x32xf32> -> vector<32x32xf32>
    %c10_40 = arith.constant 10 : index
    %c0_41 = arith.constant 0 : index
    %44 = vector.load %arg18[%c10_40, %c0_41] : memref<64x32xf32, #tpu.memory_space<vmem>>, vector<16x32xf32>
    %c42_42 = arith.constant 42 : index
    %c0_43 = arith.constant 0 : index
    %45 = vector.load %arg18[%c42_42, %c0_43] : memref<64x32xf32, #tpu.memory_space<vmem>>, vector<16x32xf32>
    %46 = tpu.concatenate %44, %45 in 0 : vector<16x32xf32>, vector<16x32xf32> -> vector<32x32xf32>
    %47 = tpu.concatenate %40, %43, %46 in 1 : vector<32x32xf32>, vector<32x32xf32>, vector<32x32xf32> -> vector<32x96xf32>
    %c1 = arith.constant 1 : index
    %c0_44 = arith.constant 0 : index
    %c0_45 = arith.constant 0 : index
    %48 = vector.load %arg5[%c1, %c0_44, %c0_45] : memref<2x96x32xf32, #tpu.memory_space<vmem>>, vector<1x96x32xf32>
    %49 = vector.shape_cast %48 : vector<1x96x32xf32> to vector<96x32xf32>
    %cst_46 = arith.constant dense<0.000000e+00> : vector<32x32xf32>
    %50 = tpu.matmul %47, %49, %cst_46 {dimension_numbers = #tpu.dot_dimension_numbers<[1], [0], [0], [1], [0, 0, 1, 1], [], []>} : vector<32x96xf32>, vector<96x32xf32>, vector<32x32xf32> -> vector<32x32xf32>
    %c1_47 = arith.constant 1 : index
    %c0_48 = arith.constant 0 : index
    %c0_49 = arith.constant 0 : index
    %51 = vector.load %arg6[%c1_47, %c0_48, %c0_49] : memref<2x1x32xf32, #tpu.memory_space<vmem>>, vector<1x1x32xf32>
    %52 = vector.shape_cast %51 : vector<1x1x32xf32> to vector<1x32xf32>
    %53 = vector.broadcast %52 : vector<1x32xf32> to vector<32x32xf32>
    %54 = arith.addf %50, %53 : vector<32x32xf32>
    %cst_50 = arith.constant 0.000000e+00 : f32
    %55 = vector.broadcast %cst_50 : f32 to vector<32x32xf32>
    %56 = arith.maximumf %54, %55 : vector<32x32xf32>
    %57 = arith.addf %33, %56 : vector<32x32xf32>
    %c0_51 = arith.constant 0 : index
    %c0_52 = arith.constant 0 : index
    %58 = vector.load %arg7[%c0_51, %c0_52] : memref<4x128xf32, #tpu.memory_space<vmem>>, vector<4x128xf32>
    %c0_53 = arith.constant 0 : index
    %c0_54 = arith.constant 0 : index
    %59 = vector.load %arg10[%c0_53, %c0_54] : memref<3x128xf32, #tpu.memory_space<vmem>>, vector<1x128xf32>
    %c0_55 = arith.constant 0 : index
    %c0_56 = arith.constant 0 : index
    %c0_57 = arith.constant 0 : index
    %60 = vector.load %arg2[%c0_55, %c0_56, %c0_57] : memref<2x8x4xf32, #tpu.memory_space<vmem>>, vector<1x8x4xf32>
    %61 = vector.shape_cast %60 : vector<1x8x4xf32> to vector<8x4xf32>
    %cst_58 = arith.constant dense<0.000000e+00> : vector<8x128xf32>
    %62 = tpu.matmul %61, %58, %cst_58 {dimension_numbers = #tpu.dot_dimension_numbers<[1], [0], [0], [1], [0, 0, 1, 1], [], []>} : vector<8x4xf32>, vector<4x128xf32>, vector<8x128xf32> -> vector<8x128xf32>
    %63 = vector.broadcast %59 : vector<1x128xf32> to vector<8x128xf32>
    %64 = arith.addf %62, %63 : vector<8x128xf32>
    %c0_59 = arith.constant 0 : index
    %c0_60 = arith.constant 0 : index
    %c0_61 = arith.constant 0 : index
    %65 = vector.load %arg19[%c0_59, %c0_60, %c0_61] : memref<8x2x128xf32, #tpu.memory_space<vmem>>, vector<8x1x128xf32>
    %66 = vector.shape_cast %65 : vector<8x1x128xf32> to vector<8x128xf32>
    %67 = vector.shape_cast %64 : vector<8x128xf32> to vector<8x1x128xf32>
    tpu.vector_store %arg19[%c0_59, %c0_60, %c0_61], %67 {strides = array<i32>} : memref<8x2x128xf32, #tpu.memory_space<vmem>>, vector<8x1x128xf32>,
    %c1_62 = arith.constant 1 : index
    %c0_63 = arith.constant 0 : index
    %c0_64 = arith.constant 0 : index
    %68 = vector.load %arg2[%c1_62, %c0_63, %c0_64] : memref<2x8x4xf32, #tpu.memory_space<vmem>>, vector<1x8x4xf32>
    %69 = vector.shape_cast %68 : vector<1x8x4xf32> to vector<8x4xf32>
    %cst_65 = arith.constant dense<0.000000e+00> : vector<8x128xf32>
    %70 = tpu.matmul %69, %58, %cst_65 {dimension_numbers = #tpu.dot_dimension_numbers<[1], [0], [0], [1], [0, 0, 1, 1], [], []>} : vector<8x4xf32>, vector<4x128xf32>, vector<8x128xf32> -> vector<8x128xf32>
    %71 = vector.broadcast %59 : vector<1x128xf32> to vector<8x128xf32>
    %72 = arith.addf %70, %71 : vector<8x128xf32>
    %c0_66 = arith.constant 0 : index
    %c1_67 = arith.constant 1 : index
    %c0_68 = arith.constant 0 : index
    %73 = vector.load %arg19[%c0_66, %c1_67, %c0_68] : memref<8x2x128xf32, #tpu.memory_space<vmem>>, vector<8x1x128xf32>
    %74 = vector.shape_cast %73 : vector<8x1x128xf32> to vector<8x128xf32>
    %75 = vector.shape_cast %72 : vector<8x128xf32> to vector<8x1x128xf32>
    tpu.vector_store %arg19[%c0_66, %c1_67, %c0_68], %75 {strides = array<i32>} : memref<8x2x128xf32, #tpu.memory_space<vmem>>, vector<8x1x128xf32>,
    %c0_69 = arith.constant 0 : index
    %c0_70 = arith.constant 0 : index
    %76 = vector.load %arg11[%c0_69, %c0_70] : memref<32x128xf32, #tpu.memory_space<vmem>>, vector<32x128xf32>
    %c0_71 = arith.constant 0 : index
    %c0_72 = arith.constant 0 : index
    %77 = vector.load %arg14[%c0_71, %c0_72] : memref<3x128xf32, #tpu.memory_space<vmem>>, vector<1x128xf32>
    %78 = vector.extract_strided_slice %57 {offsets = [8, 0], sizes = [8, 32], strides = [1, 1]} : vector<32x32xf32> to vector<8x32xf32>
    %cst_73 = arith.constant dense<0.000000e+00> : vector<8x128xf32>
    %79 = tpu.matmul %78, %76, %cst_73 {dimension_numbers = #tpu.dot_dimension_numbers<[1], [0], [0], [1], [0, 0, 1, 1], [], []>} : vector<8x32xf32>, vector<32x128xf32>, vector<8x128xf32> -> vector<8x128xf32>
    %80 = vector.broadcast %77 : vector<1x128xf32> to vector<8x128xf32>
    %81 = arith.addf %79, %80 : vector<8x128xf32>
    %c0_74 = arith.constant 0 : index
    %c0_75 = arith.constant 0 : index
    %c0_76 = arith.constant 0 : index
    %82 = vector.load %arg20[%c0_74, %c0_75, %c0_76] : memref<8x2x128xf32, #tpu.memory_space<vmem>>, vector<8x1x128xf32>
    %83 = vector.shape_cast %82 : vector<8x1x128xf32> to vector<8x128xf32>
    %84 = vector.shape_cast %81 : vector<8x128xf32> to vector<8x1x128xf32>
    tpu.vector_store %arg20[%c0_74, %c0_75, %c0_76], %84 {strides = array<i32>} : memref<8x2x128xf32, #tpu.memory_space<vmem>>, vector<8x1x128xf32>,
    %85 = vector.extract_strided_slice %57 {offsets = [24, 0], sizes = [8, 32], strides = [1, 1]} : vector<32x32xf32> to vector<8x32xf32>
    %cst_77 = arith.constant dense<0.000000e+00> : vector<8x128xf32>
    %86 = tpu.matmul %85, %76, %cst_77 {dimension_numbers = #tpu.dot_dimension_numbers<[1], [0], [0], [1], [0, 0, 1, 1], [], []>} : vector<8x32xf32>, vector<32x128xf32>, vector<8x128xf32> -> vector<8x128xf32>
    %87 = vector.broadcast %77 : vector<1x128xf32> to vector<8x128xf32>
    %88 = arith.addf %86, %87 : vector<8x128xf32>
    %c0_78 = arith.constant 0 : index
    %c1_79 = arith.constant 1 : index
    %c0_80 = arith.constant 0 : index
    %89 = vector.load %arg20[%c0_78, %c1_79, %c0_80] : memref<8x2x128xf32, #tpu.memory_space<vmem>>, vector<8x1x128xf32>
    %90 = vector.shape_cast %89 : vector<8x1x128xf32> to vector<8x128xf32>
    %91 = vector.shape_cast %88 : vector<8x128xf32> to vector<8x1x128xf32>
    tpu.vector_store %arg20[%c0_78, %c1_79, %c0_80], %91 {strides = array<i32>} : memref<8x2x128xf32, #tpu.memory_space<vmem>>, vector<8x1x128xf32>,
    %c0_81 = arith.constant 0 : index
    %c0_82 = arith.constant 0 : index
    %92 = vector.load %arg8[%c0_81, %c0_82] : memref<32x128xf32, #tpu.memory_space<vmem>>, vector<32x128xf32>
    %c0_83 = arith.constant 0 : index
    %c0_84 = arith.constant 0 : index
    %c0_85 = arith.constant 0 : index
    %93 = vector.load %arg9[%c0_83, %c0_84, %c0_85] : memref<2x64x128xf32, #tpu.memory_space<vmem>>, vector<1x64x128xf32>
    %94 = vector.shape_cast %93 : vector<1x64x128xf32> to vector<64x128xf32>
    %c1_86 = arith.constant 1 : index
    %c0_87 = arith.constant 0 : index
    %c0_88 = arith.constant 0 : index
    %95 = vector.load %arg9[%c1_86, %c0_87, %c0_88] : memref<2x64x128xf32, #tpu.memory_space<vmem>>, vector<1x64x128xf32>
    %96 = vector.shape_cast %95 : vector<1x64x128xf32> to vector<64x128xf32>
    %c1_89 = arith.constant 1 : index
    %c0_90 = arith.constant 0 : index
    %97 = vector.load %arg10[%c1_89, %c0_90] : memref<3x128xf32, #tpu.memory_space<vmem>>, vector<1x128xf32>
    %c2 = arith.constant 2 : index
    %c0_91 = arith.constant 0 : index
    %98 = vector.load %arg10[%c2, %c0_91] : memref<3x128xf32, #tpu.memory_space<vmem>>, vector<1x128xf32>
    %cst_92 = arith.constant 0.000000e+00 : f32
    %99 = vector.broadcast %cst_92 : f32 to vector<2x32xf32>
    %c0_i32 = arith.constant 0 : i32
    %100 = arith.index_cast %c0_i32 : i32 to index
    %c0_93 = arith.constant 0 : index
    %c0_94 = arith.constant 0 : index
    %101 = vector.load %arg19[%100, %c0_93, %c0_94] : memref<8x2x128xf32, #tpu.memory_space<vmem>>, vector<1x2x128xf32>
    %102 = vector.shape_cast %101 : vector<1x2x128xf32> to vector<2x128xf32>
    %cst_95 = arith.constant dense<0.000000e+00> : vector<2x128xf32>
    %103 = tpu.matmul %99, %92, %cst_95 {dimension_numbers = #tpu.dot_dimension_numbers<[1], [0], [0], [1], [0, 0, 1, 1], [], []>} : vector<2x32xf32>, vector<32x128xf32>, vector<2x128xf32> -> vector<2x128xf32>
    %104 = arith.addf %102, %103 : vector<2x128xf32>
    %105 = arith.negf %104 : vector<2x128xf32>
    %106 = math.exp %105 : vector<2x128xf32>
    %cst_96 = arith.constant 1.000000e+00 : f32
    %107 = vector.broadcast %cst_96 : f32 to vector<2x128xf32>
    %108 = arith.addf %107, %106 : vector<2x128xf32>
    %109 = arith.divf %107, %108 : vector<2x128xf32>
    %110 = vector.extract_strided_slice %104 {offsets = [0, 64], sizes = [2, 32], strides = [1, 1]} : vector<2x128xf32> to vector<2x32xf32>
    %111 = math.tanh %110 : vector<2x32xf32>
    %112 = vector.extract_strided_slice %109 {offsets = [0, 32], sizes = [2, 32], strides = [1, 1]} : vector<2x128xf32> to vector<2x32xf32>
    %113 = arith.mulf %112, %99 : vector<2x32xf32>
    %114 = vector.extract_strided_slice %109 {offsets = [0, 0], sizes = [2, 32], strides = [1, 1]} : vector<2x128xf32> to vector<2x32xf32>
    %115 = arith.mulf %114, %111 : vector<2x32xf32>
    %116 = arith.addf %113, %115 : vector<2x32xf32>
    %117 = vector.extract_strided_slice %109 {offsets = [0, 96], sizes = [2, 32], strides = [1, 1]} : vector<2x128xf32> to vector<2x32xf32>
    %118 = math.tanh %116 : vector<2x32xf32>
    %119 = arith.mulf %117, %118 : vector<2x32xf32>
    %120 = tpu.concatenate %119, %99 in 1 : vector<2x32xf32>, vector<2x32xf32> -> vector<2x64xf32>
    %cst_97 = arith.constant dense<0.000000e+00> : vector<2x128xf32>
    %121 = tpu.matmul %120, %94, %cst_97 {dimension_numbers = #tpu.dot_dimension_numbers<[1], [0], [0], [1], [0, 0, 1, 1], [], []>} : vector<2x64xf32>, vector<64x128xf32>, vector<2x128xf32> -> vector<2x128xf32>
    %122 = vector.broadcast %97 : vector<1x128xf32> to vector<2x128xf32>
    %123 = arith.addf %121, %122 : vector<2x128xf32>
    %124 = arith.negf %123 : vector<2x128xf32>
    %125 = math.exp %124 : vector<2x128xf32>
    %cst_98 = arith.constant 1.000000e+00 : f32
    %126 = vector.broadcast %cst_98 : f32 to vector<2x128xf32>
    %127 = arith.addf %126, %125 : vector<2x128xf32>
    %128 = arith.divf %126, %127 : vector<2x128xf32>
    %129 = vector.extract_strided_slice %123 {offsets = [0, 64], sizes = [2, 32], strides = [1, 1]} : vector<2x128xf32> to vector<2x32xf32>
    %130 = math.tanh %129 : vector<2x32xf32>
    %131 = vector.extract_strided_slice %128 {offsets = [0, 32], sizes = [2, 32], strides = [1, 1]} : vector<2x128xf32> to vector<2x32xf32>
    %132 = arith.mulf %131, %99 : vector<2x32xf32>
    %133 = vector.extract_strided_slice %128 {offsets = [0, 0], sizes = [2, 32], strides = [1, 1]} : vector<2x128xf32> to vector<2x32xf32>
    %134 = arith.mulf %133, %130 : vector<2x32xf32>
    %135 = arith.addf %132, %134 : vector<2x32xf32>
    %136 = vector.extract_strided_slice %128 {offsets = [0, 96], sizes = [2, 32], strides = [1, 1]} : vector<2x128xf32> to vector<2x32xf32>
    %137 = math.tanh %135 : vector<2x32xf32>
    %138 = arith.mulf %136, %137 : vector<2x32xf32>
    %139 = tpu.concatenate %138, %99 in 1 : vector<2x32xf32>, vector<2x32xf32> -> vector<2x64xf32>
    %cst_99 = arith.constant dense<0.000000e+00> : vector<2x128xf32>
    %140 = tpu.matmul %139, %96, %cst_99 {dimension_numbers = #tpu.dot_dimension_numbers<[1], [0], [0], [1], [0, 0, 1, 1], [], []>} : vector<2x64xf32>, vector<64x128xf32>, vector<2x128xf32> -> vector<2x128xf32>
    %141 = vector.broadcast %98 : vector<1x128xf32> to vector<2x128xf32>
    %142 = arith.addf %140, %141 : vector<2x128xf32>
    %143 = arith.negf %142 : vector<2x128xf32>
    %144 = math.exp %143 : vector<2x128xf32>
    %cst_100 = arith.constant 1.000000e+00 : f32
    %145 = vector.broadcast %cst_100 : f32 to vector<2x128xf32>
    %146 = arith.addf %145, %144 : vector<2x128xf32>
    %147 = arith.divf %145, %146 : vector<2x128xf32>
    %148 = vector.extract_strided_slice %142 {offsets = [0, 64], sizes = [2, 32], strides = [1, 1]} : vector<2x128xf32> to vector<2x32xf32>
    %149 = math.tanh %148 : vector<2x32xf32>
    %150 = vector.extract_strided_slice %147 {offsets = [0, 32], sizes = [2, 32], strides = [1, 1]} : vector<2x128xf32> to vector<2x32xf32>
    %151 = arith.mulf %150, %99 : vector<2x32xf32>
    %152 = vector.extract_strided_slice %147 {offsets = [0, 0], sizes = [2, 32], strides = [1, 1]} : vector<2x128xf32> to vector<2x32xf32>
    %153 = arith.mulf %152, %149 : vector<2x32xf32>
    %154 = arith.addf %151, %153 : vector<2x32xf32>
    %155 = vector.extract_strided_slice %147 {offsets = [0, 96], sizes = [2, 32], strides = [1, 1]} : vector<2x128xf32> to vector<2x32xf32>
    %156 = math.tanh %154 : vector<2x32xf32>
    %157 = arith.mulf %155, %156 : vector<2x32xf32>
    %c1_i32 = arith.constant 1 : i32
    %158 = arith.index_cast %c1_i32 : i32 to index
    %c0_101 = arith.constant 0 : index
    %c0_102 = arith.constant 0 : index
    %159 = vector.load %arg19[%158, %c0_101, %c0_102] : memref<8x2x128xf32, #tpu.memory_space<vmem>>, vector<1x2x128xf32>
    %160 = vector.shape_cast %159 : vector<1x2x128xf32> to vector<2x128xf32>
    %cst_103 = arith.constant dense<0.000000e+00> : vector<2x128xf32>
    %161 = tpu.matmul %119, %92, %cst_103 {dimension_numbers = #tpu.dot_dimension_numbers<[1], [0], [0], [1], [0, 0, 1, 1], [], []>} : vector<2x32xf32>, vector<32x128xf32>, vector<2x128xf32> -> vector<2x128xf32>
    %162 = arith.addf %160, %161 : vector<2x128xf32>
    %163 = arith.negf %162 : vector<2x128xf32>
    %164 = math.exp %163 : vector<2x128xf32>
    %cst_104 = arith.constant 1.000000e+00 : f32
    %165 = vector.broadcast %cst_104 : f32 to vector<2x128xf32>
    %166 = arith.addf %165, %164 : vector<2x128xf32>
    %167 = arith.divf %165, %166 : vector<2x128xf32>
    %168 = vector.extract_strided_slice %162 {offsets = [0, 64], sizes = [2, 32], strides = [1, 1]} : vector<2x128xf32> to vector<2x32xf32>
    %169 = math.tanh %168 : vector<2x32xf32>
    %170 = vector.extract_strided_slice %167 {offsets = [0, 32], sizes = [2, 32], strides = [1, 1]} : vector<2x128xf32> to vector<2x32xf32>
    %171 = arith.mulf %170, %116 : vector<2x32xf32>
    %172 = vector.extract_strided_slice %167 {offsets = [0, 0], sizes = [2, 32], strides = [1, 1]} : vector<2x128xf32> to vector<2x32xf32>
    %173 = arith.mulf %172, %169 : vector<2x32xf32>
    %174 = arith.addf %171, %173 : vector<2x32xf32>
    %175 = vector.extract_strided_slice %167 {offsets = [0, 96], sizes = [2, 32], strides = [1, 1]} : vector<2x128xf32> to vector<2x32xf32>
    %176 = math.tanh %174 : vector<2x32xf32>
    %177 = arith.mulf %175, %176 : vector<2x32xf32>
    %178 = tpu.concatenate %177, %138 in 1 : vector<2x32xf32>, vector<2x32xf32> -> vector<2x64xf32>
    %cst_105 = arith.constant dense<0.000000e+00> : vector<2x128xf32>
    %179 = tpu.matmul %178, %94, %cst_105 {dimension_numbers = #tpu.dot_dimension_numbers<[1], [0], [0], [1], [0, 0, 1, 1], [], []>} : vector<2x64xf32>, vector<64x128xf32>, vector<2x128xf32> -> vector<2x128xf32>
    %180 = vector.broadcast %97 : vector<1x128xf32> to vector<2x128xf32>
    %181 = arith.addf %179, %180 : vector<2x128xf32>
    %182 = arith.negf %181 : vector<2x128xf32>
    %183 = math.exp %182 : vector<2x128xf32>
    %cst_106 = arith.constant 1.000000e+00 : f32
    %184 = vector.broadcast %cst_106 : f32 to vector<2x128xf32>
    %185 = arith.addf %184, %183 : vector<2x128xf32>
    %186 = arith.divf %184, %185 : vector<2x128xf32>
    %187 = vector.extract_strided_slice %181 {offsets = [0, 64], sizes = [2, 32], strides = [1, 1]} : vector<2x128xf32> to vector<2x32xf32>
    %188 = math.tanh %187 : vector<2x32xf32>
    %189 = vector.extract_strided_slice %186 {offsets = [0, 32], sizes = [2, 32], strides = [1, 1]} : vector<2x128xf32> to vector<2x32xf32>
    %190 = arith.mulf %189, %135 : vector<2x32xf32>
    %191 = vector.extract_strided_slice %186 {offsets = [0, 0], sizes = [2, 32], strides = [1, 1]} : vector<2x128xf32> to vector<2x32xf32>
    %192 = arith.mulf %191, %188 : vector<2x32xf32>
    %193 = arith.addf %190, %192 : vector<2x32xf32>
    %194 = vector.extract_strided_slice %186 {offsets = [0, 96], sizes = [2, 32], strides = [1, 1]} : vector<2x128xf32> to vector<2x32xf32>
    %195 = math.tanh %193 : vector<2x32xf32>
    %196 = arith.mulf %194, %195 : vector<2x32xf32>
    %197 = tpu.concatenate %196, %157 in 1 : vector<2x32xf32>, vector<2x32xf32> -> vector<2x64xf32>
    %cst_107 = arith.constant dense<0.000000e+00> : vector<2x128xf32>
    %198 = tpu.matmul %197, %96, %cst_107 {dimension_numbers = #tpu.dot_dimension_numbers<[1], [0], [0], [1], [0, 0, 1, 1], [], []>} : vector<2x64xf32>, vector<64x128xf32>, vector<2x128xf32> -> vector<2x128xf32>
    %199 = vector.broadcast %98 : vector<1x128xf32> to vector<2x128xf32>
    %200 = arith.addf %198, %199 : vector<2x128xf32>
    %201 = arith.negf %200 : vector<2x128xf32>
    %202 = math.exp %201 : vector<2x128xf32>
    %cst_108 = arith.constant 1.000000e+00 : f32
    %203 = vector.broadcast %cst_108 : f32 to vector<2x128xf32>
    %204 = arith.addf %203, %202 : vector<2x128xf32>
    %205 = arith.divf %203, %204 : vector<2x128xf32>
    %206 = vector.extract_strided_slice %200 {offsets = [0, 64], sizes = [2, 32], strides = [1, 1]} : vector<2x128xf32> to vector<2x32xf32>
    %207 = math.tanh %206 : vector<2x32xf32>
    %208 = vector.extract_strided_slice %205 {offsets = [0, 32], sizes = [2, 32], strides = [1, 1]} : vector<2x128xf32> to vector<2x32xf32>
    %209 = arith.mulf %208, %154 : vector<2x32xf32>
    %210 = vector.extract_strided_slice %205 {offsets = [0, 0], sizes = [2, 32], strides = [1, 1]} : vector<2x128xf32> to vector<2x32xf32>
    %211 = arith.mulf %210, %207 : vector<2x32xf32>
    %212 = arith.addf %209, %211 : vector<2x32xf32>
    %213 = vector.extract_strided_slice %205 {offsets = [0, 96], sizes = [2, 32], strides = [1, 1]} : vector<2x128xf32> to vector<2x32xf32>
    %214 = math.tanh %212 : vector<2x32xf32>
    %215 = arith.mulf %213, %214 : vector<2x32xf32>
    %c2_i32 = arith.constant 2 : i32
    %216 = arith.index_cast %c2_i32 : i32 to index
    %c0_109 = arith.constant 0 : index
    %c0_110 = arith.constant 0 : index
    %217 = vector.load %arg19[%216, %c0_109, %c0_110] : memref<8x2x128xf32, #tpu.memory_space<vmem>>, vector<1x2x128xf32>
    %218 = vector.shape_cast %217 : vector<1x2x128xf32> to vector<2x128xf32>
    %cst_111 = arith.constant dense<0.000000e+00> : vector<2x128xf32>
    %219 = tpu.matmul %177, %92, %cst_111 {dimension_numbers = #tpu.dot_dimension_numbers<[1], [0], [0], [1], [0, 0, 1, 1], [], []>} : vector<2x32xf32>, vector<32x128xf32>, vector<2x128xf32> -> vector<2x128xf32>
    %220 = arith.addf %218, %219 : vector<2x128xf32>
    %221 = arith.negf %220 : vector<2x128xf32>
    %222 = math.exp %221 : vector<2x128xf32>
    %cst_112 = arith.constant 1.000000e+00 : f32
    %223 = vector.broadcast %cst_112 : f32 to vector<2x128xf32>
    %224 = arith.addf %223, %222 : vector<2x128xf32>
    %225 = arith.divf %223, %224 : vector<2x128xf32>
    %226 = vector.extract_strided_slice %220 {offsets = [0, 64], sizes = [2, 32], strides = [1, 1]} : vector<2x128xf32> to vector<2x32xf32>
    %227 = math.tanh %226 : vector<2x32xf32>
    %228 = vector.extract_strided_slice %225 {offsets = [0, 32], sizes = [2, 32], strides = [1, 1]} : vector<2x128xf32> to vector<2x32xf32>
    %229 = arith.mulf %228, %174 : vector<2x32xf32>
    %230 = vector.extract_strided_slice %225 {offsets = [0, 0], sizes = [2, 32], strides = [1, 1]} : vector<2x128xf32> to vector<2x32xf32>
    %231 = arith.mulf %230, %227 : vector<2x32xf32>
    %232 = arith.addf %229, %231 : vector<2x32xf32>
    %233 = vector.extract_strided_slice %225 {offsets = [0, 96], sizes = [2, 32], strides = [1, 1]} : vector<2x128xf32> to vector<2x32xf32>
    %234 = math.tanh %232 : vector<2x32xf32>
    %235 = arith.mulf %233, %234 : vector<2x32xf32>
    %236 = tpu.concatenate %235, %196 in 1 : vector<2x32xf32>, vector<2x32xf32> -> vector<2x64xf32>
    %cst_113 = arith.constant dense<0.000000e+00> : vector<2x128xf32>
    %237 = tpu.matmul %236, %94, %cst_113 {dimension_numbers = #tpu.dot_dimension_numbers<[1], [0], [0], [1], [0, 0, 1, 1], [], []>} : vector<2x64xf32>, vector<64x128xf32>, vector<2x128xf32> -> vector<2x128xf32>
    %238 = vector.broadcast %97 : vector<1x128xf32> to vector<2x128xf32>
    %239 = arith.addf %237, %238 : vector<2x128xf32>
    %240 = arith.negf %239 : vector<2x128xf32>
    %241 = math.exp %240 : vector<2x128xf32>
    %cst_114 = arith.constant 1.000000e+00 : f32
    %242 = vector.broadcast %cst_114 : f32 to vector<2x128xf32>
    %243 = arith.addf %242, %241 : vector<2x128xf32>
    %244 = arith.divf %242, %243 : vector<2x128xf32>
    %245 = vector.extract_strided_slice %239 {offsets = [0, 64], sizes = [2, 32], strides = [1, 1]} : vector<2x128xf32> to vector<2x32xf32>
    %246 = math.tanh %245 : vector<2x32xf32>
    %247 = vector.extract_strided_slice %244 {offsets = [0, 32], sizes = [2, 32], strides = [1, 1]} : vector<2x128xf32> to vector<2x32xf32>
    %248 = arith.mulf %247, %193 : vector<2x32xf32>
    %249 = vector.extract_strided_slice %244 {offsets = [0, 0], sizes = [2, 32], strides = [1, 1]} : vector<2x128xf32> to vector<2x32xf32>
    %250 = arith.mulf %249, %246 : vector<2x32xf32>
    %251 = arith.addf %248, %250 : vector<2x32xf32>
    %252 = vector.extract_strided_slice %244 {offsets = [0, 96], sizes = [2, 32], strides = [1, 1]} : vector<2x128xf32> to vector<2x32xf32>
    %253 = math.tanh %251 : vector<2x32xf32>
    %254 = arith.mulf %252, %253 : vector<2x32xf32>
    %255 = tpu.concatenate %254, %215 in 1 : vector<2x32xf32>, vector<2x32xf32> -> vector<2x64xf32>
    %cst_115 = arith.constant dense<0.000000e+00> : vector<2x128xf32>
    %256 = tpu.matmul %255, %96, %cst_115 {dimension_numbers = #tpu.dot_dimension_numbers<[1], [0], [0], [1], [0, 0, 1, 1], [], []>} : vector<2x64xf32>, vector<64x128xf32>, vector<2x128xf32> -> vector<2x128xf32>
    %257 = vector.broadcast %98 : vector<1x128xf32> to vector<2x128xf32>
    %258 = arith.addf %256, %257 : vector<2x128xf32>
    %259 = arith.negf %258 : vector<2x128xf32>
    %260 = math.exp %259 : vector<2x128xf32>
    %cst_116 = arith.constant 1.000000e+00 : f32
    %261 = vector.broadcast %cst_116 : f32 to vector<2x128xf32>
    %262 = arith.addf %261, %260 : vector<2x128xf32>
    %263 = arith.divf %261, %262 : vector<2x128xf32>
    %264 = vector.extract_strided_slice %258 {offsets = [0, 64], sizes = [2, 32], strides = [1, 1]} : vector<2x128xf32> to vector<2x32xf32>
    %265 = math.tanh %264 : vector<2x32xf32>
    %266 = vector.extract_strided_slice %263 {offsets = [0, 32], sizes = [2, 32], strides = [1, 1]} : vector<2x128xf32> to vector<2x32xf32>
    %267 = arith.mulf %266, %212 : vector<2x32xf32>
    %268 = vector.extract_strided_slice %263 {offsets = [0, 0], sizes = [2, 32], strides = [1, 1]} : vector<2x128xf32> to vector<2x32xf32>
    %269 = arith.mulf %268, %265 : vector<2x32xf32>
    %270 = arith.addf %267, %269 : vector<2x32xf32>
    %271 = vector.extract_strided_slice %263 {offsets = [0, 96], sizes = [2, 32], strides = [1, 1]} : vector<2x128xf32> to vector<2x32xf32>
    %272 = math.tanh %270 : vector<2x32xf32>
    %273 = arith.mulf %271, %272 : vector<2x32xf32>
    %c3_i32 = arith.constant 3 : i32
    %274 = arith.index_cast %c3_i32 : i32 to index
    %c0_117 = arith.constant 0 : index
    %c0_118 = arith.constant 0 : index
    %275 = vector.load %arg19[%274, %c0_117, %c0_118] : memref<8x2x128xf32, #tpu.memory_space<vmem>>, vector<1x2x128xf32>
    %276 = vector.shape_cast %275 : vector<1x2x128xf32> to vector<2x128xf32>
    %cst_119 = arith.constant dense<0.000000e+00> : vector<2x128xf32>
    %277 = tpu.matmul %235, %92, %cst_119 {dimension_numbers = #tpu.dot_dimension_numbers<[1], [0], [0], [1], [0, 0, 1, 1], [], []>} : vector<2x32xf32>, vector<32x128xf32>, vector<2x128xf32> -> vector<2x128xf32>
    %278 = arith.addf %276, %277 : vector<2x128xf32>
    %279 = arith.negf %278 : vector<2x128xf32>
    %280 = math.exp %279 : vector<2x128xf32>
    %cst_120 = arith.constant 1.000000e+00 : f32
    %281 = vector.broadcast %cst_120 : f32 to vector<2x128xf32>
    %282 = arith.addf %281, %280 : vector<2x128xf32>
    %283 = arith.divf %281, %282 : vector<2x128xf32>
    %284 = vector.extract_strided_slice %278 {offsets = [0, 64], sizes = [2, 32], strides = [1, 1]} : vector<2x128xf32> to vector<2x32xf32>
    %285 = math.tanh %284 : vector<2x32xf32>
    %286 = vector.extract_strided_slice %283 {offsets = [0, 32], sizes = [2, 32], strides = [1, 1]} : vector<2x128xf32> to vector<2x32xf32>
    %287 = arith.mulf %286, %232 : vector<2x32xf32>
    %288 = vector.extract_strided_slice %283 {offsets = [0, 0], sizes = [2, 32], strides = [1, 1]} : vector<2x128xf32> to vector<2x32xf32>
    %289 = arith.mulf %288, %285 : vector<2x32xf32>
    %290 = arith.addf %287, %289 : vector<2x32xf32>
    %291 = vector.extract_strided_slice %283 {offsets = [0, 96], sizes = [2, 32], strides = [1, 1]} : vector<2x128xf32> to vector<2x32xf32>
    %292 = math.tanh %290 : vector<2x32xf32>
    %293 = arith.mulf %291, %292 : vector<2x32xf32>
    %294 = tpu.concatenate %293, %254 in 1 : vector<2x32xf32>, vector<2x32xf32> -> vector<2x64xf32>
    %cst_121 = arith.constant dense<0.000000e+00> : vector<2x128xf32>
    %295 = tpu.matmul %294, %94, %cst_121 {dimension_numbers = #tpu.dot_dimension_numbers<[1], [0], [0], [1], [0, 0, 1, 1], [], []>} : vector<2x64xf32>, vector<64x128xf32>, vector<2x128xf32> -> vector<2x128xf32>
    %296 = vector.broadcast %97 : vector<1x128xf32> to vector<2x128xf32>
    %297 = arith.addf %295, %296 : vector<2x128xf32>
    %298 = arith.negf %297 : vector<2x128xf32>
    %299 = math.exp %298 : vector<2x128xf32>
    %cst_122 = arith.constant 1.000000e+00 : f32
    %300 = vector.broadcast %cst_122 : f32 to vector<2x128xf32>
    %301 = arith.addf %300, %299 : vector<2x128xf32>
    %302 = arith.divf %300, %301 : vector<2x128xf32>
    %303 = vector.extract_strided_slice %297 {offsets = [0, 64], sizes = [2, 32], strides = [1, 1]} : vector<2x128xf32> to vector<2x32xf32>
    %304 = math.tanh %303 : vector<2x32xf32>
    %305 = vector.extract_strided_slice %302 {offsets = [0, 32], sizes = [2, 32], strides = [1, 1]} : vector<2x128xf32> to vector<2x32xf32>
    %306 = arith.mulf %305, %251 : vector<2x32xf32>
    %307 = vector.extract_strided_slice %302 {offsets = [0, 0], sizes = [2, 32], strides = [1, 1]} : vector<2x128xf32> to vector<2x32xf32>
    %308 = arith.mulf %307, %304 : vector<2x32xf32>
    %309 = arith.addf %306, %308 : vector<2x32xf32>
    %310 = vector.extract_strided_slice %302 {offsets = [0, 96], sizes = [2, 32], strides = [1, 1]} : vector<2x128xf32> to vector<2x32xf32>
    %311 = math.tanh %309 : vector<2x32xf32>
    %312 = arith.mulf %310, %311 : vector<2x32xf32>
    %313 = tpu.concatenate %312, %273 in 1 : vector<2x32xf32>, vector<2x32xf32> -> vector<2x64xf32>
    %cst_123 = arith.constant dense<0.000000e+00> : vector<2x128xf32>
    %314 = tpu.matmul %313, %96, %cst_123 {dimension_numbers = #tpu.dot_dimension_numbers<[1], [0], [0], [1], [0, 0, 1, 1], [], []>} : vector<2x64xf32>, vector<64x128xf32>, vector<2x128xf32> -> vector<2x128xf32>
    %315 = vector.broadcast %98 : vector<1x128xf32> to vector<2x128xf32>
    %316 = arith.addf %314, %315 : vector<2x128xf32>
    %317 = arith.negf %316 : vector<2x128xf32>
    %318 = math.exp %317 : vector<2x128xf32>
    %cst_124 = arith.constant 1.000000e+00 : f32
    %319 = vector.broadcast %cst_124 : f32 to vector<2x128xf32>
    %320 = arith.addf %319, %318 : vector<2x128xf32>
    %321 = arith.divf %319, %320 : vector<2x128xf32>
    %322 = vector.extract_strided_slice %316 {offsets = [0, 64], sizes = [2, 32], strides = [1, 1]} : vector<2x128xf32> to vector<2x32xf32>
    %323 = math.tanh %322 : vector<2x32xf32>
    %324 = vector.extract_strided_slice %321 {offsets = [0, 32], sizes = [2, 32], strides = [1, 1]} : vector<2x128xf32> to vector<2x32xf32>
    %325 = arith.mulf %324, %270 : vector<2x32xf32>
    %326 = vector.extract_strided_slice %321 {offsets = [0, 0], sizes = [2, 32], strides = [1, 1]} : vector<2x128xf32> to vector<2x32xf32>
    %327 = arith.mulf %326, %323 : vector<2x32xf32>
    %328 = arith.addf %325, %327 : vector<2x32xf32>
    %329 = vector.extract_strided_slice %321 {offsets = [0, 96], sizes = [2, 32], strides = [1, 1]} : vector<2x128xf32> to vector<2x32xf32>
    %330 = math.tanh %328 : vector<2x32xf32>
    %331 = arith.mulf %329, %330 : vector<2x32xf32>
    %c4_i32 = arith.constant 4 : i32
    %332 = arith.index_cast %c4_i32 : i32 to index
    %c0_125 = arith.constant 0 : index
    %c0_126 = arith.constant 0 : index
    %333 = vector.load %arg19[%332, %c0_125, %c0_126] : memref<8x2x128xf32, #tpu.memory_space<vmem>>, vector<1x2x128xf32>
    %334 = vector.shape_cast %333 : vector<1x2x128xf32> to vector<2x128xf32>
    %cst_127 = arith.constant dense<0.000000e+00> : vector<2x128xf32>
    %335 = tpu.matmul %293, %92, %cst_127 {dimension_numbers = #tpu.dot_dimension_numbers<[1], [0], [0], [1], [0, 0, 1, 1], [], []>} : vector<2x32xf32>, vector<32x128xf32>, vector<2x128xf32> -> vector<2x128xf32>
    %336 = arith.addf %334, %335 : vector<2x128xf32>
    %337 = arith.negf %336 : vector<2x128xf32>
    %338 = math.exp %337 : vector<2x128xf32>
    %cst_128 = arith.constant 1.000000e+00 : f32
    %339 = vector.broadcast %cst_128 : f32 to vector<2x128xf32>
    %340 = arith.addf %339, %338 : vector<2x128xf32>
    %341 = arith.divf %339, %340 : vector<2x128xf32>
    %342 = vector.extract_strided_slice %336 {offsets = [0, 64], sizes = [2, 32], strides = [1, 1]} : vector<2x128xf32> to vector<2x32xf32>
    %343 = math.tanh %342 : vector<2x32xf32>
    %344 = vector.extract_strided_slice %341 {offsets = [0, 32], sizes = [2, 32], strides = [1, 1]} : vector<2x128xf32> to vector<2x32xf32>
    %345 = arith.mulf %344, %290 : vector<2x32xf32>
    %346 = vector.extract_strided_slice %341 {offsets = [0, 0], sizes = [2, 32], strides = [1, 1]} : vector<2x128xf32> to vector<2x32xf32>
    %347 = arith.mulf %346, %343 : vector<2x32xf32>
    %348 = arith.addf %345, %347 : vector<2x32xf32>
    %349 = vector.extract_strided_slice %341 {offsets = [0, 96], sizes = [2, 32], strides = [1, 1]} : vector<2x128xf32> to vector<2x32xf32>
    %350 = math.tanh %348 : vector<2x32xf32>
    %351 = arith.mulf %349, %350 : vector<2x32xf32>
    %352 = tpu.concatenate %351, %312 in 1 : vector<2x32xf32>, vector<2x32xf32> -> vector<2x64xf32>
    %cst_129 = arith.constant dense<0.000000e+00> : vector<2x128xf32>
    %353 = tpu.matmul %352, %94, %cst_129 {dimension_numbers = #tpu.dot_dimension_numbers<[1], [0], [0], [1], [0, 0, 1, 1], [], []>} : vector<2x64xf32>, vector<64x128xf32>, vector<2x128xf32> -> vector<2x128xf32>
    %354 = vector.broadcast %97 : vector<1x128xf32> to vector<2x128xf32>
    %355 = arith.addf %353, %354 : vector<2x128xf32>
    %356 = arith.negf %355 : vector<2x128xf32>
    %357 = math.exp %356 : vector<2x128xf32>
    %cst_130 = arith.constant 1.000000e+00 : f32
    %358 = vector.broadcast %cst_130 : f32 to vector<2x128xf32>
    %359 = arith.addf %358, %357 : vector<2x128xf32>
    %360 = arith.divf %358, %359 : vector<2x128xf32>
    %361 = vector.extract_strided_slice %355 {offsets = [0, 64], sizes = [2, 32], strides = [1, 1]} : vector<2x128xf32> to vector<2x32xf32>
    %362 = math.tanh %361 : vector<2x32xf32>
    %363 = vector.extract_strided_slice %360 {offsets = [0, 32], sizes = [2, 32], strides = [1, 1]} : vector<2x128xf32> to vector<2x32xf32>
    %364 = arith.mulf %363, %309 : vector<2x32xf32>
    %365 = vector.extract_strided_slice %360 {offsets = [0, 0], sizes = [2, 32], strides = [1, 1]} : vector<2x128xf32> to vector<2x32xf32>
    %366 = arith.mulf %365, %362 : vector<2x32xf32>
    %367 = arith.addf %364, %366 : vector<2x32xf32>
    %368 = vector.extract_strided_slice %360 {offsets = [0, 96], sizes = [2, 32], strides = [1, 1]} : vector<2x128xf32> to vector<2x32xf32>
    %369 = math.tanh %367 : vector<2x32xf32>
    %370 = arith.mulf %368, %369 : vector<2x32xf32>
    %371 = tpu.concatenate %370, %331 in 1 : vector<2x32xf32>, vector<2x32xf32> -> vector<2x64xf32>
    %cst_131 = arith.constant dense<0.000000e+00> : vector<2x128xf32>
    %372 = tpu.matmul %371, %96, %cst_131 {dimension_numbers = #tpu.dot_dimension_numbers<[1], [0], [0], [1], [0, 0, 1, 1], [], []>} : vector<2x64xf32>, vector<64x128xf32>, vector<2x128xf32> -> vector<2x128xf32>
    %373 = vector.broadcast %98 : vector<1x128xf32> to vector<2x128xf32>
    %374 = arith.addf %372, %373 : vector<2x128xf32>
    %375 = arith.negf %374 : vector<2x128xf32>
    %376 = math.exp %375 : vector<2x128xf32>
    %cst_132 = arith.constant 1.000000e+00 : f32
    %377 = vector.broadcast %cst_132 : f32 to vector<2x128xf32>
    %378 = arith.addf %377, %376 : vector<2x128xf32>
    %379 = arith.divf %377, %378 : vector<2x128xf32>
    %380 = vector.extract_strided_slice %374 {offsets = [0, 64], sizes = [2, 32], strides = [1, 1]} : vector<2x128xf32> to vector<2x32xf32>
    %381 = math.tanh %380 : vector<2x32xf32>
    %382 = vector.extract_strided_slice %379 {offsets = [0, 32], sizes = [2, 32], strides = [1, 1]} : vector<2x128xf32> to vector<2x32xf32>
    %383 = arith.mulf %382, %328 : vector<2x32xf32>
    %384 = vector.extract_strided_slice %379 {offsets = [0, 0], sizes = [2, 32], strides = [1, 1]} : vector<2x128xf32> to vector<2x32xf32>
    %385 = arith.mulf %384, %381 : vector<2x32xf32>
    %386 = arith.addf %383, %385 : vector<2x32xf32>
    %387 = vector.extract_strided_slice %379 {offsets = [0, 96], sizes = [2, 32], strides = [1, 1]} : vector<2x128xf32> to vector<2x32xf32>
    %388 = math.tanh %386 : vector<2x32xf32>
    %389 = arith.mulf %387, %388 : vector<2x32xf32>
    %c5_i32 = arith.constant 5 : i32
    %390 = arith.index_cast %c5_i32 : i32 to index
    %c0_133 = arith.constant 0 : index
    %c0_134 = arith.constant 0 : index
    %391 = vector.load %arg19[%390, %c0_133, %c0_134] : memref<8x2x128xf32, #tpu.memory_space<vmem>>, vector<1x2x128xf32>
    %392 = vector.shape_cast %391 : vector<1x2x128xf32> to vector<2x128xf32>
    %cst_135 = arith.constant dense<0.000000e+00> : vector<2x128xf32>
    %393 = tpu.matmul %351, %92, %cst_135 {dimension_numbers = #tpu.dot_dimension_numbers<[1], [0], [0], [1], [0, 0, 1, 1], [], []>} : vector<2x32xf32>, vector<32x128xf32>, vector<2x128xf32> -> vector<2x128xf32>
    %394 = arith.addf %392, %393 : vector<2x128xf32>
    %395 = arith.negf %394 : vector<2x128xf32>
    %396 = math.exp %395 : vector<2x128xf32>
    %cst_136 = arith.constant 1.000000e+00 : f32
    %397 = vector.broadcast %cst_136 : f32 to vector<2x128xf32>
    %398 = arith.addf %397, %396 : vector<2x128xf32>
    %399 = arith.divf %397, %398 : vector<2x128xf32>
    %400 = vector.extract_strided_slice %394 {offsets = [0, 64], sizes = [2, 32], strides = [1, 1]} : vector<2x128xf32> to vector<2x32xf32>
    %401 = math.tanh %400 : vector<2x32xf32>
    %402 = vector.extract_strided_slice %399 {offsets = [0, 32], sizes = [2, 32], strides = [1, 1]} : vector<2x128xf32> to vector<2x32xf32>
    %403 = arith.mulf %402, %348 : vector<2x32xf32>
    %404 = vector.extract_strided_slice %399 {offsets = [0, 0], sizes = [2, 32], strides = [1, 1]} : vector<2x128xf32> to vector<2x32xf32>
    %405 = arith.mulf %404, %401 : vector<2x32xf32>
    %406 = arith.addf %403, %405 : vector<2x32xf32>
    %407 = vector.extract_strided_slice %399 {offsets = [0, 96], sizes = [2, 32], strides = [1, 1]} : vector<2x128xf32> to vector<2x32xf32>
    %408 = math.tanh %406 : vector<2x32xf32>
    %409 = arith.mulf %407, %408 : vector<2x32xf32>
    %410 = tpu.concatenate %409, %370 in 1 : vector<2x32xf32>, vector<2x32xf32> -> vector<2x64xf32>
    %cst_137 = arith.constant dense<0.000000e+00> : vector<2x128xf32>
    %411 = tpu.matmul %410, %94, %cst_137 {dimension_numbers = #tpu.dot_dimension_numbers<[1], [0], [0], [1], [0, 0, 1, 1], [], []>} : vector<2x64xf32>, vector<64x128xf32>, vector<2x128xf32> -> vector<2x128xf32>
    %412 = vector.broadcast %97 : vector<1x128xf32> to vector<2x128xf32>
    %413 = arith.addf %411, %412 : vector<2x128xf32>
    %414 = arith.negf %413 : vector<2x128xf32>
    %415 = math.exp %414 : vector<2x128xf32>
    %cst_138 = arith.constant 1.000000e+00 : f32
    %416 = vector.broadcast %cst_138 : f32 to vector<2x128xf32>
    %417 = arith.addf %416, %415 : vector<2x128xf32>
    %418 = arith.divf %416, %417 : vector<2x128xf32>
    %419 = vector.extract_strided_slice %413 {offsets = [0, 64], sizes = [2, 32], strides = [1, 1]} : vector<2x128xf32> to vector<2x32xf32>
    %420 = math.tanh %419 : vector<2x32xf32>
    %421 = vector.extract_strided_slice %418 {offsets = [0, 32], sizes = [2, 32], strides = [1, 1]} : vector<2x128xf32> to vector<2x32xf32>
    %422 = arith.mulf %421, %367 : vector<2x32xf32>
    %423 = vector.extract_strided_slice %418 {offsets = [0, 0], sizes = [2, 32], strides = [1, 1]} : vector<2x128xf32> to vector<2x32xf32>
    %424 = arith.mulf %423, %420 : vector<2x32xf32>
    %425 = arith.addf %422, %424 : vector<2x32xf32>
    %426 = vector.extract_strided_slice %418 {offsets = [0, 96], sizes = [2, 32], strides = [1, 1]} : vector<2x128xf32> to vector<2x32xf32>
    %427 = math.tanh %425 : vector<2x32xf32>
    %428 = arith.mulf %426, %427 : vector<2x32xf32>
    %429 = tpu.concatenate %428, %389 in 1 : vector<2x32xf32>, vector<2x32xf32> -> vector<2x64xf32>
    %cst_139 = arith.constant dense<0.000000e+00> : vector<2x128xf32>
    %430 = tpu.matmul %429, %96, %cst_139 {dimension_numbers = #tpu.dot_dimension_numbers<[1], [0], [0], [1], [0, 0, 1, 1], [], []>} : vector<2x64xf32>, vector<64x128xf32>, vector<2x128xf32> -> vector<2x128xf32>
    %431 = vector.broadcast %98 : vector<1x128xf32> to vector<2x128xf32>
    %432 = arith.addf %430, %431 : vector<2x128xf32>
    %433 = arith.negf %432 : vector<2x128xf32>
    %434 = math.exp %433 : vector<2x128xf32>
    %cst_140 = arith.constant 1.000000e+00 : f32
    %435 = vector.broadcast %cst_140 : f32 to vector<2x128xf32>
    %436 = arith.addf %435, %434 : vector<2x128xf32>
    %437 = arith.divf %435, %436 : vector<2x128xf32>
    %438 = vector.extract_strided_slice %432 {offsets = [0, 64], sizes = [2, 32], strides = [1, 1]} : vector<2x128xf32> to vector<2x32xf32>
    %439 = math.tanh %438 : vector<2x32xf32>
    %440 = vector.extract_strided_slice %437 {offsets = [0, 32], sizes = [2, 32], strides = [1, 1]} : vector<2x128xf32> to vector<2x32xf32>
    %441 = arith.mulf %440, %386 : vector<2x32xf32>
    %442 = vector.extract_strided_slice %437 {offsets = [0, 0], sizes = [2, 32], strides = [1, 1]} : vector<2x128xf32> to vector<2x32xf32>
    %443 = arith.mulf %442, %439 : vector<2x32xf32>
    %444 = arith.addf %441, %443 : vector<2x32xf32>
    %445 = vector.extract_strided_slice %437 {offsets = [0, 96], sizes = [2, 32], strides = [1, 1]} : vector<2x128xf32> to vector<2x32xf32>
    %446 = math.tanh %444 : vector<2x32xf32>
    %447 = arith.mulf %445, %446 : vector<2x32xf32>
    %c6_i32 = arith.constant 6 : i32
    %448 = arith.index_cast %c6_i32 : i32 to index
    %c0_141 = arith.constant 0 : index
    %c0_142 = arith.constant 0 : index
    %449 = vector.load %arg19[%448, %c0_141, %c0_142] : memref<8x2x128xf32, #tpu.memory_space<vmem>>, vector<1x2x128xf32>
    %450 = vector.shape_cast %449 : vector<1x2x128xf32> to vector<2x128xf32>
    %cst_143 = arith.constant dense<0.000000e+00> : vector<2x128xf32>
    %451 = tpu.matmul %409, %92, %cst_143 {dimension_numbers = #tpu.dot_dimension_numbers<[1], [0], [0], [1], [0, 0, 1, 1], [], []>} : vector<2x32xf32>, vector<32x128xf32>, vector<2x128xf32> -> vector<2x128xf32>
    %452 = arith.addf %450, %451 : vector<2x128xf32>
    %453 = arith.negf %452 : vector<2x128xf32>
    %454 = math.exp %453 : vector<2x128xf32>
    %cst_144 = arith.constant 1.000000e+00 : f32
    %455 = vector.broadcast %cst_144 : f32 to vector<2x128xf32>
    %456 = arith.addf %455, %454 : vector<2x128xf32>
    %457 = arith.divf %455, %456 : vector<2x128xf32>
    %458 = vector.extract_strided_slice %452 {offsets = [0, 64], sizes = [2, 32], strides = [1, 1]} : vector<2x128xf32> to vector<2x32xf32>
    %459 = math.tanh %458 : vector<2x32xf32>
    %460 = vector.extract_strided_slice %457 {offsets = [0, 32], sizes = [2, 32], strides = [1, 1]} : vector<2x128xf32> to vector<2x32xf32>
    %461 = arith.mulf %460, %406 : vector<2x32xf32>
    %462 = vector.extract_strided_slice %457 {offsets = [0, 0], sizes = [2, 32], strides = [1, 1]} : vector<2x128xf32> to vector<2x32xf32>
    %463 = arith.mulf %462, %459 : vector<2x32xf32>
    %464 = arith.addf %461, %463 : vector<2x32xf32>
    %465 = vector.extract_strided_slice %457 {offsets = [0, 96], sizes = [2, 32], strides = [1, 1]} : vector<2x128xf32> to vector<2x32xf32>
    %466 = math.tanh %464 : vector<2x32xf32>
    %467 = arith.mulf %465, %466 : vector<2x32xf32>
    %468 = tpu.concatenate %467, %428 in 1 : vector<2x32xf32>, vector<2x32xf32> -> vector<2x64xf32>
    %cst_145 = arith.constant dense<0.000000e+00> : vector<2x128xf32>
    %469 = tpu.matmul %468, %94, %cst_145 {dimension_numbers = #tpu.dot_dimension_numbers<[1], [0], [0], [1], [0, 0, 1, 1], [], []>} : vector<2x64xf32>, vector<64x128xf32>, vector<2x128xf32> -> vector<2x128xf32>
    %470 = vector.broadcast %97 : vector<1x128xf32> to vector<2x128xf32>
    %471 = arith.addf %469, %470 : vector<2x128xf32>
    %472 = arith.negf %471 : vector<2x128xf32>
    %473 = math.exp %472 : vector<2x128xf32>
    %cst_146 = arith.constant 1.000000e+00 : f32
    %474 = vector.broadcast %cst_146 : f32 to vector<2x128xf32>
    %475 = arith.addf %474, %473 : vector<2x128xf32>
    %476 = arith.divf %474, %475 : vector<2x128xf32>
    %477 = vector.extract_strided_slice %471 {offsets = [0, 64], sizes = [2, 32], strides = [1, 1]} : vector<2x128xf32> to vector<2x32xf32>
    %478 = math.tanh %477 : vector<2x32xf32>
    %479 = vector.extract_strided_slice %476 {offsets = [0, 32], sizes = [2, 32], strides = [1, 1]} : vector<2x128xf32> to vector<2x32xf32>
    %480 = arith.mulf %479, %425 : vector<2x32xf32>
    %481 = vector.extract_strided_slice %476 {offsets = [0, 0], sizes = [2, 32], strides = [1, 1]} : vector<2x128xf32> to vector<2x32xf32>
    %482 = arith.mulf %481, %478 : vector<2x32xf32>
    %483 = arith.addf %480, %482 : vector<2x32xf32>
    %484 = vector.extract_strided_slice %476 {offsets = [0, 96], sizes = [2, 32], strides = [1, 1]} : vector<2x128xf32> to vector<2x32xf32>
    %485 = math.tanh %483 : vector<2x32xf32>
    %486 = arith.mulf %484, %485 : vector<2x32xf32>
    %487 = tpu.concatenate %486, %447 in 1 : vector<2x32xf32>, vector<2x32xf32> -> vector<2x64xf32>
    %cst_147 = arith.constant dense<0.000000e+00> : vector<2x128xf32>
    %488 = tpu.matmul %487, %96, %cst_147 {dimension_numbers = #tpu.dot_dimension_numbers<[1], [0], [0], [1], [0, 0, 1, 1], [], []>} : vector<2x64xf32>, vector<64x128xf32>, vector<2x128xf32> -> vector<2x128xf32>
    %489 = vector.broadcast %98 : vector<1x128xf32> to vector<2x128xf32>
    %490 = arith.addf %488, %489 : vector<2x128xf32>
    %491 = arith.negf %490 : vector<2x128xf32>
    %492 = math.exp %491 : vector<2x128xf32>
    %cst_148 = arith.constant 1.000000e+00 : f32
    %493 = vector.broadcast %cst_148 : f32 to vector<2x128xf32>
    %494 = arith.addf %493, %492 : vector<2x128xf32>
    %495 = arith.divf %493, %494 : vector<2x128xf32>
    %496 = vector.extract_strided_slice %490 {offsets = [0, 64], sizes = [2, 32], strides = [1, 1]} : vector<2x128xf32> to vector<2x32xf32>
    %497 = math.tanh %496 : vector<2x32xf32>
    %498 = vector.extract_strided_slice %495 {offsets = [0, 32], sizes = [2, 32], strides = [1, 1]} : vector<2x128xf32> to vector<2x32xf32>
    %499 = arith.mulf %498, %444 : vector<2x32xf32>
    %500 = vector.extract_strided_slice %495 {offsets = [0, 0], sizes = [2, 32], strides = [1, 1]} : vector<2x128xf32> to vector<2x32xf32>
    %501 = arith.mulf %500, %497 : vector<2x32xf32>
    %502 = arith.addf %499, %501 : vector<2x32xf32>
    %503 = vector.extract_strided_slice %495 {offsets = [0, 96], sizes = [2, 32], strides = [1, 1]} : vector<2x128xf32> to vector<2x32xf32>
    %504 = math.tanh %502 : vector<2x32xf32>
    %505 = arith.mulf %503, %504 : vector<2x32xf32>
    %c7_i32 = arith.constant 7 : i32
    %506 = arith.index_cast %c7_i32 : i32 to index
    %c0_149 = arith.constant 0 : index
    %c0_150 = arith.constant 0 : index
    %507 = vector.load %arg19[%506, %c0_149, %c0_150] : memref<8x2x128xf32, #tpu.memory_space<vmem>>, vector<1x2x128xf32>
    %508 = vector.shape_cast %507 : vector<1x2x128xf32> to vector<2x128xf32>
    %cst_151 = arith.constant dense<0.000000e+00> : vector<2x128xf32>
    %509 = tpu.matmul %467, %92, %cst_151 {dimension_numbers = #tpu.dot_dimension_numbers<[1], [0], [0], [1], [0, 0, 1, 1], [], []>} : vector<2x32xf32>, vector<32x128xf32>, vector<2x128xf32> -> vector<2x128xf32>
    %510 = arith.addf %508, %509 : vector<2x128xf32>
    %511 = arith.negf %510 : vector<2x128xf32>
    %512 = math.exp %511 : vector<2x128xf32>
    %cst_152 = arith.constant 1.000000e+00 : f32
    %513 = vector.broadcast %cst_152 : f32 to vector<2x128xf32>
    %514 = arith.addf %513, %512 : vector<2x128xf32>
    %515 = arith.divf %513, %514 : vector<2x128xf32>
    %516 = vector.extract_strided_slice %510 {offsets = [0, 64], sizes = [2, 32], strides = [1, 1]} : vector<2x128xf32> to vector<2x32xf32>
    %517 = math.tanh %516 : vector<2x32xf32>
    %518 = vector.extract_strided_slice %515 {offsets = [0, 32], sizes = [2, 32], strides = [1, 1]} : vector<2x128xf32> to vector<2x32xf32>
    %519 = arith.mulf %518, %464 : vector<2x32xf32>
    %520 = vector.extract_strided_slice %515 {offsets = [0, 0], sizes = [2, 32], strides = [1, 1]} : vector<2x128xf32> to vector<2x32xf32>
    %521 = arith.mulf %520, %517 : vector<2x32xf32>
    %522 = arith.addf %519, %521 : vector<2x32xf32>
    %523 = vector.extract_strided_slice %515 {offsets = [0, 96], sizes = [2, 32], strides = [1, 1]} : vector<2x128xf32> to vector<2x32xf32>
    %524 = math.tanh %522 : vector<2x32xf32>
    %525 = arith.mulf %523, %524 : vector<2x32xf32>
    %526 = tpu.concatenate %525, %486 in 1 : vector<2x32xf32>, vector<2x32xf32> -> vector<2x64xf32>
    %cst_153 = arith.constant dense<0.000000e+00> : vector<2x128xf32>
    %527 = tpu.matmul %526, %94, %cst_153 {dimension_numbers = #tpu.dot_dimension_numbers<[1], [0], [0], [1], [0, 0, 1, 1], [], []>} : vector<2x64xf32>, vector<64x128xf32>, vector<2x128xf32> -> vector<2x128xf32>
    %528 = vector.broadcast %97 : vector<1x128xf32> to vector<2x128xf32>
    %529 = arith.addf %527, %528 : vector<2x128xf32>
    %530 = arith.negf %529 : vector<2x128xf32>
    %531 = math.exp %530 : vector<2x128xf32>
    %cst_154 = arith.constant 1.000000e+00 : f32
    %532 = vector.broadcast %cst_154 : f32 to vector<2x128xf32>
    %533 = arith.addf %532, %531 : vector<2x128xf32>
    %534 = arith.divf %532, %533 : vector<2x128xf32>
    %535 = vector.extract_strided_slice %529 {offsets = [0, 64], sizes = [2, 32], strides = [1, 1]} : vector<2x128xf32> to vector<2x32xf32>
    %536 = math.tanh %535 : vector<2x32xf32>
    %537 = vector.extract_strided_slice %534 {offsets = [0, 32], sizes = [2, 32], strides = [1, 1]} : vector<2x128xf32> to vector<2x32xf32>
    %538 = arith.mulf %537, %483 : vector<2x32xf32>
    %539 = vector.extract_strided_slice %534 {offsets = [0, 0], sizes = [2, 32], strides = [1, 1]} : vector<2x128xf32> to vector<2x32xf32>
    %540 = arith.mulf %539, %536 : vector<2x32xf32>
    %541 = arith.addf %538, %540 : vector<2x32xf32>
    %542 = vector.extract_strided_slice %534 {offsets = [0, 96], sizes = [2, 32], strides = [1, 1]} : vector<2x128xf32> to vector<2x32xf32>
    %543 = math.tanh %541 : vector<2x32xf32>
    %544 = arith.mulf %542, %543 : vector<2x32xf32>
    %545 = tpu.concatenate %544, %505 in 1 : vector<2x32xf32>, vector<2x32xf32> -> vector<2x64xf32>
    %cst_155 = arith.constant dense<0.000000e+00> : vector<2x128xf32>
    %546 = tpu.matmul %545, %96, %cst_155 {dimension_numbers = #tpu.dot_dimension_numbers<[1], [0], [0], [1], [0, 0, 1, 1], [], []>} : vector<2x64xf32>, vector<64x128xf32>, vector<2x128xf32> -> vector<2x128xf32>
    %547 = vector.broadcast %98 : vector<1x128xf32> to vector<2x128xf32>
    %548 = arith.addf %546, %547 : vector<2x128xf32>
    %549 = arith.negf %548 : vector<2x128xf32>
    %550 = math.exp %549 : vector<2x128xf32>
    %cst_156 = arith.constant 1.000000e+00 : f32
    %551 = vector.broadcast %cst_156 : f32 to vector<2x128xf32>
    %552 = arith.addf %551, %550 : vector<2x128xf32>
    %553 = arith.divf %551, %552 : vector<2x128xf32>
    %554 = vector.extract_strided_slice %548 {offsets = [0, 64], sizes = [2, 32], strides = [1, 1]} : vector<2x128xf32> to vector<2x32xf32>
    %555 = math.tanh %554 : vector<2x32xf32>
    %556 = vector.extract_strided_slice %553 {offsets = [0, 32], sizes = [2, 32], strides = [1, 1]} : vector<2x128xf32> to vector<2x32xf32>
    %557 = arith.mulf %556, %502 : vector<2x32xf32>
    %558 = vector.extract_strided_slice %553 {offsets = [0, 0], sizes = [2, 32], strides = [1, 1]} : vector<2x128xf32> to vector<2x32xf32>
    %559 = arith.mulf %558, %555 : vector<2x32xf32>
    %560 = arith.addf %557, %559 : vector<2x32xf32>
    %561 = vector.extract_strided_slice %553 {offsets = [0, 96], sizes = [2, 32], strides = [1, 1]} : vector<2x128xf32> to vector<2x32xf32>
    %562 = math.tanh %560 : vector<2x32xf32>
    %563 = arith.mulf %561, %562 : vector<2x32xf32>
    %c8_i32 = arith.constant 8 : i32
    %c0_157 = arith.constant 0 : index
    %c0_158 = arith.constant 0 : index
    %564 = vector.load %arg12[%c0_157, %c0_158] : memref<32x128xf32, #tpu.memory_space<vmem>>, vector<32x128xf32>
    %c0_159 = arith.constant 0 : index
    %c0_160 = arith.constant 0 : index
    %c0_161 = arith.constant 0 : index
    %565 = vector.load %arg13[%c0_159, %c0_160, %c0_161] : memref<2x64x128xf32, #tpu.memory_space<vmem>>, vector<1x64x128xf32>
    %566 = vector.shape_cast %565 : vector<1x64x128xf32> to vector<64x128xf32>
    %c1_162 = arith.constant 1 : index
    %c0_163 = arith.constant 0 : index
    %c0_164 = arith.constant 0 : index
    %567 = vector.load %arg13[%c1_162, %c0_163, %c0_164] : memref<2x64x128xf32, #tpu.memory_space<vmem>>, vector<1x64x128xf32>
    %568 = vector.shape_cast %567 : vector<1x64x128xf32> to vector<64x128xf32>
    %c1_165 = arith.constant 1 : index
    %c0_166 = arith.constant 0 : index
    %569 = vector.load %arg14[%c1_165, %c0_166] : memref<3x128xf32, #tpu.memory_space<vmem>>, vector<1x128xf32>
    %c2_167 = arith.constant 2 : index
    %c0_168 = arith.constant 0 : index
    %570 = vector.load %arg14[%c2_167, %c0_168] : memref<3x128xf32, #tpu.memory_space<vmem>>, vector<1x128xf32>
    %c0_i32_169 = arith.constant 0 : i32
    %571 = arith.index_cast %c0_i32_169 : i32 to index
    %c0_170 = arith.constant 0 : index
    %c0_171 = arith.constant 0 : index
    %572 = vector.load %arg20[%571, %c0_170, %c0_171] : memref<8x2x128xf32, #tpu.memory_space<vmem>>, vector<1x2x128xf32>
    %573 = vector.shape_cast %572 : vector<1x2x128xf32> to vector<2x128xf32>
    %cst_172 = arith.constant dense<0.000000e+00> : vector<2x128xf32>
    %574 = tpu.matmul %525, %564, %cst_172 {dimension_numbers = #tpu.dot_dimension_numbers<[1], [0], [0], [1], [0, 0, 1, 1], [], []>} : vector<2x32xf32>, vector<32x128xf32>, vector<2x128xf32> -> vector<2x128xf32>
    %575 = arith.addf %573, %574 : vector<2x128xf32>
    %576 = arith.negf %575 : vector<2x128xf32>
    %577 = math.exp %576 : vector<2x128xf32>
    %cst_173 = arith.constant 1.000000e+00 : f32
    %578 = vector.broadcast %cst_173 : f32 to vector<2x128xf32>
    %579 = arith.addf %578, %577 : vector<2x128xf32>
    %580 = arith.divf %578, %579 : vector<2x128xf32>
    %581 = vector.extract_strided_slice %575 {offsets = [0, 64], sizes = [2, 32], strides = [1, 1]} : vector<2x128xf32> to vector<2x32xf32>
    %582 = math.tanh %581 : vector<2x32xf32>
    %583 = vector.extract_strided_slice %580 {offsets = [0, 32], sizes = [2, 32], strides = [1, 1]} : vector<2x128xf32> to vector<2x32xf32>
    %584 = arith.mulf %583, %522 : vector<2x32xf32>
    %585 = vector.extract_strided_slice %580 {offsets = [0, 0], sizes = [2, 32], strides = [1, 1]} : vector<2x128xf32> to vector<2x32xf32>
    %586 = arith.mulf %585, %582 : vector<2x32xf32>
    %587 = arith.addf %584, %586 : vector<2x32xf32>
    %588 = vector.extract_strided_slice %580 {offsets = [0, 96], sizes = [2, 32], strides = [1, 1]} : vector<2x128xf32> to vector<2x32xf32>
    %589 = math.tanh %587 : vector<2x32xf32>
    %590 = arith.mulf %588, %589 : vector<2x32xf32>
    %591 = tpu.concatenate %590, %544 in 1 : vector<2x32xf32>, vector<2x32xf32> -> vector<2x64xf32>
    %cst_174 = arith.constant dense<0.000000e+00> : vector<2x128xf32>
    %592 = tpu.matmul %591, %566, %cst_174 {dimension_numbers = #tpu.dot_dimension_numbers<[1], [0], [0], [1], [0, 0, 1, 1], [], []>} : vector<2x64xf32>, vector<64x128xf32>, vector<2x128xf32> -> vector<2x128xf32>
    %593 = vector.broadcast %569 : vector<1x128xf32> to vector<2x128xf32>
    %594 = arith.addf %592, %593 : vector<2x128xf32>
    %595 = arith.negf %594 : vector<2x128xf32>
    %596 = math.exp %595 : vector<2x128xf32>
    %cst_175 = arith.constant 1.000000e+00 : f32
    %597 = vector.broadcast %cst_175 : f32 to vector<2x128xf32>
    %598 = arith.addf %597, %596 : vector<2x128xf32>
    %599 = arith.divf %597, %598 : vector<2x128xf32>
    %600 = vector.extract_strided_slice %594 {offsets = [0, 64], sizes = [2, 32], strides = [1, 1]} : vector<2x128xf32> to vector<2x32xf32>
    %601 = math.tanh %600 : vector<2x32xf32>
    %602 = vector.extract_strided_slice %599 {offsets = [0, 32], sizes = [2, 32], strides = [1, 1]} : vector<2x128xf32> to vector<2x32xf32>
    %603 = arith.mulf %602, %541 : vector<2x32xf32>
    %604 = vector.extract_strided_slice %599 {offsets = [0, 0], sizes = [2, 32], strides = [1, 1]} : vector<2x128xf32> to vector<2x32xf32>
    %605 = arith.mulf %604, %601 : vector<2x32xf32>
    %606 = arith.addf %603, %605 : vector<2x32xf32>
    %607 = vector.extract_strided_slice %599 {offsets = [0, 96], sizes = [2, 32], strides = [1, 1]} : vector<2x128xf32> to vector<2x32xf32>
    %608 = math.tanh %606 : vector<2x32xf32>
    %609 = arith.mulf %607, %608 : vector<2x32xf32>
    %610 = tpu.concatenate %609, %563 in 1 : vector<2x32xf32>, vector<2x32xf32> -> vector<2x64xf32>
    %cst_176 = arith.constant dense<0.000000e+00> : vector<2x128xf32>
    %611 = tpu.matmul %610, %568, %cst_176 {dimension_numbers = #tpu.dot_dimension_numbers<[1], [0], [0], [1], [0, 0, 1, 1], [], []>} : vector<2x64xf32>, vector<64x128xf32>, vector<2x128xf32> -> vector<2x128xf32>
    %612 = vector.broadcast %570 : vector<1x128xf32> to vector<2x128xf32>
    %613 = arith.addf %611, %612 : vector<2x128xf32>
    %614 = arith.negf %613 : vector<2x128xf32>
    %615 = math.exp %614 : vector<2x128xf32>
    %cst_177 = arith.constant 1.000000e+00 : f32
    %616 = vector.broadcast %cst_177 : f32 to vector<2x128xf32>
    %617 = arith.addf %616, %615 : vector<2x128xf32>
    %618 = arith.divf %616, %617 : vector<2x128xf32>
    %619 = vector.extract_strided_slice %613 {offsets = [0, 64], sizes = [2, 32], strides = [1, 1]} : vector<2x128xf32> to vector<2x32xf32>
    %620 = math.tanh %619 : vector<2x32xf32>
    %621 = vector.extract_strided_slice %618 {offsets = [0, 32], sizes = [2, 32], strides = [1, 1]} : vector<2x128xf32> to vector<2x32xf32>
    %622 = arith.mulf %621, %560 : vector<2x32xf32>
    %623 = vector.extract_strided_slice %618 {offsets = [0, 0], sizes = [2, 32], strides = [1, 1]} : vector<2x128xf32> to vector<2x32xf32>
    %624 = arith.mulf %623, %620 : vector<2x32xf32>
    %625 = arith.addf %622, %624 : vector<2x32xf32>
    %626 = vector.extract_strided_slice %618 {offsets = [0, 96], sizes = [2, 32], strides = [1, 1]} : vector<2x128xf32> to vector<2x32xf32>
    %627 = math.tanh %625 : vector<2x32xf32>
    %628 = arith.mulf %626, %627 : vector<2x32xf32>
    %629 = arith.index_cast %c0_i32_169 : i32 to index
    %c0_178 = arith.constant 0 : index
    %c0_179 = arith.constant 0 : index
    %630 = vector.load %arg21[%629, %c0_178, %c0_179] : memref<8x2x32xf32, #tpu.memory_space<vmem>>, vector<1x2x32xf32>
    %631 = vector.shape_cast %630 : vector<1x2x32xf32> to vector<2x32xf32>
    %632 = vector.shape_cast %628 : vector<2x32xf32> to vector<1x2x32xf32>
    tpu.vector_store %arg21[%629, %c0_178, %c0_179], %632 {strides = array<i32>} : memref<8x2x32xf32, #tpu.memory_space<vmem>>, vector<1x2x32xf32>,
    %c1_i32_180 = arith.constant 1 : i32
    %633 = arith.index_cast %c1_i32_180 : i32 to index
    %c0_181 = arith.constant 0 : index
    %c0_182 = arith.constant 0 : index
    %634 = vector.load %arg20[%633, %c0_181, %c0_182] : memref<8x2x128xf32, #tpu.memory_space<vmem>>, vector<1x2x128xf32>
    %635 = vector.shape_cast %634 : vector<1x2x128xf32> to vector<2x128xf32>
    %cst_183 = arith.constant dense<0.000000e+00> : vector<2x128xf32>
    %636 = tpu.matmul %590, %564, %cst_183 {dimension_numbers = #tpu.dot_dimension_numbers<[1], [0], [0], [1], [0, 0, 1, 1], [], []>} : vector<2x32xf32>, vector<32x128xf32>, vector<2x128xf32> -> vector<2x128xf32>
    %637 = arith.addf %635, %636 : vector<2x128xf32>
    %638 = arith.negf %637 : vector<2x128xf32>
    %639 = math.exp %638 : vector<2x128xf32>
    %cst_184 = arith.constant 1.000000e+00 : f32
    %640 = vector.broadcast %cst_184 : f32 to vector<2x128xf32>
    %641 = arith.addf %640, %639 : vector<2x128xf32>
    %642 = arith.divf %640, %641 : vector<2x128xf32>
    %643 = vector.extract_strided_slice %637 {offsets = [0, 64], sizes = [2, 32], strides = [1, 1]} : vector<2x128xf32> to vector<2x32xf32>
    %644 = math.tanh %643 : vector<2x32xf32>
    %645 = vector.extract_strided_slice %642 {offsets = [0, 32], sizes = [2, 32], strides = [1, 1]} : vector<2x128xf32> to vector<2x32xf32>
    %646 = arith.mulf %645, %587 : vector<2x32xf32>
    %647 = vector.extract_strided_slice %642 {offsets = [0, 0], sizes = [2, 32], strides = [1, 1]} : vector<2x128xf32> to vector<2x32xf32>
    %648 = arith.mulf %647, %644 : vector<2x32xf32>
    %649 = arith.addf %646, %648 : vector<2x32xf32>
    %650 = vector.extract_strided_slice %642 {offsets = [0, 96], sizes = [2, 32], strides = [1, 1]} : vector<2x128xf32> to vector<2x32xf32>
    %651 = math.tanh %649 : vector<2x32xf32>
    %652 = arith.mulf %650, %651 : vector<2x32xf32>
    %653 = tpu.concatenate %652, %609 in 1 : vector<2x32xf32>, vector<2x32xf32> -> vector<2x64xf32>
    %cst_185 = arith.constant dense<0.000000e+00> : vector<2x128xf32>
    %654 = tpu.matmul %653, %566, %cst_185 {dimension_numbers = #tpu.dot_dimension_numbers<[1], [0], [0], [1], [0, 0, 1, 1], [], []>} : vector<2x64xf32>, vector<64x128xf32>, vector<2x128xf32> -> vector<2x128xf32>
    %655 = vector.broadcast %569 : vector<1x128xf32> to vector<2x128xf32>
    %656 = arith.addf %654, %655 : vector<2x128xf32>
    %657 = arith.negf %656 : vector<2x128xf32>
    %658 = math.exp %657 : vector<2x128xf32>
    %cst_186 = arith.constant 1.000000e+00 : f32
    %659 = vector.broadcast %cst_186 : f32 to vector<2x128xf32>
    %660 = arith.addf %659, %658 : vector<2x128xf32>
    %661 = arith.divf %659, %660 : vector<2x128xf32>
    %662 = vector.extract_strided_slice %656 {offsets = [0, 64], sizes = [2, 32], strides = [1, 1]} : vector<2x128xf32> to vector<2x32xf32>
    %663 = math.tanh %662 : vector<2x32xf32>
    %664 = vector.extract_strided_slice %661 {offsets = [0, 32], sizes = [2, 32], strides = [1, 1]} : vector<2x128xf32> to vector<2x32xf32>
    %665 = arith.mulf %664, %606 : vector<2x32xf32>
    %666 = vector.extract_strided_slice %661 {offsets = [0, 0], sizes = [2, 32], strides = [1, 1]} : vector<2x128xf32> to vector<2x32xf32>
    %667 = arith.mulf %666, %663 : vector<2x32xf32>
    %668 = arith.addf %665, %667 : vector<2x32xf32>
    %669 = vector.extract_strided_slice %661 {offsets = [0, 96], sizes = [2, 32], strides = [1, 1]} : vector<2x128xf32> to vector<2x32xf32>
    %670 = math.tanh %668 : vector<2x32xf32>
    %671 = arith.mulf %669, %670 : vector<2x32xf32>
    %672 = tpu.concatenate %671, %628 in 1 : vector<2x32xf32>, vector<2x32xf32> -> vector<2x64xf32>
    %cst_187 = arith.constant dense<0.000000e+00> : vector<2x128xf32>
    %673 = tpu.matmul %672, %568, %cst_187 {dimension_numbers = #tpu.dot_dimension_numbers<[1], [0], [0], [1], [0, 0, 1, 1], [], []>} : vector<2x64xf32>, vector<64x128xf32>, vector<2x128xf32> -> vector<2x128xf32>
    %674 = vector.broadcast %570 : vector<1x128xf32> to vector<2x128xf32>
    %675 = arith.addf %673, %674 : vector<2x128xf32>
    %676 = arith.negf %675 : vector<2x128xf32>
    %677 = math.exp %676 : vector<2x128xf32>
    %cst_188 = arith.constant 1.000000e+00 : f32
    %678 = vector.broadcast %cst_188 : f32 to vector<2x128xf32>
    %679 = arith.addf %678, %677 : vector<2x128xf32>
    %680 = arith.divf %678, %679 : vector<2x128xf32>
    %681 = vector.extract_strided_slice %675 {offsets = [0, 64], sizes = [2, 32], strides = [1, 1]} : vector<2x128xf32> to vector<2x32xf32>
    %682 = math.tanh %681 : vector<2x32xf32>
    %683 = vector.extract_strided_slice %680 {offsets = [0, 32], sizes = [2, 32], strides = [1, 1]} : vector<2x128xf32> to vector<2x32xf32>
    %684 = arith.mulf %683, %625 : vector<2x32xf32>
    %685 = vector.extract_strided_slice %680 {offsets = [0, 0], sizes = [2, 32], strides = [1, 1]} : vector<2x128xf32> to vector<2x32xf32>
    %686 = arith.mulf %685, %682 : vector<2x32xf32>
    %687 = arith.addf %684, %686 : vector<2x32xf32>
    %688 = vector.extract_strided_slice %680 {offsets = [0, 96], sizes = [2, 32], strides = [1, 1]} : vector<2x128xf32> to vector<2x32xf32>
    %689 = math.tanh %687 : vector<2x32xf32>
    %690 = arith.mulf %688, %689 : vector<2x32xf32>
    %691 = arith.index_cast %c1_i32_180 : i32 to index
    %c0_189 = arith.constant 0 : index
    %c0_190 = arith.constant 0 : index
    %692 = vector.load %arg21[%691, %c0_189, %c0_190] : memref<8x2x32xf32, #tpu.memory_space<vmem>>, vector<1x2x32xf32>
    %693 = vector.shape_cast %692 : vector<1x2x32xf32> to vector<2x32xf32>
    %694 = vector.shape_cast %690 : vector<2x32xf32> to vector<1x2x32xf32>
    tpu.vector_store %arg21[%691, %c0_189, %c0_190], %694 {strides = array<i32>} : memref<8x2x32xf32, #tpu.memory_space<vmem>>, vector<1x2x32xf32>,
    %c2_i32_191 = arith.constant 2 : i32
    %695 = arith.index_cast %c2_i32_191 : i32 to index
    %c0_192 = arith.constant 0 : index
    %c0_193 = arith.constant 0 : index
    %696 = vector.load %arg20[%695, %c0_192, %c0_193] : memref<8x2x128xf32, #tpu.memory_space<vmem>>, vector<1x2x128xf32>
    %697 = vector.shape_cast %696 : vector<1x2x128xf32> to vector<2x128xf32>
    %cst_194 = arith.constant dense<0.000000e+00> : vector<2x128xf32>
    %698 = tpu.matmul %652, %564, %cst_194 {dimension_numbers = #tpu.dot_dimension_numbers<[1], [0], [0], [1], [0, 0, 1, 1], [], []>} : vector<2x32xf32>, vector<32x128xf32>, vector<2x128xf32> -> vector<2x128xf32>
    %699 = arith.addf %697, %698 : vector<2x128xf32>
    %700 = arith.negf %699 : vector<2x128xf32>
    %701 = math.exp %700 : vector<2x128xf32>
    %cst_195 = arith.constant 1.000000e+00 : f32
    %702 = vector.broadcast %cst_195 : f32 to vector<2x128xf32>
    %703 = arith.addf %702, %701 : vector<2x128xf32>
    %704 = arith.divf %702, %703 : vector<2x128xf32>
    %705 = vector.extract_strided_slice %699 {offsets = [0, 64], sizes = [2, 32], strides = [1, 1]} : vector<2x128xf32> to vector<2x32xf32>
    %706 = math.tanh %705 : vector<2x32xf32>
    %707 = vector.extract_strided_slice %704 {offsets = [0, 32], sizes = [2, 32], strides = [1, 1]} : vector<2x128xf32> to vector<2x32xf32>
    %708 = arith.mulf %707, %649 : vector<2x32xf32>
    %709 = vector.extract_strided_slice %704 {offsets = [0, 0], sizes = [2, 32], strides = [1, 1]} : vector<2x128xf32> to vector<2x32xf32>
    %710 = arith.mulf %709, %706 : vector<2x32xf32>
    %711 = arith.addf %708, %710 : vector<2x32xf32>
    %712 = vector.extract_strided_slice %704 {offsets = [0, 96], sizes = [2, 32], strides = [1, 1]} : vector<2x128xf32> to vector<2x32xf32>
    %713 = math.tanh %711 : vector<2x32xf32>
    %714 = arith.mulf %712, %713 : vector<2x32xf32>
    %715 = tpu.concatenate %714, %671 in 1 : vector<2x32xf32>, vector<2x32xf32> -> vector<2x64xf32>
    %cst_196 = arith.constant dense<0.000000e+00> : vector<2x128xf32>
    %716 = tpu.matmul %715, %566, %cst_196 {dimension_numbers = #tpu.dot_dimension_numbers<[1], [0], [0], [1], [0, 0, 1, 1], [], []>} : vector<2x64xf32>, vector<64x128xf32>, vector<2x128xf32> -> vector<2x128xf32>
    %717 = vector.broadcast %569 : vector<1x128xf32> to vector<2x128xf32>
    %718 = arith.addf %716, %717 : vector<2x128xf32>
    %719 = arith.negf %718 : vector<2x128xf32>
    %720 = math.exp %719 : vector<2x128xf32>
    %cst_197 = arith.constant 1.000000e+00 : f32
    %721 = vector.broadcast %cst_197 : f32 to vector<2x128xf32>
    %722 = arith.addf %721, %720 : vector<2x128xf32>
    %723 = arith.divf %721, %722 : vector<2x128xf32>
    %724 = vector.extract_strided_slice %718 {offsets = [0, 64], sizes = [2, 32], strides = [1, 1]} : vector<2x128xf32> to vector<2x32xf32>
    %725 = math.tanh %724 : vector<2x32xf32>
    %726 = vector.extract_strided_slice %723 {offsets = [0, 32], sizes = [2, 32], strides = [1, 1]} : vector<2x128xf32> to vector<2x32xf32>
    %727 = arith.mulf %726, %668 : vector<2x32xf32>
    %728 = vector.extract_strided_slice %723 {offsets = [0, 0], sizes = [2, 32], strides = [1, 1]} : vector<2x128xf32> to vector<2x32xf32>
    %729 = arith.mulf %728, %725 : vector<2x32xf32>
    %730 = arith.addf %727, %729 : vector<2x32xf32>
    %731 = vector.extract_strided_slice %723 {offsets = [0, 96], sizes = [2, 32], strides = [1, 1]} : vector<2x128xf32> to vector<2x32xf32>
    %732 = math.tanh %730 : vector<2x32xf32>
    %733 = arith.mulf %731, %732 : vector<2x32xf32>
    %734 = tpu.concatenate %733, %690 in 1 : vector<2x32xf32>, vector<2x32xf32> -> vector<2x64xf32>
    %cst_198 = arith.constant dense<0.000000e+00> : vector<2x128xf32>
    %735 = tpu.matmul %734, %568, %cst_198 {dimension_numbers = #tpu.dot_dimension_numbers<[1], [0], [0], [1], [0, 0, 1, 1], [], []>} : vector<2x64xf32>, vector<64x128xf32>, vector<2x128xf32> -> vector<2x128xf32>
    %736 = vector.broadcast %570 : vector<1x128xf32> to vector<2x128xf32>
    %737 = arith.addf %735, %736 : vector<2x128xf32>
    %738 = arith.negf %737 : vector<2x128xf32>
    %739 = math.exp %738 : vector<2x128xf32>
    %cst_199 = arith.constant 1.000000e+00 : f32
    %740 = vector.broadcast %cst_199 : f32 to vector<2x128xf32>
    %741 = arith.addf %740, %739 : vector<2x128xf32>
    %742 = arith.divf %740, %741 : vector<2x128xf32>
    %743 = vector.extract_strided_slice %737 {offsets = [0, 64], sizes = [2, 32], strides = [1, 1]} : vector<2x128xf32> to vector<2x32xf32>
    %744 = math.tanh %743 : vector<2x32xf32>
    %745 = vector.extract_strided_slice %742 {offsets = [0, 32], sizes = [2, 32], strides = [1, 1]} : vector<2x128xf32> to vector<2x32xf32>
    %746 = arith.mulf %745, %687 : vector<2x32xf32>
    %747 = vector.extract_strided_slice %742 {offsets = [0, 0], sizes = [2, 32], strides = [1, 1]} : vector<2x128xf32> to vector<2x32xf32>
    %748 = arith.mulf %747, %744 : vector<2x32xf32>
    %749 = arith.addf %746, %748 : vector<2x32xf32>
    %750 = vector.extract_strided_slice %742 {offsets = [0, 96], sizes = [2, 32], strides = [1, 1]} : vector<2x128xf32> to vector<2x32xf32>
    %751 = math.tanh %749 : vector<2x32xf32>
    %752 = arith.mulf %750, %751 : vector<2x32xf32>
    %753 = arith.index_cast %c2_i32_191 : i32 to index
    %c0_200 = arith.constant 0 : index
    %c0_201 = arith.constant 0 : index
    %754 = vector.load %arg21[%753, %c0_200, %c0_201] : memref<8x2x32xf32, #tpu.memory_space<vmem>>, vector<1x2x32xf32>
    %755 = vector.shape_cast %754 : vector<1x2x32xf32> to vector<2x32xf32>
    %756 = vector.shape_cast %752 : vector<2x32xf32> to vector<1x2x32xf32>
    tpu.vector_store %arg21[%753, %c0_200, %c0_201], %756 {strides = array<i32>} : memref<8x2x32xf32, #tpu.memory_space<vmem>>, vector<1x2x32xf32>,
    %c3_i32_202 = arith.constant 3 : i32
    %757 = arith.index_cast %c3_i32_202 : i32 to index
    %c0_203 = arith.constant 0 : index
    %c0_204 = arith.constant 0 : index
    %758 = vector.load %arg20[%757, %c0_203, %c0_204] : memref<8x2x128xf32, #tpu.memory_space<vmem>>, vector<1x2x128xf32>
    %759 = vector.shape_cast %758 : vector<1x2x128xf32> to vector<2x128xf32>
    %cst_205 = arith.constant dense<0.000000e+00> : vector<2x128xf32>
    %760 = tpu.matmul %714, %564, %cst_205 {dimension_numbers = #tpu.dot_dimension_numbers<[1], [0], [0], [1], [0, 0, 1, 1], [], []>} : vector<2x32xf32>, vector<32x128xf32>, vector<2x128xf32> -> vector<2x128xf32>
    %761 = arith.addf %759, %760 : vector<2x128xf32>
    %762 = arith.negf %761 : vector<2x128xf32>
    %763 = math.exp %762 : vector<2x128xf32>
    %cst_206 = arith.constant 1.000000e+00 : f32
    %764 = vector.broadcast %cst_206 : f32 to vector<2x128xf32>
    %765 = arith.addf %764, %763 : vector<2x128xf32>
    %766 = arith.divf %764, %765 : vector<2x128xf32>
    %767 = vector.extract_strided_slice %761 {offsets = [0, 64], sizes = [2, 32], strides = [1, 1]} : vector<2x128xf32> to vector<2x32xf32>
    %768 = math.tanh %767 : vector<2x32xf32>
    %769 = vector.extract_strided_slice %766 {offsets = [0, 32], sizes = [2, 32], strides = [1, 1]} : vector<2x128xf32> to vector<2x32xf32>
    %770 = arith.mulf %769, %711 : vector<2x32xf32>
    %771 = vector.extract_strided_slice %766 {offsets = [0, 0], sizes = [2, 32], strides = [1, 1]} : vector<2x128xf32> to vector<2x32xf32>
    %772 = arith.mulf %771, %768 : vector<2x32xf32>
    %773 = arith.addf %770, %772 : vector<2x32xf32>
    %774 = vector.extract_strided_slice %766 {offsets = [0, 96], sizes = [2, 32], strides = [1, 1]} : vector<2x128xf32> to vector<2x32xf32>
    %775 = math.tanh %773 : vector<2x32xf32>
    %776 = arith.mulf %774, %775 : vector<2x32xf32>
    %777 = tpu.concatenate %776, %733 in 1 : vector<2x32xf32>, vector<2x32xf32> -> vector<2x64xf32>
    %cst_207 = arith.constant dense<0.000000e+00> : vector<2x128xf32>
    %778 = tpu.matmul %777, %566, %cst_207 {dimension_numbers = #tpu.dot_dimension_numbers<[1], [0], [0], [1], [0, 0, 1, 1], [], []>} : vector<2x64xf32>, vector<64x128xf32>, vector<2x128xf32> -> vector<2x128xf32>
    %779 = vector.broadcast %569 : vector<1x128xf32> to vector<2x128xf32>
    %780 = arith.addf %778, %779 : vector<2x128xf32>
    %781 = arith.negf %780 : vector<2x128xf32>
    %782 = math.exp %781 : vector<2x128xf32>
    %cst_208 = arith.constant 1.000000e+00 : f32
    %783 = vector.broadcast %cst_208 : f32 to vector<2x128xf32>
    %784 = arith.addf %783, %782 : vector<2x128xf32>
    %785 = arith.divf %783, %784 : vector<2x128xf32>
    %786 = vector.extract_strided_slice %780 {offsets = [0, 64], sizes = [2, 32], strides = [1, 1]} : vector<2x128xf32> to vector<2x32xf32>
    %787 = math.tanh %786 : vector<2x32xf32>
    %788 = vector.extract_strided_slice %785 {offsets = [0, 32], sizes = [2, 32], strides = [1, 1]} : vector<2x128xf32> to vector<2x32xf32>
    %789 = arith.mulf %788, %730 : vector<2x32xf32>
    %790 = vector.extract_strided_slice %785 {offsets = [0, 0], sizes = [2, 32], strides = [1, 1]} : vector<2x128xf32> to vector<2x32xf32>
    %791 = arith.mulf %790, %787 : vector<2x32xf32>
    %792 = arith.addf %789, %791 : vector<2x32xf32>
    %793 = vector.extract_strided_slice %785 {offsets = [0, 96], sizes = [2, 32], strides = [1, 1]} : vector<2x128xf32> to vector<2x32xf32>
    %794 = math.tanh %792 : vector<2x32xf32>
    %795 = arith.mulf %793, %794 : vector<2x32xf32>
    %796 = tpu.concatenate %795, %752 in 1 : vector<2x32xf32>, vector<2x32xf32> -> vector<2x64xf32>
    %cst_209 = arith.constant dense<0.000000e+00> : vector<2x128xf32>
    %797 = tpu.matmul %796, %568, %cst_209 {dimension_numbers = #tpu.dot_dimension_numbers<[1], [0], [0], [1], [0, 0, 1, 1], [], []>} : vector<2x64xf32>, vector<64x128xf32>, vector<2x128xf32> -> vector<2x128xf32>
    %798 = vector.broadcast %570 : vector<1x128xf32> to vector<2x128xf32>
    %799 = arith.addf %797, %798 : vector<2x128xf32>
    %800 = arith.negf %799 : vector<2x128xf32>
    %801 = math.exp %800 : vector<2x128xf32>
    %cst_210 = arith.constant 1.000000e+00 : f32
    %802 = vector.broadcast %cst_210 : f32 to vector<2x128xf32>
    %803 = arith.addf %802, %801 : vector<2x128xf32>
    %804 = arith.divf %802, %803 : vector<2x128xf32>
    %805 = vector.extract_strided_slice %799 {offsets = [0, 64], sizes = [2, 32], strides = [1, 1]} : vector<2x128xf32> to vector<2x32xf32>
    %806 = math.tanh %805 : vector<2x32xf32>
    %807 = vector.extract_strided_slice %804 {offsets = [0, 32], sizes = [2, 32], strides = [1, 1]} : vector<2x128xf32> to vector<2x32xf32>
    %808 = arith.mulf %807, %749 : vector<2x32xf32>
    %809 = vector.extract_strided_slice %804 {offsets = [0, 0], sizes = [2, 32], strides = [1, 1]} : vector<2x128xf32> to vector<2x32xf32>
    %810 = arith.mulf %809, %806 : vector<2x32xf32>
    %811 = arith.addf %808, %810 : vector<2x32xf32>
    %812 = vector.extract_strided_slice %804 {offsets = [0, 96], sizes = [2, 32], strides = [1, 1]} : vector<2x128xf32> to vector<2x32xf32>
    %813 = math.tanh %811 : vector<2x32xf32>
    %814 = arith.mulf %812, %813 : vector<2x32xf32>
    %815 = arith.index_cast %c3_i32_202 : i32 to index
    %c0_211 = arith.constant 0 : index
    %c0_212 = arith.constant 0 : index
    %816 = vector.load %arg21[%815, %c0_211, %c0_212] : memref<8x2x32xf32, #tpu.memory_space<vmem>>, vector<1x2x32xf32>
    %817 = vector.shape_cast %816 : vector<1x2x32xf32> to vector<2x32xf32>
    %818 = vector.shape_cast %814 : vector<2x32xf32> to vector<1x2x32xf32>
    tpu.vector_store %arg21[%815, %c0_211, %c0_212], %818 {strides = array<i32>} : memref<8x2x32xf32, #tpu.memory_space<vmem>>, vector<1x2x32xf32>,
    %c4_i32_213 = arith.constant 4 : i32
    %819 = arith.index_cast %c4_i32_213 : i32 to index
    %c0_214 = arith.constant 0 : index
    %c0_215 = arith.constant 0 : index
    %820 = vector.load %arg20[%819, %c0_214, %c0_215] : memref<8x2x128xf32, #tpu.memory_space<vmem>>, vector<1x2x128xf32>
    %821 = vector.shape_cast %820 : vector<1x2x128xf32> to vector<2x128xf32>
    %cst_216 = arith.constant dense<0.000000e+00> : vector<2x128xf32>
    %822 = tpu.matmul %776, %564, %cst_216 {dimension_numbers = #tpu.dot_dimension_numbers<[1], [0], [0], [1], [0, 0, 1, 1], [], []>} : vector<2x32xf32>, vector<32x128xf32>, vector<2x128xf32> -> vector<2x128xf32>
    %823 = arith.addf %821, %822 : vector<2x128xf32>
    %824 = arith.negf %823 : vector<2x128xf32>
    %825 = math.exp %824 : vector<2x128xf32>
    %cst_217 = arith.constant 1.000000e+00 : f32
    %826 = vector.broadcast %cst_217 : f32 to vector<2x128xf32>
    %827 = arith.addf %826, %825 : vector<2x128xf32>
    %828 = arith.divf %826, %827 : vector<2x128xf32>
    %829 = vector.extract_strided_slice %823 {offsets = [0, 64], sizes = [2, 32], strides = [1, 1]} : vector<2x128xf32> to vector<2x32xf32>
    %830 = math.tanh %829 : vector<2x32xf32>
    %831 = vector.extract_strided_slice %828 {offsets = [0, 32], sizes = [2, 32], strides = [1, 1]} : vector<2x128xf32> to vector<2x32xf32>
    %832 = arith.mulf %831, %773 : vector<2x32xf32>
    %833 = vector.extract_strided_slice %828 {offsets = [0, 0], sizes = [2, 32], strides = [1, 1]} : vector<2x128xf32> to vector<2x32xf32>
    %834 = arith.mulf %833, %830 : vector<2x32xf32>
    %835 = arith.addf %832, %834 : vector<2x32xf32>
    %836 = vector.extract_strided_slice %828 {offsets = [0, 96], sizes = [2, 32], strides = [1, 1]} : vector<2x128xf32> to vector<2x32xf32>
    %837 = math.tanh %835 : vector<2x32xf32>
    %838 = arith.mulf %836, %837 : vector<2x32xf32>
    %839 = tpu.concatenate %838, %795 in 1 : vector<2x32xf32>, vector<2x32xf32> -> vector<2x64xf32>
    %cst_218 = arith.constant dense<0.000000e+00> : vector<2x128xf32>
    %840 = tpu.matmul %839, %566, %cst_218 {dimension_numbers = #tpu.dot_dimension_numbers<[1], [0], [0], [1], [0, 0, 1, 1], [], []>} : vector<2x64xf32>, vector<64x128xf32>, vector<2x128xf32> -> vector<2x128xf32>
    %841 = vector.broadcast %569 : vector<1x128xf32> to vector<2x128xf32>
    %842 = arith.addf %840, %841 : vector<2x128xf32>
    %843 = arith.negf %842 : vector<2x128xf32>
    %844 = math.exp %843 : vector<2x128xf32>
    %cst_219 = arith.constant 1.000000e+00 : f32
    %845 = vector.broadcast %cst_219 : f32 to vector<2x128xf32>
    %846 = arith.addf %845, %844 : vector<2x128xf32>
    %847 = arith.divf %845, %846 : vector<2x128xf32>
    %848 = vector.extract_strided_slice %842 {offsets = [0, 64], sizes = [2, 32], strides = [1, 1]} : vector<2x128xf32> to vector<2x32xf32>
    %849 = math.tanh %848 : vector<2x32xf32>
    %850 = vector.extract_strided_slice %847 {offsets = [0, 32], sizes = [2, 32], strides = [1, 1]} : vector<2x128xf32> to vector<2x32xf32>
    %851 = arith.mulf %850, %792 : vector<2x32xf32>
    %852 = vector.extract_strided_slice %847 {offsets = [0, 0], sizes = [2, 32], strides = [1, 1]} : vector<2x128xf32> to vector<2x32xf32>
    %853 = arith.mulf %852, %849 : vector<2x32xf32>
    %854 = arith.addf %851, %853 : vector<2x32xf32>
    %855 = vector.extract_strided_slice %847 {offsets = [0, 96], sizes = [2, 32], strides = [1, 1]} : vector<2x128xf32> to vector<2x32xf32>
    %856 = math.tanh %854 : vector<2x32xf32>
    %857 = arith.mulf %855, %856 : vector<2x32xf32>
    %858 = tpu.concatenate %857, %814 in 1 : vector<2x32xf32>, vector<2x32xf32> -> vector<2x64xf32>
    %cst_220 = arith.constant dense<0.000000e+00> : vector<2x128xf32>
    %859 = tpu.matmul %858, %568, %cst_220 {dimension_numbers = #tpu.dot_dimension_numbers<[1], [0], [0], [1], [0, 0, 1, 1], [], []>} : vector<2x64xf32>, vector<64x128xf32>, vector<2x128xf32> -> vector<2x128xf32>
    %860 = vector.broadcast %570 : vector<1x128xf32> to vector<2x128xf32>
    %861 = arith.addf %859, %860 : vector<2x128xf32>
    %862 = arith.negf %861 : vector<2x128xf32>
    %863 = math.exp %862 : vector<2x128xf32>
    %cst_221 = arith.constant 1.000000e+00 : f32
    %864 = vector.broadcast %cst_221 : f32 to vector<2x128xf32>
    %865 = arith.addf %864, %863 : vector<2x128xf32>
    %866 = arith.divf %864, %865 : vector<2x128xf32>
    %867 = vector.extract_strided_slice %861 {offsets = [0, 64], sizes = [2, 32], strides = [1, 1]} : vector<2x128xf32> to vector<2x32xf32>
    %868 = math.tanh %867 : vector<2x32xf32>
    %869 = vector.extract_strided_slice %866 {offsets = [0, 32], sizes = [2, 32], strides = [1, 1]} : vector<2x128xf32> to vector<2x32xf32>
    %870 = arith.mulf %869, %811 : vector<2x32xf32>
    %871 = vector.extract_strided_slice %866 {offsets = [0, 0], sizes = [2, 32], strides = [1, 1]} : vector<2x128xf32> to vector<2x32xf32>
    %872 = arith.mulf %871, %868 : vector<2x32xf32>
    %873 = arith.addf %870, %872 : vector<2x32xf32>
    %874 = vector.extract_strided_slice %866 {offsets = [0, 96], sizes = [2, 32], strides = [1, 1]} : vector<2x128xf32> to vector<2x32xf32>
    %875 = math.tanh %873 : vector<2x32xf32>
    %876 = arith.mulf %874, %875 : vector<2x32xf32>
    %877 = arith.index_cast %c4_i32_213 : i32 to index
    %c0_222 = arith.constant 0 : index
    %c0_223 = arith.constant 0 : index
    %878 = vector.load %arg21[%877, %c0_222, %c0_223] : memref<8x2x32xf32, #tpu.memory_space<vmem>>, vector<1x2x32xf32>
    %879 = vector.shape_cast %878 : vector<1x2x32xf32> to vector<2x32xf32>
    %880 = vector.shape_cast %876 : vector<2x32xf32> to vector<1x2x32xf32>
    tpu.vector_store %arg21[%877, %c0_222, %c0_223], %880 {strides = array<i32>} : memref<8x2x32xf32, #tpu.memory_space<vmem>>, vector<1x2x32xf32>,
    %c5_i32_224 = arith.constant 5 : i32
    %881 = arith.index_cast %c5_i32_224 : i32 to index
    %c0_225 = arith.constant 0 : index
    %c0_226 = arith.constant 0 : index
    %882 = vector.load %arg20[%881, %c0_225, %c0_226] : memref<8x2x128xf32, #tpu.memory_space<vmem>>, vector<1x2x128xf32>
    %883 = vector.shape_cast %882 : vector<1x2x128xf32> to vector<2x128xf32>
    %cst_227 = arith.constant dense<0.000000e+00> : vector<2x128xf32>
    %884 = tpu.matmul %838, %564, %cst_227 {dimension_numbers = #tpu.dot_dimension_numbers<[1], [0], [0], [1], [0, 0, 1, 1], [], []>} : vector<2x32xf32>, vector<32x128xf32>, vector<2x128xf32> -> vector<2x128xf32>
    %885 = arith.addf %883, %884 : vector<2x128xf32>
    %886 = arith.negf %885 : vector<2x128xf32>
    %887 = math.exp %886 : vector<2x128xf32>
    %cst_228 = arith.constant 1.000000e+00 : f32
    %888 = vector.broadcast %cst_228 : f32 to vector<2x128xf32>
    %889 = arith.addf %888, %887 : vector<2x128xf32>
    %890 = arith.divf %888, %889 : vector<2x128xf32>
    %891 = vector.extract_strided_slice %885 {offsets = [0, 64], sizes = [2, 32], strides = [1, 1]} : vector<2x128xf32> to vector<2x32xf32>
    %892 = math.tanh %891 : vector<2x32xf32>
    %893 = vector.extract_strided_slice %890 {offsets = [0, 32], sizes = [2, 32], strides = [1, 1]} : vector<2x128xf32> to vector<2x32xf32>
    %894 = arith.mulf %893, %835 : vector<2x32xf32>
    %895 = vector.extract_strided_slice %890 {offsets = [0, 0], sizes = [2, 32], strides = [1, 1]} : vector<2x128xf32> to vector<2x32xf32>
    %896 = arith.mulf %895, %892 : vector<2x32xf32>
    %897 = arith.addf %894, %896 : vector<2x32xf32>
    %898 = vector.extract_strided_slice %890 {offsets = [0, 96], sizes = [2, 32], strides = [1, 1]} : vector<2x128xf32> to vector<2x32xf32>
    %899 = math.tanh %897 : vector<2x32xf32>
    %900 = arith.mulf %898, %899 : vector<2x32xf32>
    %901 = tpu.concatenate %900, %857 in 1 : vector<2x32xf32>, vector<2x32xf32> -> vector<2x64xf32>
    %cst_229 = arith.constant dense<0.000000e+00> : vector<2x128xf32>
    %902 = tpu.matmul %901, %566, %cst_229 {dimension_numbers = #tpu.dot_dimension_numbers<[1], [0], [0], [1], [0, 0, 1, 1], [], []>} : vector<2x64xf32>, vector<64x128xf32>, vector<2x128xf32> -> vector<2x128xf32>
    %903 = vector.broadcast %569 : vector<1x128xf32> to vector<2x128xf32>
    %904 = arith.addf %902, %903 : vector<2x128xf32>
    %905 = arith.negf %904 : vector<2x128xf32>
    %906 = math.exp %905 : vector<2x128xf32>
    %cst_230 = arith.constant 1.000000e+00 : f32
    %907 = vector.broadcast %cst_230 : f32 to vector<2x128xf32>
    %908 = arith.addf %907, %906 : vector<2x128xf32>
    %909 = arith.divf %907, %908 : vector<2x128xf32>
    %910 = vector.extract_strided_slice %904 {offsets = [0, 64], sizes = [2, 32], strides = [1, 1]} : vector<2x128xf32> to vector<2x32xf32>
    %911 = math.tanh %910 : vector<2x32xf32>
    %912 = vector.extract_strided_slice %909 {offsets = [0, 32], sizes = [2, 32], strides = [1, 1]} : vector<2x128xf32> to vector<2x32xf32>
    %913 = arith.mulf %912, %854 : vector<2x32xf32>
    %914 = vector.extract_strided_slice %909 {offsets = [0, 0], sizes = [2, 32], strides = [1, 1]} : vector<2x128xf32> to vector<2x32xf32>
    %915 = arith.mulf %914, %911 : vector<2x32xf32>
    %916 = arith.addf %913, %915 : vector<2x32xf32>
    %917 = vector.extract_strided_slice %909 {offsets = [0, 96], sizes = [2, 32], strides = [1, 1]} : vector<2x128xf32> to vector<2x32xf32>
    %918 = math.tanh %916 : vector<2x32xf32>
    %919 = arith.mulf %917, %918 : vector<2x32xf32>
    %920 = tpu.concatenate %919, %876 in 1 : vector<2x32xf32>, vector<2x32xf32> -> vector<2x64xf32>
    %cst_231 = arith.constant dense<0.000000e+00> : vector<2x128xf32>
    %921 = tpu.matmul %920, %568, %cst_231 {dimension_numbers = #tpu.dot_dimension_numbers<[1], [0], [0], [1], [0, 0, 1, 1], [], []>} : vector<2x64xf32>, vector<64x128xf32>, vector<2x128xf32> -> vector<2x128xf32>
    %922 = vector.broadcast %570 : vector<1x128xf32> to vector<2x128xf32>
    %923 = arith.addf %921, %922 : vector<2x128xf32>
    %924 = arith.negf %923 : vector<2x128xf32>
    %925 = math.exp %924 : vector<2x128xf32>
    %cst_232 = arith.constant 1.000000e+00 : f32
    %926 = vector.broadcast %cst_232 : f32 to vector<2x128xf32>
    %927 = arith.addf %926, %925 : vector<2x128xf32>
    %928 = arith.divf %926, %927 : vector<2x128xf32>
    %929 = vector.extract_strided_slice %923 {offsets = [0, 64], sizes = [2, 32], strides = [1, 1]} : vector<2x128xf32> to vector<2x32xf32>
    %930 = math.tanh %929 : vector<2x32xf32>
    %931 = vector.extract_strided_slice %928 {offsets = [0, 32], sizes = [2, 32], strides = [1, 1]} : vector<2x128xf32> to vector<2x32xf32>
    %932 = arith.mulf %931, %873 : vector<2x32xf32>
    %933 = vector.extract_strided_slice %928 {offsets = [0, 0], sizes = [2, 32], strides = [1, 1]} : vector<2x128xf32> to vector<2x32xf32>
    %934 = arith.mulf %933, %930 : vector<2x32xf32>
    %935 = arith.addf %932, %934 : vector<2x32xf32>
    %936 = vector.extract_strided_slice %928 {offsets = [0, 96], sizes = [2, 32], strides = [1, 1]} : vector<2x128xf32> to vector<2x32xf32>
    %937 = math.tanh %935 : vector<2x32xf32>
    %938 = arith.mulf %936, %937 : vector<2x32xf32>
    %939 = arith.index_cast %c5_i32_224 : i32 to index
    %c0_233 = arith.constant 0 : index
    %c0_234 = arith.constant 0 : index
    %940 = vector.load %arg21[%939, %c0_233, %c0_234] : memref<8x2x32xf32, #tpu.memory_space<vmem>>, vector<1x2x32xf32>
    %941 = vector.shape_cast %940 : vector<1x2x32xf32> to vector<2x32xf32>
    %942 = vector.shape_cast %938 : vector<2x32xf32> to vector<1x2x32xf32>
    tpu.vector_store %arg21[%939, %c0_233, %c0_234], %942 {strides = array<i32>} : memref<8x2x32xf32, #tpu.memory_space<vmem>>, vector<1x2x32xf32>,
    %c6_i32_235 = arith.constant 6 : i32
    %943 = arith.index_cast %c6_i32_235 : i32 to index
    %c0_236 = arith.constant 0 : index
    %c0_237 = arith.constant 0 : index
    %944 = vector.load %arg20[%943, %c0_236, %c0_237] : memref<8x2x128xf32, #tpu.memory_space<vmem>>, vector<1x2x128xf32>
    %945 = vector.shape_cast %944 : vector<1x2x128xf32> to vector<2x128xf32>
    %cst_238 = arith.constant dense<0.000000e+00> : vector<2x128xf32>
    %946 = tpu.matmul %900, %564, %cst_238 {dimension_numbers = #tpu.dot_dimension_numbers<[1], [0], [0], [1], [0, 0, 1, 1], [], []>} : vector<2x32xf32>, vector<32x128xf32>, vector<2x128xf32> -> vector<2x128xf32>
    %947 = arith.addf %945, %946 : vector<2x128xf32>
    %948 = arith.negf %947 : vector<2x128xf32>
    %949 = math.exp %948 : vector<2x128xf32>
    %cst_239 = arith.constant 1.000000e+00 : f32
    %950 = vector.broadcast %cst_239 : f32 to vector<2x128xf32>
    %951 = arith.addf %950, %949 : vector<2x128xf32>
    %952 = arith.divf %950, %951 : vector<2x128xf32>
    %953 = vector.extract_strided_slice %947 {offsets = [0, 64], sizes = [2, 32], strides = [1, 1]} : vector<2x128xf32> to vector<2x32xf32>
    %954 = math.tanh %953 : vector<2x32xf32>
    %955 = vector.extract_strided_slice %952 {offsets = [0, 32], sizes = [2, 32], strides = [1, 1]} : vector<2x128xf32> to vector<2x32xf32>
    %956 = arith.mulf %955, %897 : vector<2x32xf32>
    %957 = vector.extract_strided_slice %952 {offsets = [0, 0], sizes = [2, 32], strides = [1, 1]} : vector<2x128xf32> to vector<2x32xf32>
    %958 = arith.mulf %957, %954 : vector<2x32xf32>
    %959 = arith.addf %956, %958 : vector<2x32xf32>
    %960 = vector.extract_strided_slice %952 {offsets = [0, 96], sizes = [2, 32], strides = [1, 1]} : vector<2x128xf32> to vector<2x32xf32>
    %961 = math.tanh %959 : vector<2x32xf32>
    %962 = arith.mulf %960, %961 : vector<2x32xf32>
    %963 = tpu.concatenate %962, %919 in 1 : vector<2x32xf32>, vector<2x32xf32> -> vector<2x64xf32>
    %cst_240 = arith.constant dense<0.000000e+00> : vector<2x128xf32>
    %964 = tpu.matmul %963, %566, %cst_240 {dimension_numbers = #tpu.dot_dimension_numbers<[1], [0], [0], [1], [0, 0, 1, 1], [], []>} : vector<2x64xf32>, vector<64x128xf32>, vector<2x128xf32> -> vector<2x128xf32>
    %965 = vector.broadcast %569 : vector<1x128xf32> to vector<2x128xf32>
    %966 = arith.addf %964, %965 : vector<2x128xf32>
    %967 = arith.negf %966 : vector<2x128xf32>
    %968 = math.exp %967 : vector<2x128xf32>
    %cst_241 = arith.constant 1.000000e+00 : f32
    %969 = vector.broadcast %cst_241 : f32 to vector<2x128xf32>
    %970 = arith.addf %969, %968 : vector<2x128xf32>
    %971 = arith.divf %969, %970 : vector<2x128xf32>
    %972 = vector.extract_strided_slice %966 {offsets = [0, 64], sizes = [2, 32], strides = [1, 1]} : vector<2x128xf32> to vector<2x32xf32>
    %973 = math.tanh %972 : vector<2x32xf32>
    %974 = vector.extract_strided_slice %971 {offsets = [0, 32], sizes = [2, 32], strides = [1, 1]} : vector<2x128xf32> to vector<2x32xf32>
    %975 = arith.mulf %974, %916 : vector<2x32xf32>
    %976 = vector.extract_strided_slice %971 {offsets = [0, 0], sizes = [2, 32], strides = [1, 1]} : vector<2x128xf32> to vector<2x32xf32>
    %977 = arith.mulf %976, %973 : vector<2x32xf32>
    %978 = arith.addf %975, %977 : vector<2x32xf32>
    %979 = vector.extract_strided_slice %971 {offsets = [0, 96], sizes = [2, 32], strides = [1, 1]} : vector<2x128xf32> to vector<2x32xf32>
    %980 = math.tanh %978 : vector<2x32xf32>
    %981 = arith.mulf %979, %980 : vector<2x32xf32>
    %982 = tpu.concatenate %981, %938 in 1 : vector<2x32xf32>, vector<2x32xf32> -> vector<2x64xf32>
    %cst_242 = arith.constant dense<0.000000e+00> : vector<2x128xf32>
    %983 = tpu.matmul %982, %568, %cst_242 {dimension_numbers = #tpu.dot_dimension_numbers<[1], [0], [0], [1], [0, 0, 1, 1], [], []>} : vector<2x64xf32>, vector<64x128xf32>, vector<2x128xf32> -> vector<2x128xf32>
    %984 = vector.broadcast %570 : vector<1x128xf32> to vector<2x128xf32>
    %985 = arith.addf %983, %984 : vector<2x128xf32>
    %986 = arith.negf %985 : vector<2x128xf32>
    %987 = math.exp %986 : vector<2x128xf32>
    %cst_243 = arith.constant 1.000000e+00 : f32
    %988 = vector.broadcast %cst_243 : f32 to vector<2x128xf32>
    %989 = arith.addf %988, %987 : vector<2x128xf32>
    %990 = arith.divf %988, %989 : vector<2x128xf32>
    %991 = vector.extract_strided_slice %985 {offsets = [0, 64], sizes = [2, 32], strides = [1, 1]} : vector<2x128xf32> to vector<2x32xf32>
    %992 = math.tanh %991 : vector<2x32xf32>
    %993 = vector.extract_strided_slice %990 {offsets = [0, 32], sizes = [2, 32], strides = [1, 1]} : vector<2x128xf32> to vector<2x32xf32>
    %994 = arith.mulf %993, %935 : vector<2x32xf32>
    %995 = vector.extract_strided_slice %990 {offsets = [0, 0], sizes = [2, 32], strides = [1, 1]} : vector<2x128xf32> to vector<2x32xf32>
    %996 = arith.mulf %995, %992 : vector<2x32xf32>
    %997 = arith.addf %994, %996 : vector<2x32xf32>
    %998 = vector.extract_strided_slice %990 {offsets = [0, 96], sizes = [2, 32], strides = [1, 1]} : vector<2x128xf32> to vector<2x32xf32>
    %999 = math.tanh %997 : vector<2x32xf32>
    %1000 = arith.mulf %998, %999 : vector<2x32xf32>
    %1001 = arith.index_cast %c6_i32_235 : i32 to index
    %c0_244 = arith.constant 0 : index
    %c0_245 = arith.constant 0 : index
    %1002 = vector.load %arg21[%1001, %c0_244, %c0_245] : memref<8x2x32xf32, #tpu.memory_space<vmem>>, vector<1x2x32xf32>
    %1003 = vector.shape_cast %1002 : vector<1x2x32xf32> to vector<2x32xf32>
    %1004 = vector.shape_cast %1000 : vector<2x32xf32> to vector<1x2x32xf32>
    tpu.vector_store %arg21[%1001, %c0_244, %c0_245], %1004 {strides = array<i32>} : memref<8x2x32xf32, #tpu.memory_space<vmem>>, vector<1x2x32xf32>,
    %c7_i32_246 = arith.constant 7 : i32
    %1005 = arith.index_cast %c7_i32_246 : i32 to index
    %c0_247 = arith.constant 0 : index
    %c0_248 = arith.constant 0 : index
    %1006 = vector.load %arg20[%1005, %c0_247, %c0_248] : memref<8x2x128xf32, #tpu.memory_space<vmem>>, vector<1x2x128xf32>
    %1007 = vector.shape_cast %1006 : vector<1x2x128xf32> to vector<2x128xf32>
    %cst_249 = arith.constant dense<0.000000e+00> : vector<2x128xf32>
    %1008 = tpu.matmul %962, %564, %cst_249 {dimension_numbers = #tpu.dot_dimension_numbers<[1], [0], [0], [1], [0, 0, 1, 1], [], []>} : vector<2x32xf32>, vector<32x128xf32>, vector<2x128xf32> -> vector<2x128xf32>
    %1009 = arith.addf %1007, %1008 : vector<2x128xf32>
    %1010 = arith.negf %1009 : vector<2x128xf32>
    %1011 = math.exp %1010 : vector<2x128xf32>
    %cst_250 = arith.constant 1.000000e+00 : f32
    %1012 = vector.broadcast %cst_250 : f32 to vector<2x128xf32>
    %1013 = arith.addf %1012, %1011 : vector<2x128xf32>
    %1014 = arith.divf %1012, %1013 : vector<2x128xf32>
    %1015 = vector.extract_strided_slice %1009 {offsets = [0, 64], sizes = [2, 32], strides = [1, 1]} : vector<2x128xf32> to vector<2x32xf32>
    %1016 = math.tanh %1015 : vector<2x32xf32>
    %1017 = vector.extract_strided_slice %1014 {offsets = [0, 32], sizes = [2, 32], strides = [1, 1]} : vector<2x128xf32> to vector<2x32xf32>
    %1018 = arith.mulf %1017, %959 : vector<2x32xf32>
    %1019 = vector.extract_strided_slice %1014 {offsets = [0, 0], sizes = [2, 32], strides = [1, 1]} : vector<2x128xf32> to vector<2x32xf32>
    %1020 = arith.mulf %1019, %1016 : vector<2x32xf32>
    %1021 = arith.addf %1018, %1020 : vector<2x32xf32>
    %1022 = vector.extract_strided_slice %1014 {offsets = [0, 96], sizes = [2, 32], strides = [1, 1]} : vector<2x128xf32> to vector<2x32xf32>
    %1023 = math.tanh %1021 : vector<2x32xf32>
    %1024 = arith.mulf %1022, %1023 : vector<2x32xf32>
    %1025 = tpu.concatenate %1024, %981 in 1 : vector<2x32xf32>, vector<2x32xf32> -> vector<2x64xf32>
    %cst_251 = arith.constant dense<0.000000e+00> : vector<2x128xf32>
    %1026 = tpu.matmul %1025, %566, %cst_251 {dimension_numbers = #tpu.dot_dimension_numbers<[1], [0], [0], [1], [0, 0, 1, 1], [], []>} : vector<2x64xf32>, vector<64x128xf32>, vector<2x128xf32> -> vector<2x128xf32>
    %1027 = vector.broadcast %569 : vector<1x128xf32> to vector<2x128xf32>
    %1028 = arith.addf %1026, %1027 : vector<2x128xf32>
    %1029 = arith.negf %1028 : vector<2x128xf32>
    %1030 = math.exp %1029 : vector<2x128xf32>
    %cst_252 = arith.constant 1.000000e+00 : f32
    %1031 = vector.broadcast %cst_252 : f32 to vector<2x128xf32>
    %1032 = arith.addf %1031, %1030 : vector<2x128xf32>
    %1033 = arith.divf %1031, %1032 : vector<2x128xf32>
    %1034 = vector.extract_strided_slice %1028 {offsets = [0, 64], sizes = [2, 32], strides = [1, 1]} : vector<2x128xf32> to vector<2x32xf32>
    %1035 = math.tanh %1034 : vector<2x32xf32>
    %1036 = vector.extract_strided_slice %1033 {offsets = [0, 32], sizes = [2, 32], strides = [1, 1]} : vector<2x128xf32> to vector<2x32xf32>
    %1037 = arith.mulf %1036, %978 : vector<2x32xf32>
    %1038 = vector.extract_strided_slice %1033 {offsets = [0, 0], sizes = [2, 32], strides = [1, 1]} : vector<2x128xf32> to vector<2x32xf32>
    %1039 = arith.mulf %1038, %1035 : vector<2x32xf32>
    %1040 = arith.addf %1037, %1039 : vector<2x32xf32>
    %1041 = vector.extract_strided_slice %1033 {offsets = [0, 96], sizes = [2, 32], strides = [1, 1]} : vector<2x128xf32> to vector<2x32xf32>
    %1042 = math.tanh %1040 : vector<2x32xf32>
    %1043 = arith.mulf %1041, %1042 : vector<2x32xf32>
    %1044 = tpu.concatenate %1043, %1000 in 1 : vector<2x32xf32>, vector<2x32xf32> -> vector<2x64xf32>
    %cst_253 = arith.constant dense<0.000000e+00> : vector<2x128xf32>
    %1045 = tpu.matmul %1044, %568, %cst_253 {dimension_numbers = #tpu.dot_dimension_numbers<[1], [0], [0], [1], [0, 0, 1, 1], [], []>} : vector<2x64xf32>, vector<64x128xf32>, vector<2x128xf32> -> vector<2x128xf32>
    %1046 = vector.broadcast %570 : vector<1x128xf32> to vector<2x128xf32>
    %1047 = arith.addf %1045, %1046 : vector<2x128xf32>
    %1048 = arith.negf %1047 : vector<2x128xf32>
    %1049 = math.exp %1048 : vector<2x128xf32>
    %cst_254 = arith.constant 1.000000e+00 : f32
    %1050 = vector.broadcast %cst_254 : f32 to vector<2x128xf32>
    %1051 = arith.addf %1050, %1049 : vector<2x128xf32>
    %1052 = arith.divf %1050, %1051 : vector<2x128xf32>
    %1053 = vector.extract_strided_slice %1047 {offsets = [0, 64], sizes = [2, 32], strides = [1, 1]} : vector<2x128xf32> to vector<2x32xf32>
    %1054 = math.tanh %1053 : vector<2x32xf32>
    %1055 = vector.extract_strided_slice %1052 {offsets = [0, 32], sizes = [2, 32], strides = [1, 1]} : vector<2x128xf32> to vector<2x32xf32>
    %1056 = arith.mulf %1055, %997 : vector<2x32xf32>
    %1057 = vector.extract_strided_slice %1052 {offsets = [0, 0], sizes = [2, 32], strides = [1, 1]} : vector<2x128xf32> to vector<2x32xf32>
    %1058 = arith.mulf %1057, %1054 : vector<2x32xf32>
    %1059 = arith.addf %1056, %1058 : vector<2x32xf32>
    %1060 = vector.extract_strided_slice %1052 {offsets = [0, 96], sizes = [2, 32], strides = [1, 1]} : vector<2x128xf32> to vector<2x32xf32>
    %1061 = math.tanh %1059 : vector<2x32xf32>
    %1062 = arith.mulf %1060, %1061 : vector<2x32xf32>
    %1063 = arith.index_cast %c7_i32_246 : i32 to index
    %c0_255 = arith.constant 0 : index
    %c0_256 = arith.constant 0 : index
    %1064 = vector.load %arg21[%1063, %c0_255, %c0_256] : memref<8x2x32xf32, #tpu.memory_space<vmem>>, vector<1x2x32xf32>
    %1065 = vector.shape_cast %1064 : vector<1x2x32xf32> to vector<2x32xf32>
    %1066 = vector.shape_cast %1062 : vector<2x32xf32> to vector<1x2x32xf32>
    tpu.vector_store %arg21[%1063, %c0_255, %c0_256], %1066 {strides = array<i32>} : memref<8x2x32xf32, #tpu.memory_space<vmem>>, vector<1x2x32xf32>,
    %c8_i32_257 = arith.constant 8 : i32
    %c0_258 = arith.constant 0 : index
    %c0_259 = arith.constant 0 : index
    %1067 = vector.load %arg15[%c0_258, %c0_259] : memref<4x32xf32, #tpu.memory_space<vmem>>, vector<4x32xf32>
    %c0_260 = arith.constant 0 : index
    %c0_261 = arith.constant 0 : index
    %1068 = vector.load %arg16[%c0_260, %c0_261] : memref<4x1xf32, #tpu.memory_space<vmem>>, vector<4x1xf32>
    %c0_262 = arith.constant 0 : index
    %c0_263 = arith.constant 0 : index
    %c0_264 = arith.constant 0 : index
    %1069 = vector.load %arg21[%c0_262, %c0_263, %c0_264] : memref<8x2x32xf32, #tpu.memory_space<vmem>>, vector<8x1x32xf32>
    %1070 = vector.shape_cast %1069 : vector<8x1x32xf32> to vector<8x32xf32>
    %cst_265 = arith.constant dense<0.000000e+00> : vector<4x8xf32>
    %1071 = tpu.matmul %1067, %1070, %cst_265 {dimension_numbers = #tpu.dot_dimension_numbers<[1], [1], [0], [0], [0, 0, 1, 0], [], []>} : vector<4x32xf32>, vector<8x32xf32>, vector<4x8xf32> -> vector<4x8xf32>
    %1072 = vector.broadcast %1068 : vector<4x1xf32> to vector<4x8xf32>
    %1073 = arith.addf %1071, %1072 : vector<4x8xf32>
    %c0_266 = arith.constant 0 : index
    %c0_267 = arith.constant 0 : index
    %c0_268 = arith.constant 0 : index
    %1074 = vector.load %arg17[%c0_266, %c0_267, %c0_268] : memref<2x4x8xf32, #tpu.memory_space<vmem>>, vector<1x4x8xf32>
    %1075 = vector.shape_cast %1074 : vector<1x4x8xf32> to vector<4x8xf32>
    %1076 = vector.shape_cast %1073 : vector<4x8xf32> to vector<1x4x8xf32>
    tpu.vector_store %arg17[%c0_266, %c0_267, %c0_268], %1076 {strides = array<i32>} : memref<2x4x8xf32, #tpu.memory_space<vmem>>, vector<1x4x8xf32>,
    %c0_269 = arith.constant 0 : index
    %c1_270 = arith.constant 1 : index
    %c0_271 = arith.constant 0 : index
    %1077 = vector.load %arg21[%c0_269, %c1_270, %c0_271] : memref<8x2x32xf32, #tpu.memory_space<vmem>>, vector<8x1x32xf32>
    %1078 = vector.shape_cast %1077 : vector<8x1x32xf32> to vector<8x32xf32>
    %cst_272 = arith.constant dense<0.000000e+00> : vector<4x8xf32>
    %1079 = tpu.matmul %1067, %1078, %cst_272 {dimension_numbers = #tpu.dot_dimension_numbers<[1], [1], [0], [0], [0, 0, 1, 0], [], []>} : vector<4x32xf32>, vector<8x32xf32>, vector<4x8xf32> -> vector<4x8xf32>
    %1080 = vector.broadcast %1068 : vector<4x1xf32> to vector<4x8xf32>
    %1081 = arith.addf %1079, %1080 : vector<4x8xf32>
    %c1_273 = arith.constant 1 : index
    %c0_274 = arith.constant 0 : index
    %c0_275 = arith.constant 0 : index
    %1082 = vector.load %arg17[%c1_273, %c0_274, %c0_275] : memref<2x4x8xf32, #tpu.memory_space<vmem>>, vector<1x4x8xf32>
    %1083 = vector.shape_cast %1082 : vector<1x4x8xf32> to vector<4x8xf32>
    %1084 = vector.shape_cast %1081 : vector<4x8xf32> to vector<1x4x8xf32>
    tpu.vector_store %arg17[%c1_273, %c0_274, %c0_275], %1084 {strides = array<i32>} : memref<2x4x8xf32, #tpu.memory_space<vmem>>, vector<1x4x8xf32>,
    return
  }
}

</mosaic_0001>

<bundles_post_ra>
// kernel: decoder_forward.1
= control target key start
LH: loop header
LB: loop body
LE: loop exit
PB: predicated region body
PF: predicated region fallthrough
CT: control target
= control target key end

     0   :  { %s10515_s0 = inlined_call_operand.vmem [shape: f32[32,21], index: 0, kind: input, shape index: {}]   ;;  %s10516_s1 = inlined_call_operand.vmem [shape: f32[32,32], index: 1, kind: input, shape index: {}]   ;;  %s10517_s2 = inlined_call_operand.vmem [shape: f32[2,8,4], index: 2, kind: input, shape index: {}]   ;;  %s10518_s3 = inlined_call_operand.vmem [shape: f32[21,32], index: 3, kind: input, shape index: {}]   ;;  %s10519_s4 = inlined_call_operand.vmem [shape: f32[1,32], index: 4, kind: input, shape index: {}]   ;;  %s10520_s5 = inlined_call_operand.vmem [shape: f32[2,96,32], index: 5, kind: input, shape index: {}]   ;;  %s10521_s6 = inlined_call_operand.vmem [shape: f32[2,1,32], index: 6, kind: input, shape index: {}]   ;;  %s10522_s7 = inlined_call_operand.vmem [shape: f32[4,128], index: 7, kind: input, shape index: {}]   ;;  %s10523_s8 = inlined_call_operand.vmem [shape: f32[32,128], index: 8, kind: input, shape index: {}]   ;;  %s10524_s9 = inlined_call_operand.vmem [shape: f32[2,64,128], index: 9, kind: input, shape index: {}]   ;;  %s10525_s10 = inlined_call_operand.vmem [shape: f32[3,128], index: 10, kind: input, shape index: {}]   ;;  %s10526_s11 = inlined_call_operand.vmem [shape: f32[32,128], index: 11, kind: input, shape index: {}]   ;;  %s10527_s12 = inlined_call_operand.vmem [shape: f32[32,128], index: 12, kind: input, shape index: {}]   ;;  %s10528_s13 = inlined_call_operand.vmem [shape: f32[2,64,128], index: 13, kind: input, shape index: {}]   ;;  %s10529_s14 = inlined_call_operand.vmem [shape: f32[3,128], index: 14, kind: input, shape index: {}]   ;;  %s10530_s15 = inlined_call_operand.vmem [shape: f32[4,32], index: 15, kind: input, shape index: {}]   ;;  %s10531_s16 = inlined_call_operand.vmem [shape: f32[4,1], index: 16, kind: input, shape index: {}]   ;;  %s10532_s17 = inlined_call_operand.hbm [shape: f32[2,4,8], index: 17, kind: output, shape index: {}]  }
   0x1   :  { %10535 = sst [smem:[#allocation9_spill]] %s10515_s0 }
   0x2   :  { %10536 = sst [smem:[#allocation10_spill]] %s10516_s1 }
   0x3   :  { %v63_v0 = vld [vmem:[%s10518_s3 + $0x10] sm:$0x1f]  ;;  %vm84_vm0 = vcmask 1044480   ;;  %v62_v1 = vld [vmem:[%s10518_s3 + $0x8] sm:$0xff]  ;;  %vm71_vm1 = vcmask 171008   ;;  %s10537_s0 = sld [smem:[#allocation9_spill]] }
   0x4   :  { %7021 = vmatprep.subr.msk.mxu0 %vm84_vm0, %v63_v0  ;;  %v61_v3 = vld [vmem:[%s10518_s3] sm:$0xff] }
   0x5   :  { %7022 = vmatpush3.msk.msra.mxu0 %vm84_vm0, %v63_v0 }
   0x9   :  { %v57_v2 = vld [vmem:[%s10537_s0] sm:$0xff] }
   0xa   :  { %7027 = vmatprep.mubr.msk.f32.mxu0 %vm71_vm1, %v57_v2 }
   0xb   :  { %22 = vsyncpa [#allocation7], 0  ;;  %7023 = vmatprep.subr.mxu0 %v62_v1  ;;  %v58_v4 = vld [vmem:[%s10537_s0 + $0x8] sm:$0xff]  ;;  %v59_v5 = vld [vmem:[%s10537_s0 + $0x10] sm:$0xff]  ;;  %vm181_vm2 = vcmask 261120   ;;  %v8378_v7 = vmov 0.0  }
   0xc   :  { %7024 = vmatpush3.msra.mxu0 %v62_v1  ;;  %v60_v6 = vld [vmem:[%s10537_s0 + $0x18] sm:$0xff]  ;;  %184 = vst.msk [vmem:[#allocation2 + $0x10] sm:$0xff] %vm181_vm2, %v8378_v7  ;;  %182 = vst.msk [vmem:[#allocation2] sm:$0xff] %vm181_vm2, %v8378_v7  ;;  %v257_v9 = vld [vmem:[%s10520_s5 + $0x50] sm:$0xff]  ;;  %s10538_s29 = sld [smem:[#allocation10_spill]]  ;;  %s8379_s25 = smov 64  }
   0xd   :  { %7025 = vmatprep.subr.mxu0 %v61_v3  ;;  %183 = vst.msk [vmem:[#allocation2 + $0x8] sm:$0xff] %vm181_vm2, %v8378_v7  ;;  %185 = vst.msk [vmem:[#allocation2 + $0x18] sm:$0xff] %vm181_vm2, %v8378_v7  ;;  %v258_v8 = vld [vmem:[%s10520_s5 + $0x58] sm:$0xff]  ;;  %v256_v10 = vld [vmem:[%s10520_s5 + $0x48] sm:$0xff]  ;;  %s8380_s26 = smov 32   ;;  %vm242_vm3 = vcmask 523264  }
   0xe   :  { %7026 = vmatpush3.msra.mxu0 %v61_v3  ;;  %186 = vst.msk [vmem:[#allocation2 + $0x20] sm:$0xff] %vm181_vm2, %v8378_v7  ;;  %187 = vst.msk [vmem:[#allocation2 + $0x28] sm:$0xff] %vm181_vm2, %v8378_v7  ;;  %7033 = vmatprep.subr.mxu1 %v258_v8  ;;  %v255_v11 = vld [vmem:[%s10520_s5 + $0x40] sm:$0xff]  ;;  %v254_v12 = vld [vmem:[%s10520_s5 + $0x38] sm:$0xff]  ;;  %vm266_vm4 = vcmask 785408   ;;  %vm559_vm5 = vcmask 1043456  }
   0xf   :  { %7028 = vmatmul.mubr.msk.f32.vlgmr.msra.gmra.mxu0 %vm71_vm1, %v58_v4  ;;  %188 = vst.msk [vmem:[#allocation2 + $0x30] sm:$0xff] %vm181_vm2, %v8378_v7  ;;  %189 = vst.msk [vmem:[#allocation2 + $0x38] sm:$0xff] %vm181_vm2, %v8378_v7  ;;  %7034 = vmatpush3.msra.mxu1 %v258_v8  ;;  %v253_v13 = vld [vmem:[%s10520_s5 + $0x30] sm:$0xff]  ;;  %v252_v14 = vld [vmem:[%s10520_s5 + $0x28] sm:$0xff]  ;;  %vm555_vm6 = vcmask 31744   ;;  %vm8381_vm7 = vmmov 0  }
  0x10   :  { %7030 = vmatprep.mubr.msk.f32.mxu0 %vm71_vm1, %v59_v5  ;;  %7035 = vmatprep.subr.mxu1 %v257_v9  ;;  %v251_v15 = vld [vmem:[%s10520_s5 + $0x20] sm:$0xff]  ;;  %v250_v16 = vld [vmem:[%s10520_s5 + $0x18] sm:$0xff]  ;;  %v249_v21 = vld [vmem:[%s10520_s5 + $0x10] sm:$0xff]  ;;  %vm3975_vm8 = vcmask 254976   ;;  %vm6206_vm9 = vcmask 1041409   ;;  %vm6209_vm10 = vcmask 1042434  }
  0x11   :  { %7036 = vmatpush3.msra.mxu1 %v257_v9  ;;  %v6423_v17 = vld [vmem:[%s10519_s4] ss:$0 sm:$0xff]  ;;  %v248_v24 = vld [vmem:[%s10520_s5 + $0x8] sm:$0xff]  ;;  %v6445_v1 = vld [vmem:[%s10520_s5 + $0xb8] sm:$0xff]  ;;  %vm6212_vm11 = vcmask 1043459   ;;  %vm6215_vm12 = vcmask 1044484  }
  0x12   :  { %7037 = vmatprep.subr.mxu1 %v256_v10  ;;  %v174_v19 = vld [vmem:[%s10538_s29 + $0x8] sm:$0xff]  ;;  %v173_v23 = vld [vmem:[%s10538_s29] sm:$0xff]  ;;  %v176_v28 = vld [vmem:[%s10538_s29 + $0x18] sm:$0xff]  ;;  %7063 = vmatprep.subr.mxu0 %v6445_v1  ;;  %vm6218_vm13 = vcmask 1045509   ;;  %vm6221_vm14 = vcmask 1046534   ;;  %vm6224_vm15 = vcmask 1047559  }
  0x13   :  { %7031 = vmatmul.mubr.msk.f32.gmra.mxu0 %vm71_vm1, %v60_v6  ;;  %7038 = vmatpush3.msra.mxu1 %v256_v10  ;;  %v175_v32 = vld [vmem:[%s10538_s29 + $0x10] sm:$0xff]  ;;  %v247_v33 = vld [vmem:[%s10520_s5] sm:$0xff]  ;;  %v6443_v3 = vld [vmem:[%s10520_s5 + $0xa8] sm:$0xff]  ;;  %vm6301_vm0 = vcmask 60416  }
  0x14   :  { %7039 = vmatprep.subr.mxu1 %v255_v11  ;;  %v6444_v2 = vld [vmem:[%s10520_s5 + $0xb0] sm:$0xff]  ;;  %7064 = vmatpush3.msra.mxu0 %v6445_v1  ;;  %v6442_v4 = vld [vmem:[%s10520_s5 + $0xa0] sm:$0xff]  ;;  %v6441_v5 = vld [vmem:[%s10520_s5 + $0x98] sm:$0xff] }
  0x15   :  { %7040 = vmatpush3.msra.mxu1 %v255_v11  ;;  %7065 = vmatprep.subr.mxu0 %v6444_v2  ;;  %v6440_v6 = vld [vmem:[%s10520_s5 + $0x90] sm:$0xff]  ;;  %v6439_v8 = vld [vmem:[%s10520_s5 + $0x88] sm:$0xff]  ;;  %v6438_v9 = vld [vmem:[%s10520_s5 + $0x80] sm:$0xff] }
  0x16   :  { %7041 = vmatprep.subr.mxu1 %v254_v12  ;;  %7066 = vmatpush3.msra.mxu0 %v6444_v2  ;;  %v6429_v10 = vld [vmem:[%s10521_s6] ss:$0 sm:$0xff] }
  0x17   :  { %7042 = vmatpush3.msra.mxu1 %v254_v12  ;;  %7067 = vmatprep.subr.mxu0 %v6443_v3  ;;  %v840_v1 = vld [vmem:[%s10526_s11] sm:$0xff] }
  0x18   :  { %7043 = vmatprep.subr.mxu1 %v253_v13  ;;  %7068 = vmatpush3.msra.mxu0 %v6443_v3  ;;  %v6452_v2 = vld [vmem:[%s10525_s10] ss:$0 sm:$0xff] }
  0x19   :  { %7044 = vmatpush3.msra.mxu1 %v253_v13  ;;  %7069 = vmatprep.subr.mxu0 %v6442_v4 }
  0x1a   :  { %7045 = vmatprep.subr.mxu1 %v252_v14  ;;  %7070 = vmatpush3.msra.mxu0 %v6442_v4  ;;  %v638_v4 = vlaneseq }
  0x1b   :  { %7046 = vmatpush3.msra.mxu1 %v252_v14  ;;  %7071 = vmatprep.subr.mxu0 %v6441_v5  ;;  %v6437_v14 = vld [vmem:[%s10520_s5 + $0x78] sm:$0xff] }
  0x1c   :  { %7047 = vmatprep.subr.mxu1 %v251_v15  ;;  %7072 = vmatpush3.msra.mxu0 %v6441_v5 }
  0x1d   :  { %7048 = vmatpush3.msra.mxu1 %v251_v15  ;;  %7073 = vmatprep.subr.mxu0 %v6440_v6 }
  0x1e   :  { %7049 = vmatprep.subr.mxu1 %v250_v16  ;;  %7074 = vmatpush3.msra.mxu0 %v6440_v6  ;;  %v8382_v6 = vmov 1966171168  }
  0x1f   :  { %7050 = vmatpush3.msra.mxu1 %v250_v16  ;;  %7075 = vmatprep.subr.mxu0 %v6439_v8 }
  0x20   :  { %7051 = vmatprep.subr.mxu1 %v249_v21  ;;  %7076 = vmatpush3.msra.mxu0 %v6439_v8  ;;  %v636_v8 = vunpack.c.l.s4 %v8382_v6 }
  0x21   :  { %7052 = vmatpush3.msra.mxu1 %v249_v21  ;;  %7077 = vmatprep.subr.mxu0 %v6438_v9 }
  0x22   :  { %7053 = vmatprep.subr.mxu1 %v248_v24  ;;  %7078 = vmatpush3.msra.mxu0 %v6438_v9  ;;  %v639_v9 = vshrl.u32 %v638_v4, 7 }
  0x23   :  { %7054 = vmatpush3.msra.mxu1 %v248_v24  ;;  %7079 = vmatprep.subr.mxu0 %v6437_v14 }
  0x24   :  { %7055 = vmatprep.subr.mxu1 %v247_v33  ;;  %7080 = vmatpush3.msra.mxu0 %v6437_v14 }
  0x25   :  { %7056 = vmatpush3.msra.mxu1 %v247_v33 }
  0x26   :  { %7093 = vmatprep.subr.mxu1 %v8378_v7 }
  0xcf   :  { %v7029_v18 = vpop.f32.mrf.mxu0 }
  0xd0   :  { %v160_v20 = vadd.f32 %v7029_v18, %v6423_v17 }
  0xd1   :  { %v154_v22 = vpop.f32.mrf.mxu0 }
  0xd2   :  { %v8559_v25 = vadd.f32 %v174_v19, %v160_v20  ;;  %v155_v26 = vadd.f32 %v6423_v17, %v154_v22  ;;  %v6435_v20 = vld [vmem:[%s10520_s5 + $0x68] sm:$0xff] }
  0xd3   :  { %v7032_v27 = vpop.f32.mrf.mxu0 }
  0xd4   :  { %191 = vst.msk [vmem:[#allocation2 + $0x10] sm:$0xff] %vm181_vm2, %v8559_v25  ;;  %v8566_v29 = vadd.f32 %v173_v23, %v155_v26  ;;  %v170_v30 = vadd.f32 %v7032_v27, %v6423_v17  ;;  %v6434_v23 = vld [vmem:[%s10520_s5 + $0x60] sm:$0xff] }
  0xd5   :  { %v164_v31 = vpop.f32.mrf.mxu0 }
  0xd6   :  { %190 = vst.msk [vmem:[#allocation2 + $0x8] sm:$0xff] %vm181_vm2, %v8566_v29  ;;  %v8576_v34 = vadd.f32 %v176_v28, %v170_v30  ;;  %v165_v35 = vadd.f32 %v6423_v17, %v164_v31  ;;  %v6436_v17 = vld [vmem:[%s10520_s5 + $0x70] sm:$0xff] }
  0xd7   :  { %7081 = vmatprep.subr.mxu0 %v6436_v17 }
  0xd8   :  { %193 = vst.msk [vmem:[#allocation2 + $0x30] sm:$0xff] %vm181_vm2, %v8576_v34  ;;  %v8580_v36 = vadd.f32 %v175_v32, %v165_v35  ;;  %7082 = vmatpush3.msra.mxu0 %v6436_v17  ;;  %v550_v35 = vld [vmem:[%s10517_s2] sm:$0xff] }
  0xd9   :  { %7083 = vmatprep.subr.mxu0 %v6435_v20 }
  0xda   :  { %192 = vst.msk [vmem:[#allocation2 + $0x28] sm:$0xff] %vm181_vm2, %v8580_v36  ;;  %7084 = vmatpush3.msra.mxu0 %v6435_v20 }
  0xdb   :  { %v203_v39 = vld [vmem:[#allocation2 + $0x12] sm:$0xff]  ;;  %7085 = vmatprep.subr.mxu0 %v6434_v23 }
  0xdc   :  { %v199_v40 = vld [vmem:[#allocation2 + $0x10] sm:$0xff]  ;;  %7086 = vmatpush3.msra.mxu0 %v6434_v23 }
  0xdd   :  { %v202_v37 = vld [vmem:[#allocation2 + $0xa] sm:$0xff]  ;;  %7103 = vmatprep.subr.mxu0 %v8378_v7 }
  0xde   :  { %v198_v38 = vld [vmem:[#allocation2 + $0x8] sm:$0xff]  ;;  %226 = vrot.lane.b32.xlu1 %v202_v37, %s8379_s25 }
  0xdf   :  { %210 = vrot.lane.b32.xlu0 %v198_v38, %s8380_s26  ;;  %v201_v42 = vld [vmem:[#allocation2 + $0x30] sm:$0xff]  ;;  %v194_v47 = vld [vmem:[#allocation2 + $0x6] sm:$0xff] }
  0xe0   :  { %v205_v44 = vld [vmem:[#allocation2 + $0x32] sm:$0xff]  ;;  %v6459_v38 = vld [vmem:[%s10517_s2 + $0x8] sm:$0xff] }
  0xe1   :  { %v200_v41 = vld [vmem:[#allocation2 + $0x28] sm:$0xff] }
  0xe2   :  { %228 = vrot.lane.b32.xlu1 %v203_v39, %s8379_s25  ;;  %v204_v43 = vld [vmem:[#allocation2 + $0x2a] sm:$0xff] }
  0xe3   :  { %212 = vrot.lane.b32.xlu0 %v199_v40, %s8380_s26  ;;  %v195_v52 = vld [vmem:[#allocation2 + $0xe] sm:$0xff]  ;;  %v196_v55 = vld [vmem:[#allocation2 + $0x26] sm:$0xff]  ;;  %v843_v40 = vld [vmem:[%s10526_s11 + $0x18] sm:$0xff] }
  0xe4   :  { %v197_v56 = vld [vmem:[#allocation2 + $0x2e] sm:$0xff] }
  0xe6   :  { %216 = vrot.lane.b32.xlu1 %v201_v42, %s8380_s26 }
  0xe7   :  { %214 = vrot.lane.b32.xlu0 %v200_v41, %s8380_s26 }
  0xea   :  { %232 = vrot.lane.b32.xlu1 %v205_v44, %s8379_s25 }
  0xeb   :  { %230 = vrot.lane.b32.xlu0 %v204_v43, %s8379_s25 }
 0x150   :  { %v227_v45 = vpop.permute.xlu1 %226 }
 0x151   :  { %v211_v46 = vpop.permute.xlu0 %210 }
 0x152   :  { %v238_v48 = vsel %vm181_vm2, %v194_v47, %v211_v46 }
 0x153   :  { %v243_v49 = vsel %vm242_vm3, %v238_v48, %v227_v45 }
 0x154   :  { %7057 = vmatprep.mubr.msk.f32.mxu1 %vm266_vm4, %v243_v49  ;;  %v229_v50 = vpop.permute.xlu1 %228 }
 0x155   :  { %v213_v51 = vpop.permute.xlu0 %212 }
 0x156   :  { %v239_v53 = vsel %vm181_vm2, %v195_v52, %v213_v51 }
 0x157   :  { %v244_v54 = vsel %vm242_vm3, %v239_v53, %v229_v50 }
 0x158   :  { %7058 = vmatmul.mubr.msk.f32.vlgmr.msra.gmra.mxu1 %vm266_vm4, %v244_v54  ;;  %v217_v58 = vpop.permute.xlu1 %216 }
 0x159   :  { %v215_v57 = vpop.permute.xlu0 %214  ;;  %v241_v60 = vsel %vm181_vm2, %v197_v56, %v217_v58 }
 0x15a   :  { %v240_v59 = vsel %vm181_vm2, %v196_v55, %v215_v57 }
 0x15c   :  { %v233_v62 = vpop.permute.xlu1 %232 }
 0x15d   :  { %v231_v61 = vpop.permute.xlu0 %230  ;;  %v246_v0 = vsel %vm242_vm3, %v241_v60, %v233_v62 }
 0x15e   :  { %v245_v63 = vsel %vm242_vm3, %v240_v59, %v231_v61 }
 0x15f   :  { %7060 = vmatprep.mubr.msk.f32.mxu1 %vm266_vm4, %v245_v63  ;;  %v842_v63 = vld [vmem:[%s10526_s11 + $0x10] sm:$0xff] }
 0x160   :  { %7061 = vmatmul.mubr.msk.f32.gmra.mxu1 %vm266_vm4, %v246_v0  ;;  %v841_v0 = vld [vmem:[%s10526_s11 + $0x8] sm:$0xff] }
 0x161   :  { %7095 = vmatprep.mubr.msk.f32.mxu1 %vm8381_vm7, %v8378_v7 }
 0x218   :  { %v7059_v11 = vpop.f32.mrf.mxu1 }
 0x219   :  { %v351_v12 = vadd.f32 %v7059_v11, %v6429_v10 }
 0x21a   :  { %v345_v13 = vpop.f32.mrf.mxu1 }
 0x21b   :  { %v365_v15 = vmax.f32 %v351_v12, 0.0  ;;  %v346_v16 = vadd.f32 %v6429_v10, %v345_v13  ;;  %v637_v12 = vunpack.c.0.s8 %v636_v8 }
 0x21d   :  { %v8639_v18 = vadd.f32 %v365_v15, %v8559_v25  ;;  %v364_v19 = vmax.f32 %v346_v16, 0.0  ;;  %v8723_v14 = vsub.s32 %v637_v12, %v639_v9 }
 0x21f   :  { %373 = vst.msk [vmem:[#allocation2 + $0x10] sm:$0xff] %vm181_vm2, %v8639_v18  ;;  %v368_v21 = vadd.f32 %v364_v19, %v8566_v29 }
 0x220   :  { %v7062_v22 = vpop.f32.mrf.mxu1 }
 0x221   :  { %372 = vst.msk [vmem:[#allocation2 + $0x8] sm:$0xff] %vm181_vm2, %v368_v21  ;;  %v361_v24 = vadd.f32 %v7062_v22, %v6429_v10 }
 0x222   :  { %v355_v25 = vpop.f32.mrf.mxu1 }
 0x223   :  { %v367_v26 = vmax.f32 %v361_v24, 0.0  ;;  %v356_v27 = vadd.f32 %v6429_v10, %v355_v25 }
 0x225   :  { %v8653_v28 = vadd.f32 %v367_v26, %v8576_v34  ;;  %v366_v29 = vmax.f32 %v356_v27, 0.0  ;;  %v548_v34 = vld [vmem:[%s10522_s7] sm:$0xf] }
 0x226   :  { %v381_v30 = vld [vmem:[#allocation2 + $0x10] sm:$0xff]  ;;  %7094 = vmatpush3.msk.msra.mxu1 %vm559_vm5, %v548_v34 }
 0x227   :  { %375 = vst.msk [vmem:[#allocation2 + $0x30] sm:$0xff] %vm181_vm2, %v8653_v28  ;;  %v370_v31 = vadd.f32 %v366_v29, %v8580_v36  ;;  %394 = vrot.lane.b32.xlu1 %v381_v30, %s8380_s26  ;;  %v385_v33 = vld [vmem:[#allocation2 + $0x12] sm:$0xff]  ;;  %7098 = vmatprep.subr.mxu1 %v8378_v7 }
 0x228   :  { %v380_v32 = vld [vmem:[#allocation2 + $0x8] sm:$0xff]  ;;  %7096 = vmatmul.mubr.msk.f32.vlgmr.msra.gmra.mxu1 %vm555_vm6, %v550_v35 }
 0x229   :  { %374 = vst.msk [vmem:[#allocation2 + $0x28] sm:$0xff] %vm181_vm2, %v370_v31  ;;  %392 = vrot.lane.b32.xlu0 %v380_v32, %s8380_s26  ;;  %v384_v36 = vld [vmem:[#allocation2 + $0xa] sm:$0xff]  ;;  %7099 = vmatpush3.msk.msra.mxu1 %vm559_vm5, %v548_v34 }
 0x22a   :  { %7100 = vmatprep.mubr.msk.f32.mxu1 %vm8381_vm7, %v8378_v7  ;;  %7114 = vmatprep.subr.mxu1 %v8378_v7  ;;  %v376_v46 = vld [vmem:[#allocation2 + $0x6] sm:$0xff]  ;;  %v377_v47 = vld [vmem:[#allocation2 + $0xe] sm:$0xff] }
 0x22b   :  { %410 = vrot.lane.b32.xlu1 %v385_v33, %s8379_s25 }
 0x22c   :  { %7101 = vmatmul.mubr.msk.f32.vlgmr.msra.gmra.mxu1 %vm555_vm6, %v6459_v38 }
 0x22d   :  { %408 = vrot.lane.b32.xlu0 %v384_v36, %s8379_s25  ;;  %7115 = vmatpush3.msra.mxu1 %v843_v40 }
 0x22e   :  { %v383_v37 = vld [vmem:[#allocation2 + $0x30] sm:$0xff]  ;;  %7122 = vmatprep.mubr.msk.f32.mxu1 %vm8381_vm7, %v8378_v7  ;;  %7116 = vmatprep.subr.mxu1 %v8378_v7 }
 0x22f   :  { %398 = vrot.lane.b32.xlu1 %v383_v37, %s8380_s26  ;;  %v387_v41 = vld [vmem:[#allocation2 + $0x32] sm:$0xff]  ;;  %7117 = vmatpush3.msra.mxu1 %v842_v63 }
 0x230   :  { %v382_v39 = vld [vmem:[#allocation2 + $0x28] sm:$0xff]  ;;  %7118 = vmatprep.subr.mxu1 %v8378_v7 }
 0x231   :  { %396 = vrot.lane.b32.xlu0 %v382_v39, %s8380_s26  ;;  %v386_v42 = vld [vmem:[#allocation2 + $0x2a] sm:$0xff]  ;;  %7119 = vmatpush3.msra.mxu1 %v841_v0 }
 0x232   :  { %v378_v55 = vld [vmem:[#allocation2 + $0x26] sm:$0xff]  ;;  %v379_v57 = vld [vmem:[#allocation2 + $0x2e] sm:$0xff]  ;;  %7120 = vmatprep.subr.mxu1 %v8378_v7 }
 0x233   :  { %414 = vrot.lane.b32.xlu1 %v387_v41, %s8379_s25  ;;  %7121 = vmatpush3.msra.mxu1 %v840_v1 }
 0x234   :  { %7136 = vmatprep.subr.mxu1 %v8378_v7 }
 0x235   :  { %412 = vrot.lane.b32.xlu0 %v386_v42, %s8379_s25 }
 0x299   :  { %v395_v43 = vpop.permute.xlu1 %394 }
 0x29a   :  { %v421_v50 = vsel %vm181_vm2, %v377_v47, %v395_v43 }
 0x29b   :  { %v393_v44 = vpop.permute.xlu0 %392 }
 0x29c   :  { %v420_v48 = vsel %vm181_vm2, %v376_v46, %v393_v44  ;;  %v6447_v44 = vld [vmem:[%s10521_s6 + $0x1] ss:$0 sm:$0xff] }
 0x29d   :  { %v411_v45 = vpop.permute.xlu1 %410 }
 0x29e   :  { %v425_v52 = vsel %vm242_vm3, %v421_v50, %v411_v45  ;;  %v8744_v50 = vld [vmem:[%s10523_s8 + $0x18] sm:$0xff] }
 0x29f   :  { %v409_v49 = vpop.permute.xlu0 %408 }
 0x2a0   :  { %v424_v51 = vsel %vm242_vm3, %v420_v48, %v409_v49 }
 0x2a1   :  { %v399_v53 = vpop.permute.xlu1 %398  ;;  %7087 = vmatprep.mubr.msk.f32.mxu0 %vm266_vm4, %v424_v51  ;;  %v8750_v51 = vld [vmem:[%s10523_s8 + $0x10] sm:$0xff] }
 0x2a2   :  { %7088 = vmatmul.mubr.msk.f32.vlgmr.msra.gmra.mxu0 %vm266_vm4, %v425_v52  ;;  %v423_v60 = vsel %vm181_vm2, %v379_v57, %v399_v53 }
 0x2a3   :  { %v397_v54 = vpop.permute.xlu0 %396  ;;  %7104 = vmatpush3.msra.mxu0 %v843_v40 }
 0x2a4   :  { %7105 = vmatprep.subr.mxu0 %v8378_v7  ;;  %v422_v58 = vsel %vm181_vm2, %v378_v55, %v397_v54 }
 0x2a5   :  { %v415_v56 = vpop.permute.xlu1 %414  ;;  %7106 = vmatpush3.msra.mxu0 %v842_v63 }
 0x2a6   :  { %v427_v62 = vsel %vm242_vm3, %v423_v60, %v415_v56  ;;  %7107 = vmatprep.subr.mxu0 %v8378_v7  ;;  %v8766_v56 = vld [vmem:[%s10523_s8] sm:$0xff] }
 0x2a7   :  { %v413_v59 = vpop.permute.xlu0 %412  ;;  %7108 = vmatpush3.msra.mxu0 %v841_v0 }
 0x2a8   :  { %v426_v61 = vsel %vm242_vm3, %v422_v58, %v413_v59  ;;  %7109 = vmatprep.subr.mxu0 %v8378_v7 }
 0x2a9   :  { %7090 = vmatprep.mubr.msk.f32.mxu0 %vm266_vm4, %v426_v61  ;;  %7110 = vmatpush3.msra.mxu0 %v840_v1 }
 0x2aa   :  { %7091 = vmatmul.mubr.msk.f32.gmra.mxu0 %vm266_vm4, %v427_v62  ;;  %7125 = vmatprep.subr.mxu0 %v8378_v7 }
 0x2ab   :  { %7111 = vmatprep.mubr.msk.f32.mxu0 %vm8381_vm7, %v8378_v7 }
 0x2e8   :  { %v629_v3 = vpop.f32.mrf.mxu1 }
 0x2e9   :  { %v630_v5 = vadd.f32 %v6452_v2, %v629_v3 }
 0x2ea   :  { %v7097_v10 = vpop.f32.mrf.mxu1 }
 0x2eb   :  { %v634_v11 = vcombine.high %v630_v5, %v630_v5  ;;  %v641_v17 = vrot.slane %v630_v5, %v8723_v14 }
 0x2ec   :  { %v770_v13 = vpop.f32.mrf.mxu1 }
 0x2ed   :  { %v771_v15 = vadd.f32 %v6452_v2, %v770_v13  ;;  %v648_v19 = vrot.slane %v634_v11, %v8723_v14  ;;  %v649_v22 = vcombine.high %v641_v17, %v641_v17  ;;  %v657_v24 = vrot.slane %v641_v17, %v8723_v14  ;;  %6455 = vst.sshfl [vmem:[#allocation3] sm:$0x1 pattern:$0x73625140] %v641_v17 }
 0x2ee   :  { %v7102_v16 = vpop.f32.mrf.mxu1 }
 0x2ef   :  { %v775_v20 = vcombine.high %v771_v15, %v771_v15  ;;  %v782_v21 = vrot.slane %v771_v15, %v8723_v14  ;;  %v650_v23 = vcombine.high %v648_v19, %v648_v19  ;;  %v664_v25 = vrot.slane %v648_v19, %v8723_v14  ;;  %6457 = vst.sshfl [vmem:[#allocation3 + $0x8] sm:$0x1 pattern:$0x73625140] %v648_v19 }
 0x2f0   :  { %v671_v30 = vrot.slane %v649_v22, %v8723_v14  ;;  %v679_v32 = vcombine.high %v657_v24, %v657_v24  ;;  %6456 = vst.sshfl [vmem:[#allocation3 + $0x2] sm:$0x1 pattern:$0x73625140] %v649_v22 }
 0x2f1   :  { %6462 = vst.sshfl [vmem:[#allocation3 + $0x1] sm:$0x1 pattern:$0x73625140] %v782_v21  ;;  %v789_v26 = vrot.slane %v775_v20, %v8723_v14  ;;  %v790_v27 = vcombine.high %v782_v21, %v782_v21  ;;  %v798_v29 = vrot.slane %v782_v21, %v8723_v14  ;;  %v678_v31 = vrot.slane %v650_v23, %v8723_v14 }
 0x2f2   :  { %v680_v33 = vcombine.high %v664_v25, %v664_v25  ;;  %6458 = vst.sshfl [vmem:[#allocation3 + $0xa] sm:$0x1 pattern:$0x73625140] %v650_v23  ;;  %v681_v38 = vcombine.high %v671_v30, %v671_v30  ;;  %693 = vst [vmem:[#allocation3 + $0x4] sm:$0x1] %v679_v32 }
 0x2f3   :  { %v791_v34 = vcombine.high %v789_v26, %v789_v26  ;;  %v805_v35 = vrot.slane %v789_v26, %v8723_v14  ;;  %v812_v36 = vrot.slane %v790_v27, %v8723_v14  ;;  %v820_v37 = vcombine.high %v798_v29, %v798_v29  ;;  %6463 = vst.sshfl [vmem:[#allocation3 + $0x3] sm:$0x1 pattern:$0x73625140] %v790_v27 }
 0x2f4   :  { %6464 = vst.sshfl [vmem:[#allocation3 + $0x9] sm:$0x1 pattern:$0x73625140] %v789_v26  ;;  %v682_v39 = vcombine.high %v678_v31, %v678_v31  ;;  %697 = vst [vmem:[#allocation3 + $0xc] sm:$0x1] %v680_v33 }
 0x2f5   :  { %v819_v40 = vrot.slane %v791_v34, %v8723_v14  ;;  %v821_v41 = vcombine.high %v805_v35, %v805_v35  ;;  %v822_v42 = vcombine.high %v812_v36, %v812_v36  ;;  %834 = vst [vmem:[#allocation3 + $0x5] sm:$0x1] %v820_v37  ;;  %6465 = vst.sshfl [vmem:[#allocation3 + $0xb] sm:$0x1 pattern:$0x73625140] %v791_v34 }
 0x2f6   :  { %694 = vst [vmem:[#allocation3 + $0x6] sm:$0x1] %v681_v38  ;;  %698 = vst [vmem:[#allocation3 + $0xe] sm:$0x1] %v682_v39 }
 0x2f7   :  { %v823_v43 = vcombine.high %v819_v40, %v819_v40  ;;  %835 = vst [vmem:[#allocation3 + $0x7] sm:$0x1] %v822_v42  ;;  %838 = vst [vmem:[#allocation3 + $0xd] sm:$0x1] %v821_v41 }
 0x2f8   :  { %v1150_v6 = vld [vmem:[#allocation3] sm:$0x3] }
 0x2f9   :  { %839 = vst [vmem:[#allocation3 + $0xf] sm:$0x1] %v823_v43  ;;  %v8802_v43 = vld [vmem:[%s10524_s9 + $0x38] sm:$0xff] }
 0x362   :  { %v7089_v45 = vpop.f32.mrf.mxu0 }
 0x363   :  { %v532_v46 = vadd.f32 %v7089_v45, %v6447_v44  ;;  %v8814_v45 = vld [vmem:[%s10524_s9 + $0x28] sm:$0xff] }
 0x364   :  { %v527_v47 = vpop.f32.mrf.mxu0 }
 0x365   :  { %v544_v48 = vmax.f32 %v532_v46, 0.0  ;;  %v8821_v46 = vld [vmem:[%s10524_s9 + $0x20] sm:$0xff]  ;;  %v8828_v47 = vld [vmem:[%s10524_s9 + $0x18] sm:$0xff] }
 0x367   :  { %v546_v49 = vadd.f32 %v544_v48, %v8639_v18  ;;  %v8759_v18 = vld [vmem:[%s10523_s8 + $0x8] sm:$0xff]  ;;  %v8835_v48 = vld [vmem:[%s10524_s9 + $0x10] sm:$0xff] }
 0x369   :  { %7112 = vmatmul.mubr.msk.f32.vlgmr.msra.gmra.mxu0 %vm181_vm2, %v546_v49 }
 0x36a   :  { %7126 = vmatpush3.msra.mxu0 %v8744_v50  ;;  %v7092_v52 = vpop.f32.mrf.mxu0  ;;  %7133 = vmatprep.mubr.msk.f32.mxu0 %vm8381_vm7, %v8378_v7 }
 0x36b   :  { %v541_v53 = vadd.f32 %v7092_v52, %v6447_v44  ;;  %7127 = vmatprep.subr.mxu0 %v8378_v7  ;;  %v8807_v44 = vld [vmem:[%s10524_s9 + $0x30] sm:$0xff]  ;;  %v8842_v52 = vld [vmem:[%s10524_s9 + $0x8] sm:$0xff] }
 0x36c   :  { %7128 = vmatpush3.msra.mxu0 %v8750_v51  ;;  %v536_v54 = vpop.f32.mrf.mxu0 }
 0x36d   :  { %v545_v55 = vmax.f32 %v541_v53, 0.0  ;;  %7129 = vmatprep.subr.mxu0 %v8378_v7  ;;  %v8850_v53 = vld [vmem:[%s10524_s9] sm:$0xff] }
 0x36e   :  { %7130 = vmatpush3.msra.mxu0 %v8759_v18 }
 0x36f   :  { %v547_v57 = vadd.f32 %v545_v55, %v8653_v28  ;;  %7131 = vmatprep.subr.mxu0 %v8378_v7  ;;  %v6466_v28 = vld [vmem:[%s10529_s14] ss:$0 sm:$0xff] }
 0x370   :  { %7132 = vmatpush3.msra.mxu0 %v8766_v56 }
 0x371   :  { %7134 = vmatmul.mubr.f32.vlgmr.msra.gmra.mxu0 %v8378_v7  ;;  %7123 = vmatmul.mubr.msk.f32.vlgmr.msra.gmra.mxu1 %vm181_vm2, %v547_v57 }
 0x372   :  { %7152 = vmatprep.mubr.msk.f32.mxu1 %vm8381_vm7, %v8378_v7  ;;  %7155 = vmatprep.subr.mxu0 %v8378_v7 }
 0x373   :  { %7171 = vmatprep.mubr.msk.f32.mxu0 %vm8381_vm7, %v8378_v7  ;;  %7137 = vmatpush3.msra.mxu1 %v8802_v43 }
 0x374   :  { %7138 = vmatprep.subr.mxu1 %v8378_v7 }
 0x375   :  { %7139 = vmatpush3.msra.mxu1 %v8807_v44 }
 0x376   :  { %7140 = vmatprep.subr.mxu1 %v8378_v7 }
 0x377   :  { %7141 = vmatpush3.msra.mxu1 %v8814_v45 }
 0x378   :  { %7142 = vmatprep.subr.mxu1 %v8378_v7 }
 0x379   :  { %7143 = vmatpush3.msra.mxu1 %v8821_v46 }
 0x37a   :  { %7144 = vmatprep.subr.mxu1 %v8378_v7 }
 0x37b   :  { %7145 = vmatpush3.msra.mxu1 %v8828_v47 }
 0x37c   :  { %7146 = vmatprep.subr.mxu1 %v8378_v7 }
 0x37d   :  { %7147 = vmatpush3.msra.mxu1 %v8835_v48 }
 0x37e   :  { %7148 = vmatprep.subr.mxu1 %v8378_v7 }
 0x37f   :  { %7149 = vmatpush3.msra.mxu1 %v8842_v52 }
 0x380   :  { %7150 = vmatprep.subr.mxu1 %v8378_v7 }
 0x381   :  { %7151 = vmatpush3.msra.mxu1 %v8850_v53 }
 0x382   :  { %7174 = vmatprep.subr.mxu1 %v8378_v7 }
 0x429   :  { %v918_v58 = vpop.f32.mrf.mxu0 }
 0x42a   :  { %v919_v59 = vadd.f32 %v6466_v28, %v918_v58  ;;  %v8875_v58 = vld [vmem:[%s10525_s10 + $0x1] ss:$0 sm:$0xff] }
 0x42b   :  { %v7113_v60 = vpop.f32.mrf.mxu0 }
 0x42c   :  { %v923_v61 = vcombine.high %v919_v59, %v919_v59  ;;  %v930_v62 = vrot.slane %v919_v59, %v8723_v14 }
 0x42e   :  { %v937_v63 = vrot.slane %v923_v61, %v8723_v14  ;;  %v938_v0 = vcombine.high %v930_v62, %v930_v62  ;;  %v946_v1 = vrot.slane %v930_v62, %v8723_v14  ;;  %6468 = vst.sshfl [vmem:[#allocation4] sm:$0x1 pattern:$0x73625140] %v930_v62  ;;  %v1462_v62 = vld [vmem:[#allocation3 + $0x2] sm:$0x3] }
 0x430   :  { %v939_v2 = vcombine.high %v937_v63, %v937_v63  ;;  %v953_v3 = vrot.slane %v937_v63, %v8723_v14  ;;  %v960_v4 = vrot.slane %v938_v0, %v8723_v14  ;;  %v968_v5 = vcombine.high %v946_v1, %v946_v1  ;;  %6469 = vst.sshfl [vmem:[#allocation4 + $0x2] sm:$0x1 pattern:$0x73625140] %v938_v0 }
 0x431   :  { %6470 = vst.sshfl [vmem:[#allocation4 + $0x8] sm:$0x1 pattern:$0x73625140] %v937_v63  ;;  %v1220_v8 = vpop.f32.mrf.mxu0  ;;  %v1057_v9 = vpop.f32.mrf.mxu1 }
 0x432   :  { %v967_v10 = vrot.slane %v939_v2, %v8723_v14  ;;  %v969_v11 = vcombine.high %v953_v3, %v953_v3  ;;  %v970_v12 = vcombine.high %v960_v4, %v960_v4  ;;  %982 = vst [vmem:[#allocation4 + $0x4] sm:$0x1] %v968_v5  ;;  %6471 = vst.sshfl [vmem:[#allocation4 + $0xa] sm:$0x1 pattern:$0x73625140] %v939_v2 }
 0x433   :  { %v1224_v13 = vadd.f32 %v1220_v8, %v1150_v6  ;;  %v1058_v15 = vadd.f32 %v6466_v28, %v1057_v9  ;;  %v7135_v16 = vpop.f32.mrf.mxu0  ;;  %v7124_v17 = vpop.f32.mrf.mxu1 }
 0x434   :  { %v971_v19 = vcombine.high %v967_v10, %v967_v10  ;;  %983 = vst [vmem:[#allocation4 + $0x6] sm:$0x1] %v970_v12  ;;  %986 = vst [vmem:[#allocation4 + $0xc] sm:$0x1] %v969_v11 }
 0x435   :  { %7928 = vtanh.f32 %v1224_v13  ;;  %v1062_v20 = vcombine.high %v1058_v15, %v1058_v15  ;;  %v1069_v21 = vrot.slane %v1058_v15, %v8723_v14  ;;  %v6485_v35 = vmul.f32 -1.442695, %v1224_v13 }
 0x436   :  { %987 = vst [vmem:[#allocation4 + $0xe] sm:$0x1] %v971_v19 }
 0x437   :  { %v1076_v22 = vrot.slane %v1062_v20, %v8723_v14  ;;  %v1077_v23 = vcombine.high %v1069_v21, %v1069_v21  ;;  %v1085_v24 = vrot.slane %v1069_v21, %v8723_v14  ;;  %6473 = vst.sshfl [vmem:[#allocation4 + $0x1] sm:$0x1 pattern:$0x73625140] %v1069_v21  ;;  %7930 = vpow2.f32 %v6485_v35  ;;  %v8950_v35 = vld [vmem:[%s10524_s9 + $0x40] sm:$0xff] }
 0x439   :  { %v1078_v25 = vcombine.high %v1076_v22, %v1076_v22  ;;  %v1092_v26 = vrot.slane %v1076_v22, %v8723_v14  ;;  %v1099_v27 = vrot.slane %v1077_v23, %v8723_v14  ;;  %v1107_v29 = vcombine.high %v1085_v24, %v1085_v24  ;;  %6474 = vst.sshfl [vmem:[#allocation4 + $0x3] sm:$0x1 pattern:$0x73625140] %v1077_v23 }
 0x43a   :  { %6475 = vst.sshfl [vmem:[#allocation4 + $0x9] sm:$0x1 pattern:$0x73625140] %v1076_v22 }
 0x43b   :  { %v1106_v30 = vrot.slane %v1078_v25, %v8723_v14  ;;  %v1108_v31 = vcombine.high %v1092_v26, %v1092_v26  ;;  %v1109_v32 = vcombine.high %v1099_v27, %v1099_v27  ;;  %1121 = vst [vmem:[#allocation4 + $0x5] sm:$0x1] %v1107_v29  ;;  %6476 = vst.sshfl [vmem:[#allocation4 + $0xb] sm:$0x1 pattern:$0x73625140] %v1078_v25 }
 0x43c   :  { %v8892_v25 = vld [vmem:[%s10524_s9 + $0x78] sm:$0xff]  ;;  %v8897_v26 = vld [vmem:[%s10524_s9 + $0x70] sm:$0xff]  ;;  %v8905_v29 = vld [vmem:[%s10524_s9 + $0x68] sm:$0xff] }
 0x43d   :  { %v1110_v33 = vcombine.high %v1106_v30, %v1106_v30  ;;  %1122 = vst [vmem:[#allocation4 + $0x7] sm:$0x1] %v1109_v32  ;;  %1125 = vst [vmem:[#allocation4 + $0xd] sm:$0x1] %v1108_v31  ;;  %7156 = vmatpush3.msra.mxu0 %v8892_v25  ;;  %v8914_v30 = vld [vmem:[%s10524_s9 + $0x60] sm:$0xff]  ;;  %v8923_v31 = vld [vmem:[%s10524_s9 + $0x58] sm:$0xff] }
 0x43e   :  { %7157 = vmatprep.subr.mxu0 %v8378_v7  ;;  %v8932_v32 = vld [vmem:[%s10524_s9 + $0x50] sm:$0xff] }
 0x43f   :  { %1126 = vst [vmem:[#allocation4 + $0xf] sm:$0x1] %v1110_v33  ;;  %7158 = vmatpush3.msra.mxu0 %v8897_v26 }
 0x440   :  { %7159 = vmatprep.subr.mxu0 %v8378_v7 }
 0x441   :  { %7160 = vmatpush3.msra.mxu0 %v8905_v29 }
 0x442   :  { %v7929_v34 = vpop.eup %7928  ;;  %7161 = vmatprep.subr.mxu0 %v8378_v7 }
 0x443   :  { %1234 = vrot.lane.b32.xlu0 %v7929_v34, %s8379_s25  ;;  %7162 = vmatpush3.msra.mxu0 %v8914_v30  ;;  %v8941_v34 = vld [vmem:[%s10524_s9 + $0x48] sm:$0xff] }
 0x444   :  { %v7931_v36 = vpop.eup %7930  ;;  %7163 = vmatprep.subr.mxu0 %v8378_v7 }
 0x445   :  { %v1228_v37 = vadd.f32 1.0, %v7931_v36  ;;  %7164 = vmatpush3.msra.mxu0 %v8923_v31 }
 0x446   :  { %7165 = vmatprep.subr.mxu0 %v8378_v7 }
 0x447   :  { %7932 = vrcp.f32 %v1228_v37  ;;  %7166 = vmatpush3.msra.mxu0 %v8932_v32 }
 0x448   :  { %7167 = vmatprep.subr.mxu0 %v8378_v7 }
 0x449   :  { %7168 = vmatpush3.msra.mxu0 %v8941_v34 }
 0x44a   :  { %7169 = vmatprep.subr.mxu0 %v8378_v7 }
 0x44b   :  { %7170 = vmatpush3.msra.mxu0 %v8950_v35 }
 0x44c   :  { %7185 = vmatprep.subr.mxu0 %v8378_v7 }
 0x454   :  { %v7933_v38 = vpop.eup %7932 }
 0x455   :  { %v1232_v14 = vmul.f32 0.0, %v7933_v38 }
 0x4b5   :  { %v1235_v39 = vpop.permute.xlu0 %1234 }
 0x4b6   :  { %v1237_v40 = vmul.f32 %v7933_v38, %v1235_v39 }
 0x4b8   :  { %1239 = vrot.lane.b32.xlu1 %v1237_v40, %s8380_s26 }
 0x52a   :  { %v1240_v41 = vpop.permute.xlu1 %1239 }
 0x52b   :  { %v8796_v42 = vadd.f32 %v1240_v41, %v1232_v14 }
 0x52d   :  { %7934 = vtanh.f32 %v8796_v42 }
 0x53a   :  { %v7935_v49 = vpop.eup %7934 }
 0x53b   :  { %1245 = vrot.lane.b32.xlu0 %v7935_v49, %s8379_s25 }
 0x5ad   :  { %v1246_v54 = vpop.permute.xlu0 %1245 }
 0x5ae   :  { %v1248_v55 = vmul.f32 %v7933_v38, %v1246_v54  ;;  %v9020_v54 = vld [vmem:[%s10525_s10 + $0x2] ss:$0 sm:$0xff] }
 0x5b0   :  { %1250 = vrot.lane.b32.xlu1 %v1248_v55, %s8380_s26 }
 0x622   :  { %v1251_v57 = vpop.permute.xlu1 %1250 }
 0x623   :  { %v1253_v28 = vsel %vm181_vm2, %v1251_v57, 0.0 }
 0x624   :  { %7153 = vmatmul.mubr.msk.f32.vlgmr.msra.gmra.mxu1 %vm242_vm3, %v1253_v28 }
 0x625   :  { %7175 = vmatpush3.msra.mxu1 %v8744_v50  ;;  %7182 = vmatprep.mubr.msk.f32.mxu1 %vm8381_vm7, %v8378_v7 }
 0x626   :  { %7176 = vmatprep.subr.mxu1 %v8378_v7 }
 0x627   :  { %7177 = vmatpush3.msra.mxu1 %v8750_v51 }
 0x628   :  { %7178 = vmatprep.subr.mxu1 %v8378_v7 }
 0x629   :  { %7179 = vmatpush3.msra.mxu1 %v8759_v18 }
 0x62a   :  { %7180 = vmatprep.subr.mxu1 %v8378_v7 }
 0x62b   :  { %7181 = vmatpush3.msra.mxu1 %v8766_v56 }
 0x62c   :  { %7183 = vmatmul.mubr.msk.f32.vlgmr.msra.gmra.mxu1 %vm181_vm2, %v1251_v57  ;;  %7204 = vmatprep.subr.mxu1 %v8378_v7 }
 0x62d   :  { %7220 = vmatprep.mubr.msk.f32.mxu1 %vm8381_vm7, %v8378_v7  ;;  %7205 = vmatpush3.msra.mxu1 %v8892_v25 }
 0x62e   :  { %7206 = vmatprep.subr.mxu1 %v8378_v7 }
 0x62f   :  { %7207 = vmatpush3.msra.mxu1 %v8897_v26 }
 0x630   :  { %7208 = vmatprep.subr.mxu1 %v8378_v7 }
 0x631   :  { %7209 = vmatpush3.msra.mxu1 %v8905_v29 }
 0x632   :  { %7210 = vmatprep.subr.mxu1 %v8378_v7 }
 0x633   :  { %7211 = vmatpush3.msra.mxu1 %v8914_v30 }
 0x634   :  { %7212 = vmatprep.subr.mxu1 %v8378_v7 }
 0x635   :  { %7213 = vmatpush3.msra.mxu1 %v8923_v31 }
 0x636   :  { %7214 = vmatprep.subr.mxu1 %v8378_v7 }
 0x637   :  { %7215 = vmatpush3.msra.mxu1 %v8932_v32 }
 0x638   :  { %7216 = vmatprep.subr.mxu1 %v8378_v7 }
 0x639   :  { %7217 = vmatpush3.msra.mxu1 %v8941_v34 }
 0x63a   :  { %7218 = vmatprep.subr.mxu1 %v8378_v7 }
 0x63b   :  { %7219 = vmatpush3.msra.mxu1 %v8950_v35 }
 0x63c   :  { %7234 = vmatprep.subr.mxu1 %v8378_v7 }
 0x6e4   :  { %v1327_v59 = vpop.f32.mrf.mxu1 }
 0x6e5   :  { %v1328_v60 = vadd.f32 %v8875_v58, %v1327_v59 }
 0x6e6   :  { %v7154_v61 = vpop.f32.mrf.mxu1 }
 0x6e7   :  { %7936 = vtanh.f32 %v1328_v60  ;;  %v6488_v4 = vmul.f32 -1.442695, %v1328_v60 }
 0x6ec   :  { %v1531_v63 = vpop.f32.mrf.mxu1 }
 0x6ed   :  { %v1535_v0 = vadd.f32 %v1531_v63, %v1462_v62  ;;  %v1772_v63 = vld [vmem:[#allocation3 + $0x4] sm:$0x3] }
 0x6ee   :  { %v7184_v1 = vpop.f32.mrf.mxu1 }
 0x6ef   :  { %7938 = vtanh.f32 %v1535_v0  ;;  %v6493_v5 = vmul.f32 -1.442695, %v1535_v0 }
 0x6f0   :  { %7940 = vpow2.f32 %v6488_v4 }
 0x6f1   :  { %7942 = vpow2.f32 %v6493_v5 }
 0x6f4   :  { %v7937_v2 = vpop.eup %7936 }
 0x6f5   :  { %1340 = vrot.lane.b32.xlu0 %v7937_v2, %s8379_s25 }
 0x6fc   :  { %v7939_v3 = vpop.eup %7938 }
 0x6fd   :  { %1545 = vrot.lane.b32.xlu1 %v7939_v3, %s8379_s25  ;;  %v7941_v6 = vpop.eup %7940 }
 0x6fe   :  { %v1334_v8 = vadd.f32 1.0, %v7941_v6  ;;  %v7943_v9 = vpop.eup %7942 }
 0x6ff   :  { %v1539_v10 = vadd.f32 1.0, %v7943_v9 }
 0x700   :  { %7944 = vrcp.f32 %v1334_v8 }
 0x701   :  { %7946 = vrcp.f32 %v1539_v10 }
 0x70d   :  { %v7945_v11 = vpop.eup %7944 }
 0x70e   :  { %v7947_v15 = vpop.eup %7946  ;;  %v1338_v19 = vmul.f32 0.0, %v7945_v11 }
 0x70f   :  { %v1543_v22 = vmul.f32 %v7947_v15, %v8796_v42 }
 0x767   :  { %v1341_v12 = vpop.permute.xlu0 %1340 }
 0x768   :  { %v1343_v13 = vmul.f32 %v7945_v11, %v1341_v12 }
 0x76a   :  { %1345 = vrot.lane.b32.xlu0 %v1343_v13, %s8380_s26 }
 0x76f   :  { %v1546_v16 = vpop.permute.xlu1 %1545 }
 0x770   :  { %v1548_v17 = vmul.f32 %v7947_v15, %v1546_v16 }
 0x772   :  { %1550 = vrot.lane.b32.xlu1 %v1548_v17, %s8380_s26 }
 0x7dc   :  { %v1346_v20 = vpop.permute.xlu0 %1345 }
 0x7dd   :  { %v8882_v21 = vadd.f32 %v1346_v20, %v1338_v19 }
 0x7df   :  { %7948 = vtanh.f32 %v8882_v21 }
 0x7e4   :  { %v1551_v23 = vpop.permute.xlu1 %1550 }
 0x7e5   :  { %v8886_v24 = vadd.f32 %v1551_v23, %v1543_v22 }
 0x7e7   :  { %7950 = vtanh.f32 %v8886_v24 }
 0x7ec   :  { %v7949_v27 = vpop.eup %7948 }
 0x7ed   :  { %1351 = vrot.lane.b32.xlu0 %v7949_v27, %s8379_s25 }
 0x7f4   :  { %v7951_v33 = vpop.eup %7950 }
 0x7f5   :  { %1556 = vrot.lane.b32.xlu1 %v7951_v33, %s8379_s25 }
 0x85f   :  { %v1352_v36 = vpop.permute.xlu0 %1351 }
 0x860   :  { %v1354_v37 = vmul.f32 %v7945_v11, %v1352_v36 }
 0x862   :  { %1356 = vrot.lane.b32.xlu0 %v1354_v37, %s8380_s26 }
 0x866   :  { %1564 = vrot.lane.b32.xlu0 %v1354_v37, %s8379_s25 }
 0x867   :  { %v1557_v38 = vpop.permute.xlu1 %1556 }
 0x868   :  { %v1559_v39 = vmul.f32 %v7947_v15, %v1557_v38 }
 0x86a   :  { %1561 = vrot.lane.b32.xlu1 %v1559_v39, %s8380_s26 }
 0x8d4   :  { %v1357_v40 = vpop.permute.xlu0 %1356 }
 0x8d5   :  { %v1359_v14 = vsel %vm181_vm2, %v1357_v40, 0.0 }
 0x8d6   :  { %7172 = vmatmul.mubr.msk.f32.vlgmr.msra.gmra.mxu0 %vm242_vm3, %v1359_v14 }
 0x8d7   :  { %7186 = vmatpush3.msra.mxu0 %v8802_v43  ;;  %7201 = vmatprep.mubr.msk.f32.mxu0 %vm8381_vm7, %v8378_v7 }
 0x8d8   :  { %7187 = vmatprep.subr.mxu0 %v8378_v7  ;;  %v1565_v42 = vpop.permute.xlu0 %1564 }
 0x8d9   :  { %7188 = vmatpush3.msra.mxu0 %v8807_v44 }
 0x8da   :  { %7189 = vmatprep.subr.mxu0 %v8378_v7 }
 0x8db   :  { %7190 = vmatpush3.msra.mxu0 %v8814_v45 }
 0x8dc   :  { %7191 = vmatprep.subr.mxu0 %v8378_v7  ;;  %v1562_v41 = vpop.permute.xlu1 %1561 }
 0x8dd   :  { %7192 = vmatpush3.msra.mxu0 %v8821_v46  ;;  %v1567_v49 = vsel %vm181_vm2, %v1562_v41, %v1565_v42 }
 0x8de   :  { %7193 = vmatprep.subr.mxu0 %v8378_v7 }
 0x8df   :  { %7194 = vmatpush3.msra.mxu0 %v8828_v47 }
 0x8e0   :  { %7195 = vmatprep.subr.mxu0 %v8378_v7 }
 0x8e1   :  { %7196 = vmatpush3.msra.mxu0 %v8835_v48 }
 0x8e2   :  { %7197 = vmatprep.subr.mxu0 %v8378_v7 }
 0x8e3   :  { %7198 = vmatpush3.msra.mxu0 %v8842_v52 }
 0x8e4   :  { %7199 = vmatprep.subr.mxu0 %v8378_v7 }
 0x8e5   :  { %7200 = vmatpush3.msra.mxu0 %v8850_v53 }
 0x8e6   :  { %7202 = vmatmul.mubr.msk.f32.vlgmr.msra.gmra.mxu0 %vm242_vm3, %v1567_v49  ;;  %7223 = vmatprep.subr.mxu0 %v8378_v7 }
 0x8e7   :  { %7224 = vmatpush3.msra.mxu0 %v8744_v50  ;;  %7231 = vmatprep.mubr.msk.f32.mxu0 %vm8381_vm7, %v8378_v7 }
 0x8e8   :  { %7225 = vmatprep.subr.mxu0 %v8378_v7 }
 0x8e9   :  { %7226 = vmatpush3.msra.mxu0 %v8750_v51 }
 0x8ea   :  { %7227 = vmatprep.subr.mxu0 %v8378_v7 }
 0x8eb   :  { %7228 = vmatpush3.msra.mxu0 %v8759_v18 }
 0x8ec   :  { %7229 = vmatprep.subr.mxu0 %v8378_v7 }
 0x8ed   :  { %7230 = vmatpush3.msra.mxu0 %v8766_v56 }
 0x8ee   :  { %7232 = vmatmul.mubr.msk.f32.vlgmr.msra.gmra.mxu0 %vm181_vm2, %v1562_v41  ;;  %7253 = vmatprep.subr.mxu0 %v8378_v7 }
 0x8ef   :  { %7254 = vmatpush3.msra.mxu0 %v8892_v25  ;;  %7269 = vmatprep.mubr.msk.f32.mxu0 %vm8381_vm7, %v8378_v7 }
 0x8f0   :  { %7255 = vmatprep.subr.mxu0 %v8378_v7 }
 0x8f1   :  { %7256 = vmatpush3.msra.mxu0 %v8897_v26 }
 0x8f2   :  { %7257 = vmatprep.subr.mxu0 %v8378_v7 }
 0x8f3   :  { %7258 = vmatpush3.msra.mxu0 %v8905_v29 }
 0x8f4   :  { %7259 = vmatprep.subr.mxu0 %v8378_v7 }
 0x8f5   :  { %7260 = vmatpush3.msra.mxu0 %v8914_v30 }
 0x8f6   :  { %7261 = vmatprep.subr.mxu0 %v8378_v7 }
 0x8f7   :  { %7262 = vmatpush3.msra.mxu0 %v8923_v31 }
 0x8f8   :  { %7263 = vmatprep.subr.mxu0 %v8378_v7 }
 0x8f9   :  { %7264 = vmatpush3.msra.mxu0 %v8932_v32 }
 0x8fa   :  { %7265 = vmatprep.subr.mxu0 %v8378_v7 }
 0x8fb   :  { %7266 = vmatpush3.msra.mxu0 %v8941_v34 }
 0x8fc   :  { %7267 = vmatprep.subr.mxu0 %v8378_v7 }
 0x8fd   :  { %7268 = vmatpush3.msra.mxu0 %v8950_v35 }
 0x8fe   :  { %7283 = vmatprep.subr.mxu0 %v8378_v7 }
 0x996   :  { %v1433_v55 = vpop.f32.mrf.mxu0 }
 0x997   :  { %v1434_v57 = vadd.f32 %v9020_v54, %v1433_v55 }
 0x998   :  { %v7173_v28 = vpop.f32.mrf.mxu0 }
 0x999   :  { %7952 = vtanh.f32 %v1434_v57  ;;  %v6491_v5 = vmul.f32 -1.442695, %v1434_v57 }
 0x9a6   :  { %v7953_v59 = vpop.eup %7952  ;;  %v1637_v60 = vpop.f32.mrf.mxu0 }
 0x9a7   :  { %v1638_v61 = vadd.f32 %v8875_v58, %v1637_v60  ;;  %1446 = vrot.lane.b32.xlu1 %v7953_v59, %s8379_s25 }
 0x9a8   :  { %v7203_v62 = vpop.f32.mrf.mxu0 }
 0x9a9   :  { %7954 = vtanh.f32 %v1638_v61  ;;  %v6495_v6 = vmul.f32 -1.442695, %v1638_v61 }
 0x9ae   :  { %v1841_v0 = vpop.f32.mrf.mxu0 }
 0x9af   :  { %v1845_v1 = vadd.f32 %v1841_v0, %v1772_v63 }
 0x9b0   :  { %v7233_v2 = vpop.f32.mrf.mxu0 }
 0x9b1   :  { %7956 = vtanh.f32 %v1845_v1  ;;  %v6499_v10 = vmul.f32 -1.442695, %v1845_v1 }
 0x9b2   :  { %7958 = vpow2.f32 %v6491_v5 }
 0x9b3   :  { %7960 = vpow2.f32 %v6495_v6 }
 0x9b6   :  { %v7955_v3 = vpop.eup %7954 }
 0x9b7   :  { %1650 = vrot.lane.b32.xlu0 %v7955_v3, %s8379_s25 }
 0x9be   :  { %v7957_v4 = vpop.eup %7956 }
 0x9bf   :  { %1855 = vrot.lane.b32.xlu1 %v7957_v4, %s8379_s25  ;;  %v7959_v8 = vpop.eup %7958 }
 0x9c0   :  { %v1440_v9 = vadd.f32 1.0, %v7959_v8  ;;  %v7961_v11 = vpop.eup %7960 }
 0x9c1   :  { %v1644_v12 = vadd.f32 1.0, %v7961_v11 }
 0x9c2   :  { %7962 = vrcp.f32 %v1440_v9 }
 0x9c3   :  { %7964 = vpow2.f32 %v6499_v10 }
 0x9c4   :  { %7966 = vrcp.f32 %v1644_v12 }
 0x9cf   :  { %v7963_v13 = vpop.eup %7962 }
 0x9d0   :  { %v7965_v17 = vpop.eup %7964  ;;  %v1444_v37 = vmul.f32 0.0, %v7963_v13 }
 0x9d1   :  { %v1849_v19 = vadd.f32 1.0, %v7965_v17  ;;  %v7967_v20 = vpop.eup %7966 }
 0x9d2   :  { %v1648_v40 = vmul.f32 %v7967_v20, %v8882_v21 }
 0x9d3   :  { %7968 = vrcp.f32 %v1849_v19 }
 0x9e0   :  { %v7969_v27 = vpop.eup %7968 }
 0x9e1   :  { %v1853_v49 = vmul.f32 %v7969_v27, %v8886_v24 }
 0xa19   :  { %v1447_v15 = vpop.permute.xlu1 %1446 }
 0xa1a   :  { %v1449_v16 = vmul.f32 %v7963_v13, %v1447_v15  ;;  %v2082_v15 = vld [vmem:[#allocation3 + $0x6] sm:$0x3] }
 0xa1c   :  { %1451 = vrot.lane.b32.xlu0 %v1449_v16, %s8380_s26 }
 0xa29   :  { %v1651_v22 = vpop.permute.xlu0 %1650 }
 0xa2a   :  { %v1653_v23 = vmul.f32 %v7967_v20, %v1651_v22 }
 0xa2c   :  { %1655 = vrot.lane.b32.xlu1 %v1653_v23, %s8380_s26 }
 0xa31   :  { %v1856_v33 = vpop.permute.xlu1 %1855 }
 0xa32   :  { %v1858_v36 = vmul.f32 %v7969_v27, %v1856_v33 }
 0xa34   :  { %1860 = vrot.lane.b32.xlu0 %v1858_v36, %s8380_s26 }
 0xa8e   :  { %v1452_v38 = vpop.permute.xlu0 %1451 }
 0xa8f   :  { %v9030_v39 = vadd.f32 %v1452_v38, %v1444_v37 }
 0xa91   :  { %7970 = vtanh.f32 %v9030_v39 }
 0xa9e   :  { %v7971_v14 = vpop.eup %7970  ;;  %v1656_v41 = vpop.permute.xlu1 %1655 }
 0xa9f   :  { %v9034_v42 = vadd.f32 %v1656_v41, %v1648_v40  ;;  %1457 = vrot.lane.b32.xlu1 %v7971_v14, %s8379_s25 }
 0xaa1   :  { %7972 = vtanh.f32 %v9034_v42 }
 0xaa6   :  { %v1861_v55 = vpop.permute.xlu0 %1860 }
 0xaa7   :  { %v9039_v57 = vadd.f32 %v1861_v55, %v1853_v49 }
 0xaa9   :  { %7974 = vtanh.f32 %v9039_v57 }
 0xaae   :  { %v7973_v28 = vpop.eup %7972 }
 0xaaf   :  { %1661 = vrot.lane.b32.xlu0 %v7973_v28, %s8379_s25 }
 0xab6   :  { %v7975_v59 = vpop.eup %7974 }
 0xab7   :  { %1866 = vrot.lane.b32.xlu1 %v7975_v59, %s8379_s25 }
 0xb11   :  { %v1458_v21 = vpop.permute.xlu1 %1457 }
 0xb12   :  { %v1460_v60 = vmul.f32 %v7963_v13, %v1458_v21 }
 0xb14   :  { %1670 = vrot.lane.b32.xlu1 %v1460_v60, %s8379_s25 }
 0xb21   :  { %v1662_v61 = vpop.permute.xlu0 %1661 }
 0xb22   :  { %v1664_v62 = vmul.f32 %v7967_v20, %v1662_v61 }
 0xb24   :  { %1666 = vrot.lane.b32.xlu0 %v1664_v62, %s8380_s26  ;;  %1874 = vrot.lane.b32.xlu1 %v1664_v62, %s8379_s25 }
 0xb29   :  { %v1867_v24 = vpop.permute.xlu1 %1866 }
 0xb2a   :  { %v1869_v63 = vmul.f32 %v7969_v27, %v1867_v24 }
 0xb2c   :  { %1871 = vrot.lane.b32.xlu0 %v1869_v63, %s8380_s26 }
 0xb86   :  { %v1671_v0 = vpop.permute.xlu1 %1670 }
 0xb96   :  { %v1667_v1 = vpop.permute.xlu0 %1666  ;;  %v1875_v4 = vpop.permute.xlu1 %1874 }
 0xb97   :  { %v1673_v2 = vsel %vm181_vm2, %v1667_v1, %v1671_v0 }
 0xb98   :  { %7221 = vmatmul.mubr.msk.f32.vlgmr.msra.gmra.mxu1 %vm242_vm3, %v1673_v2 }
 0xb99   :  { %7235 = vmatpush3.msra.mxu1 %v8802_v43  ;;  %7250 = vmatprep.mubr.msk.f32.mxu1 %vm8381_vm7, %v8378_v7 }
 0xb9a   :  { %7236 = vmatprep.subr.mxu1 %v8378_v7 }
 0xb9b   :  { %7237 = vmatpush3.msra.mxu1 %v8807_v44 }
 0xb9c   :  { %7238 = vmatprep.subr.mxu1 %v8378_v7 }
 0xb9d   :  { %7239 = vmatpush3.msra.mxu1 %v8814_v45 }
 0xb9e   :  { %7240 = vmatprep.subr.mxu1 %v8378_v7  ;;  %v1872_v3 = vpop.permute.xlu0 %1871 }
 0xb9f   :  { %7241 = vmatpush3.msra.mxu1 %v8821_v46  ;;  %v1877_v5 = vsel %vm181_vm2, %v1872_v3, %v1875_v4 }
 0xba0   :  { %7242 = vmatprep.subr.mxu1 %v8378_v7 }
 0xba1   :  { %7243 = vmatpush3.msra.mxu1 %v8828_v47 }
 0xba2   :  { %7244 = vmatprep.subr.mxu1 %v8378_v7 }
 0xba3   :  { %7245 = vmatpush3.msra.mxu1 %v8835_v48 }
 0xba4   :  { %7246 = vmatprep.subr.mxu1 %v8378_v7 }
 0xba5   :  { %7247 = vmatpush3.msra.mxu1 %v8842_v52 }
 0xba6   :  { %7248 = vmatprep.subr.mxu1 %v8378_v7 }
 0xba7   :  { %7249 = vmatpush3.msra.mxu1 %v8850_v53 }
 0xba8   :  { %7251 = vmatmul.mubr.msk.f32.vlgmr.msra.gmra.mxu1 %vm242_vm3, %v1877_v5  ;;  %7272 = vmatprep.subr.mxu1 %v8378_v7 }
 0xba9   :  { %7273 = vmatpush3.msra.mxu1 %v8744_v50  ;;  %7280 = vmatprep.mubr.msk.f32.mxu1 %vm8381_vm7, %v8378_v7 }
 0xbaa   :  { %7274 = vmatprep.subr.mxu1 %v8378_v7 }
 0xbab   :  { %7275 = vmatpush3.msra.mxu1 %v8750_v51 }
 0xbac   :  { %7276 = vmatprep.subr.mxu1 %v8378_v7 }
 0xbad   :  { %7277 = vmatpush3.msra.mxu1 %v8759_v18 }
 0xbae   :  { %7278 = vmatprep.subr.mxu1 %v8378_v7 }
 0xbaf   :  { %7279 = vmatpush3.msra.mxu1 %v8766_v56 }
 0xbb0   :  { %7281 = vmatmul.mubr.msk.f32.vlgmr.msra.gmra.mxu1 %vm181_vm2, %v1872_v3  ;;  %7302 = vmatprep.subr.mxu1 %v8378_v7 }
 0xbb1   :  { %7303 = vmatpush3.msra.mxu1 %v8892_v25  ;;  %7318 = vmatprep.mubr.msk.f32.mxu1 %vm8381_vm7, %v8378_v7 }
 0xbb2   :  { %7304 = vmatprep.subr.mxu1 %v8378_v7 }
 0xbb3   :  { %7305 = vmatpush3.msra.mxu1 %v8897_v26 }
 0xbb4   :  { %7306 = vmatprep.subr.mxu1 %v8378_v7 }
 0xbb5   :  { %7307 = vmatpush3.msra.mxu1 %v8905_v29 }
 0xbb6   :  { %7308 = vmatprep.subr.mxu1 %v8378_v7 }
 0xbb7   :  { %7309 = vmatpush3.msra.mxu1 %v8914_v30 }
 0xbb8   :  { %7310 = vmatprep.subr.mxu1 %v8378_v7 }
 0xbb9   :  { %7311 = vmatpush3.msra.mxu1 %v8923_v31 }
 0xbba   :  { %7312 = vmatprep.subr.mxu1 %v8378_v7 }
 0xbbb   :  { %7313 = vmatpush3.msra.mxu1 %v8932_v32 }
 0xbbc   :  { %7314 = vmatprep.subr.mxu1 %v8378_v7 }
 0xbbd   :  { %7315 = vmatpush3.msra.mxu1 %v8941_v34 }
 0xbbe   :  { %7316 = vmatprep.subr.mxu1 %v8378_v7 }
 0xbbf   :  { %7317 = vmatpush3.msra.mxu1 %v8950_v35 }
 0xbc0   :  { %7332 = vmatprep.subr.mxu1 %v8378_v7 }
 0xc58   :  { %v1743_v6 = vpop.f32.mrf.mxu1 }
 0xc59   :  { %v1744_v8 = vadd.f32 %v9020_v54, %v1743_v6 }
 0xc5a   :  { %v7222_v9 = vpop.f32.mrf.mxu1 }
 0xc5b   :  { %7976 = vtanh.f32 %v1744_v8  ;;  %v6497_v23 = vmul.f32 -1.442695, %v1744_v8 }
 0xc68   :  { %v7977_v10 = vpop.eup %7976  ;;  %v1947_v11 = vpop.f32.mrf.mxu1 }
 0xc69   :  { %v1948_v12 = vadd.f32 %v8875_v58, %v1947_v11  ;;  %1756 = vrot.lane.b32.xlu0 %v7977_v10, %s8379_s25 }
 0xc6a   :  { %v7252_v13 = vpop.f32.mrf.mxu1 }
 0xc6b   :  { %7978 = vtanh.f32 %v1948_v12  ;;  %v6501_v27 = vmul.f32 -1.442695, %v1948_v12 }
 0xc70   :  { %v2151_v16 = vpop.f32.mrf.mxu1 }
 0xc71   :  { %v2155_v17 = vadd.f32 %v2151_v16, %v2082_v15 }
 0xc72   :  { %v7282_v19 = vpop.f32.mrf.mxu1 }
 0xc73   :  { %7980 = vtanh.f32 %v2155_v17  ;;  %v6505_v37 = vmul.f32 -1.442695, %v2155_v17 }
 0xc74   :  { %7982 = vpow2.f32 %v6497_v23 }
 0xc75   :  { %7984 = vpow2.f32 %v6501_v27 }
 0xc78   :  { %v7979_v20 = vpop.eup %7978 }
 0xc79   :  { %1960 = vrot.lane.b32.xlu1 %v7979_v20, %s8379_s25 }
 0xc80   :  { %v7981_v22 = vpop.eup %7980 }
 0xc81   :  { %2165 = vrot.lane.b32.xlu0 %v7981_v22, %s8379_s25  ;;  %v7983_v33 = vpop.eup %7982 }
 0xc82   :  { %v1750_v36 = vadd.f32 1.0, %v7983_v33  ;;  %v7985_v38 = vpop.eup %7984 }
 0xc83   :  { %v1954_v40 = vadd.f32 1.0, %v7985_v38 }
 0xc84   :  { %7986 = vrcp.f32 %v1750_v36 }
 0xc85   :  { %7988 = vpow2.f32 %v6505_v37 }
 0xc86   :  { %7990 = vrcp.f32 %v1954_v40 }
 0xc91   :  { %v7987_v14 = vpop.eup %7986 }
 0xc92   :  { %v7989_v55 = vpop.eup %7988  ;;  %v1754_v63 = vmul.f32 %v7987_v14, %v9030_v39 }
 0xc93   :  { %v2159_v28 = vadd.f32 1.0, %v7989_v55  ;;  %v7991_v59 = vpop.eup %7990 }
 0xc94   :  { %v1958_v2 = vmul.f32 %v7991_v59, %v9034_v42 }
 0xc95   :  { %7992 = vrcp.f32 %v2159_v28 }
 0xca2   :  { %v7993_v61 = vpop.eup %7992 }
 0xca3   :  { %v2163_v6 = vmul.f32 %v7993_v61, %v9039_v57 }
 0xcdb   :  { %v1757_v41 = vpop.permute.xlu0 %1756 }
 0xcdc   :  { %v1759_v49 = vmul.f32 %v7987_v14, %v1757_v41 }
 0xcde   :  { %1761 = vrot.lane.b32.xlu1 %v1759_v49, %s8380_s26 }
 0xceb   :  { %v1961_v21 = vpop.permute.xlu1 %1960 }
 0xcec   :  { %v1963_v60 = vmul.f32 %v7991_v59, %v1961_v21 }
 0xcee   :  { %1965 = vrot.lane.b32.xlu0 %v1963_v60, %s8380_s26 }
 0xcf3   :  { %v2166_v62 = vpop.permute.xlu0 %2165 }
 0xcf4   :  { %v2168_v24 = vmul.f32 %v7993_v61, %v2166_v62 }
 0xcf6   :  { %2170 = vrot.lane.b32.xlu1 %v2168_v24, %s8380_s26 }
 0xd50   :  { %v1762_v0 = vpop.permute.xlu1 %1761 }
 0xd51   :  { %v9108_v1 = vadd.f32 %v1762_v0, %v1754_v63 }
 0xd53   :  { %7994 = vtanh.f32 %v9108_v1 }
 0xd60   :  { %v7995_v3 = vpop.eup %7994  ;;  %v1966_v4 = vpop.permute.xlu0 %1965 }
 0xd61   :  { %v9112_v5 = vadd.f32 %v1966_v4, %v1958_v2  ;;  %1767 = vrot.lane.b32.xlu0 %v7995_v3, %s8379_s25 }
 0xd63   :  { %7996 = vtanh.f32 %v9112_v5 }
 0xd68   :  { %v2171_v8 = vpop.permute.xlu1 %2170 }
 0xd69   :  { %v9117_v9 = vadd.f32 %v2171_v8, %v2163_v6 }
 0xd6b   :  { %7998 = vtanh.f32 %v9117_v9 }
 0xd70   :  { %v7997_v39 = vpop.eup %7996 }
 0xd71   :  { %1971 = vrot.lane.b32.xlu1 %v7997_v39, %s8379_s25 }
 0xd78   :  { %v7999_v10 = vpop.eup %7998 }
 0xd79   :  { %2176 = vrot.lane.b32.xlu0 %v7999_v10, %s8379_s25 }
 0xdd3   :  { %v1768_v42 = vpop.permute.xlu0 %1767 }
 0xdd4   :  { %v1770_v11 = vmul.f32 %v7987_v14, %v1768_v42 }
 0xdd6   :  { %1980 = vrot.lane.b32.xlu0 %v1770_v11, %s8379_s25 }
 0xde3   :  { %v1972_v12 = vpop.permute.xlu1 %1971 }
 0xde4   :  { %v1974_v13 = vmul.f32 %v7991_v59, %v1972_v12 }
 0xde6   :  { %1976 = vrot.lane.b32.xlu1 %v1974_v13, %s8380_s26  ;;  %2184 = vrot.lane.b32.xlu0 %v1974_v13, %s8379_s25 }
 0xdeb   :  { %v2177_v57 = vpop.permute.xlu0 %2176 }
 0xdec   :  { %v2179_v15 = vmul.f32 %v7993_v61, %v2177_v57 }
 0xdee   :  { %2181 = vrot.lane.b32.xlu1 %v2179_v15, %s8380_s26 }
 0xe48   :  { %v1981_v16 = vpop.permute.xlu0 %1980 }
 0xe58   :  { %v1977_v17 = vpop.permute.xlu1 %1976 }
 0xe59   :  { %v1983_v19 = vsel %vm181_vm2, %v1977_v17, %v1981_v16 }
 0xe5a   :  { %7270 = vmatmul.mubr.msk.f32.vlgmr.msra.gmra.mxu0 %vm242_vm3, %v1983_v19 }
 0xe5b   :  { %7284 = vmatpush3.msra.mxu0 %v8802_v43  ;;  %7299 = vmatprep.mubr.msk.f32.mxu0 %vm8381_vm7, %v8378_v7 }
 0xe5c   :  { %7285 = vmatprep.subr.mxu0 %v8378_v7 }
 0xe5d   :  { %7286 = vmatpush3.msra.mxu0 %v8807_v44  ;;  %v2185_v44 = vpop.permute.xlu0 %2184 }
 0xe5e   :  { %7287 = vmatprep.subr.mxu0 %v8378_v7 }
 0xe5f   :  { %7288 = vmatpush3.msra.mxu0 %v8814_v45 }
 0xe60   :  { %7289 = vmatprep.subr.mxu0 %v8378_v7  ;;  %v2182_v43 = vpop.permute.xlu1 %2181 }
 0xe61   :  { %7290 = vmatpush3.msra.mxu0 %v8821_v46  ;;  %v2187_v45 = vsel %vm181_vm2, %v2182_v43, %v2185_v44  ;;  %v9209_v44 = vld [vmem:[%s10524_s9 + $0x38] sm:$0xff] }
 0xe62   :  { %7291 = vmatprep.subr.mxu0 %v8378_v7 }
 0xe63   :  { %7292 = vmatpush3.msra.mxu0 %v8828_v47 }
 0xe64   :  { %7293 = vmatprep.subr.mxu0 %v8378_v7 }
 0xe65   :  { %7294 = vmatpush3.msra.mxu0 %v8835_v48 }
 0xe66   :  { %7295 = vmatprep.subr.mxu0 %v8378_v7 }
 0xe67   :  { %7296 = vmatpush3.msra.mxu0 %v8842_v52  ;;  %v2392_v52 = vld [vmem:[#allocation3 + $0x8] sm:$0x3] }
 0xe68   :  { %7297 = vmatprep.subr.mxu0 %v8378_v7 }
 0xe69   :  { %7298 = vmatpush3.msra.mxu0 %v8850_v53 }
 0xe6a   :  { %7300 = vmatmul.mubr.msk.f32.vlgmr.msra.gmra.mxu0 %vm242_vm3, %v2187_v45  ;;  %7321 = vmatprep.subr.mxu0 %v8378_v7  ;;  %v9218_v45 = vld [vmem:[%s10524_s9 + $0x30] sm:$0xff] }
 0xe6b   :  { %7322 = vmatpush3.msra.mxu0 %v8744_v50  ;;  %7329 = vmatprep.mubr.msk.f32.mxu0 %vm8381_vm7, %v8378_v7 }
 0xe6c   :  { %7323 = vmatprep.subr.mxu0 %v8378_v7 }
 0xe6d   :  { %7324 = vmatpush3.msra.mxu0 %v8750_v51 }
 0xe6e   :  { %7325 = vmatprep.subr.mxu0 %v8378_v7 }
 0xe6f   :  { %7326 = vmatpush3.msra.mxu0 %v8759_v18 }
 0xe70   :  { %7327 = vmatprep.subr.mxu0 %v8378_v7 }
 0xe71   :  { %7328 = vmatpush3.msra.mxu0 %v8766_v56 }
 0xe72   :  { %7330 = vmatmul.mubr.msk.f32.vlgmr.msra.gmra.mxu0 %vm181_vm2, %v2182_v43  ;;  %7351 = vmatprep.subr.mxu0 %v8378_v7 }
 0xe73   :  { %7352 = vmatpush3.msra.mxu0 %v8892_v25  ;;  %7367 = vmatprep.mubr.msk.f32.mxu0 %vm8381_vm7, %v8378_v7 }
 0xe74   :  { %7353 = vmatprep.subr.mxu0 %v8378_v7 }
 0xe75   :  { %7354 = vmatpush3.msra.mxu0 %v8897_v26 }
 0xe76   :  { %7355 = vmatprep.subr.mxu0 %v8378_v7 }
 0xe77   :  { %7356 = vmatpush3.msra.mxu0 %v8905_v29 }
 0xe78   :  { %7357 = vmatprep.subr.mxu0 %v8378_v7 }
 0xe79   :  { %7358 = vmatpush3.msra.mxu0 %v8914_v30 }
 0xe7a   :  { %7359 = vmatprep.subr.mxu0 %v8378_v7 }
 0xe7b   :  { %7360 = vmatpush3.msra.mxu0 %v8923_v31 }
 0xe7c   :  { %7361 = vmatprep.subr.mxu0 %v8378_v7 }
 0xe7d   :  { %7362 = vmatpush3.msra.mxu0 %v8932_v32 }
 0xe7e   :  { %7363 = vmatprep.subr.mxu0 %v8378_v7 }
 0xe7f   :  { %7364 = vmatpush3.msra.mxu0 %v8941_v34 }
 0xe80   :  { %7365 = vmatprep.subr.mxu0 %v8378_v7 }
 0xe81   :  { %7366 = vmatpush3.msra.mxu0 %v8950_v35 }
 0xe82   :  { %7381 = vmatprep.subr.mxu0 %v8378_v7 }
 0xf1a   :  { %v2053_v50 = vpop.f32.mrf.mxu0 }
 0xf1b   :  { %v2054_v51 = vadd.f32 %v9020_v54, %v2053_v50  ;;  %v9225_v50 = vld [vmem:[%s10524_s9 + $0x28] sm:$0xff] }
 0xf1c   :  { %v7271_v18 = vpop.f32.mrf.mxu0 }
 0xf1d   :  { %8000 = vtanh.f32 %v2054_v51  ;;  %v6503_v33 = vmul.f32 -1.442695, %v2054_v51  ;;  %v9232_v51 = vld [vmem:[%s10524_s9 + $0x20] sm:$0xff]  ;;  %v9239_v18 = vld [vmem:[%s10524_s9 + $0x18] sm:$0xff] }
 0xf2a   :  { %v8001_v56 = vpop.eup %8000  ;;  %v2257_v46 = vpop.f32.mrf.mxu0 }
 0xf2b   :  { %v2258_v47 = vadd.f32 %v8875_v58, %v2257_v46  ;;  %2066 = vrot.lane.b32.xlu1 %v8001_v56, %s8379_s25  ;;  %v9246_v56 = vld [vmem:[%s10524_s9 + $0x10] sm:$0xff] }
 0xf2c   :  { %v7301_v48 = vpop.f32.mrf.mxu0 }
 0xf2d   :  { %8002 = vtanh.f32 %v2258_v47  ;;  %v6507_v36 = vmul.f32 -1.442695, %v2258_v47  ;;  %v9253_v47 = vld [vmem:[%s10524_s9 + $0x8] sm:$0xff] }
 0xf32   :  { %v2461_v53 = vpop.f32.mrf.mxu0 }
 0xf33   :  { %v2465_v20 = vadd.f32 %v2461_v53, %v2392_v52  ;;  %v9261_v53 = vld [vmem:[%s10524_s9] sm:$0xff] }
 0xf34   :  { %v7331_v22 = vpop.f32.mrf.mxu0 }
 0xf35   :  { %8004 = vtanh.f32 %v2465_v20  ;;  %v6511_v38 = vmul.f32 -1.442695, %v2465_v20  ;;  %v9269_v20 = vld [vmem:[%s10523_s8 + $0x18] sm:$0xff]  ;;  %v9278_v22 = vld [vmem:[%s10523_s8 + $0x10] sm:$0xff] }
 0xf36   :  { %8006 = vpow2.f32 %v6503_v33 }
 0xf37   :  { %8008 = vpow2.f32 %v6507_v36 }
 0xf3a   :  { %v8003_v23 = vpop.eup %8002 }
 0xf3b   :  { %2270 = vrot.lane.b32.xlu0 %v8003_v23, %s8379_s25  ;;  %v9285_v23 = vld [vmem:[%s10523_s8 + $0x8] sm:$0xff] }
 0xf42   :  { %v8005_v27 = vpop.eup %8004 }
 0xf43   :  { %2475 = vrot.lane.b32.xlu1 %v8005_v27, %s8379_s25  ;;  %v8007_v37 = vpop.eup %8006  ;;  %v9292_v27 = vld [vmem:[%s10523_s8] sm:$0xff] }
 0xf44   :  { %v2060_v58 = vadd.f32 1.0, %v8007_v37  ;;  %v8009_v40 = vpop.eup %8008 }
 0xf45   :  { %v2264_v14 = vadd.f32 1.0, %v8009_v40 }
 0xf46   :  { %8010 = vrcp.f32 %v2060_v58 }
 0xf47   :  { %8012 = vpow2.f32 %v6511_v38 }
 0xf48   :  { %8014 = vrcp.f32 %v2264_v14 }
 0xf53   :  { %v8011_v41 = vpop.eup %8010 }
 0xf54   :  { %v8013_v28 = vpop.eup %8012  ;;  %v2064_v0 = vmul.f32 %v8011_v41, %v9108_v1 }
 0xf55   :  { %v2469_v59 = vadd.f32 1.0, %v8013_v28  ;;  %v8015_v21 = vpop.eup %8014 }
 0xf56   :  { %v2268_v4 = vmul.f32 %v8015_v21, %v9112_v5 }
 0xf57   :  { %8016 = vrcp.f32 %v2469_v59 }
 0xf64   :  { %v8017_v62 = vpop.eup %8016 }
 0xf65   :  { %v2473_v10 = vmul.f32 %v8017_v62, %v9117_v9 }
 0xf9d   :  { %v2067_v49 = vpop.permute.xlu1 %2066 }
 0xf9e   :  { %v2069_v55 = vmul.f32 %v8011_v41, %v2067_v49 }
 0xfa0   :  { %2071 = vrot.lane.b32.xlu0 %v2069_v55, %s8380_s26 }
 0xfad   :  { %v2271_v60 = vpop.permute.xlu0 %2270 }
 0xfae   :  { %v2273_v61 = vmul.f32 %v8015_v21, %v2271_v60 }
 0xfb0   :  { %2275 = vrot.lane.b32.xlu1 %v2273_v61, %s8380_s26 }
 0xfb5   :  { %v2476_v24 = vpop.permute.xlu1 %2475 }
 0xfb6   :  { %v2478_v63 = vmul.f32 %v8017_v62, %v2476_v24 }
 0xfb8   :  { %2480 = vrot.lane.b32.xlu0 %v2478_v63, %s8380_s26 }
0x1012   :  { %v2072_v2 = vpop.permute.xlu0 %2071 }
0x1013   :  { %v9186_v3 = vadd.f32 %v2072_v2, %v2064_v0 }
0x1015   :  { %8018 = vtanh.f32 %v9186_v3 }
0x1022   :  { %v8019_v6 = vpop.eup %8018  ;;  %v2276_v8 = vpop.permute.xlu1 %2275 }
0x1023   :  { %v9190_v39 = vadd.f32 %v2276_v8, %v2268_v4  ;;  %2077 = vrot.lane.b32.xlu1 %v8019_v6, %s8379_s25 }
0x1025   :  { %8020 = vtanh.f32 %v9190_v39 }
0x102a   :  { %v2481_v42 = vpop.permute.xlu0 %2480 }
0x102b   :  { %v9195_v11 = vadd.f32 %v2481_v42, %v2473_v10 }
0x102d   :  { %8022 = vtanh.f32 %v9195_v11 }
0x1032   :  { %v8021_v1 = vpop.eup %8020 }
0x1033   :  { %2281 = vrot.lane.b32.xlu0 %v8021_v1, %s8379_s25 }
0x103a   :  { %v8023_v12 = vpop.eup %8022 }
0x103b   :  { %2486 = vrot.lane.b32.xlu1 %v8023_v12, %s8379_s25 }
0x1095   :  { %v2078_v5 = vpop.permute.xlu1 %2077 }
0x1096   :  { %v2080_v13 = vmul.f32 %v8011_v41, %v2078_v5 }
0x1098   :  { %2290 = vrot.lane.b32.xlu1 %v2080_v13, %s8379_s25 }
0x10a5   :  { %v2282_v57 = vpop.permute.xlu0 %2281 }
0x10a6   :  { %v2284_v15 = vmul.f32 %v8015_v21, %v2282_v57 }
0x10a8   :  { %2286 = vrot.lane.b32.xlu0 %v2284_v15, %s8380_s26  ;;  %2494 = vrot.lane.b32.xlu1 %v2284_v15, %s8379_s25 }
0x10ad   :  { %v2487_v9 = vpop.permute.xlu1 %2486 }
0x10ae   :  { %v2489_v16 = vmul.f32 %v8017_v62, %v2487_v9 }
0x10b0   :  { %2491 = vrot.lane.b32.xlu0 %v2489_v16, %s8380_s26 }
0x110a   :  { %v2291_v17 = vpop.permute.xlu1 %2290 }
0x111a   :  { %v2287_v19 = vpop.permute.xlu0 %2286  ;;  %v2495_v48 = vpop.permute.xlu1 %2494 }
0x111b   :  { %v2293_v43 = vsel %vm181_vm2, %v2287_v19, %v2291_v17 }
0x111c   :  { %7319 = vmatmul.mubr.msk.f32.vlgmr.msra.gmra.mxu1 %vm242_vm3, %v2293_v43 }
0x111d   :  { %7333 = vmatpush3.msra.mxu1 %v9209_v44  ;;  %7348 = vmatprep.mubr.msk.f32.mxu1 %vm8381_vm7, %v8378_v7 }
0x111e   :  { %7334 = vmatprep.subr.mxu1 %v8378_v7 }
0x111f   :  { %7335 = vmatpush3.msra.mxu1 %v9218_v45 }
0x1120   :  { %7336 = vmatprep.subr.mxu1 %v8378_v7 }
0x1121   :  { %7337 = vmatpush3.msra.mxu1 %v9225_v50 }
0x1122   :  { %7338 = vmatprep.subr.mxu1 %v8378_v7  ;;  %v2492_v46 = vpop.permute.xlu0 %2491 }
0x1123   :  { %7339 = vmatpush3.msra.mxu1 %v9232_v51  ;;  %v2497_v52 = vsel %vm181_vm2, %v2492_v46, %v2495_v48 }
0x1124   :  { %7340 = vmatprep.subr.mxu1 %v8378_v7 }
0x1125   :  { %7341 = vmatpush3.msra.mxu1 %v9239_v18 }
0x1126   :  { %7342 = vmatprep.subr.mxu1 %v8378_v7 }
0x1127   :  { %7343 = vmatpush3.msra.mxu1 %v9246_v56 }
0x1128   :  { %7344 = vmatprep.subr.mxu1 %v8378_v7 }
0x1129   :  { %7345 = vmatpush3.msra.mxu1 %v9253_v47 }
0x112a   :  { %7346 = vmatprep.subr.mxu1 %v8378_v7 }
0x112b   :  { %7347 = vmatpush3.msra.mxu1 %v9261_v53 }
0x112c   :  { %7349 = vmatmul.mubr.msk.f32.vlgmr.msra.gmra.mxu1 %vm242_vm3, %v2497_v52  ;;  %7370 = vmatprep.subr.mxu1 %v8378_v7 }
0x112d   :  { %7371 = vmatpush3.msra.mxu1 %v9269_v20  ;;  %7378 = vmatprep.mubr.msk.f32.mxu1 %vm8381_vm7, %v8378_v7 }
0x112e   :  { %7372 = vmatprep.subr.mxu1 %v8378_v7 }
0x112f   :  { %7373 = vmatpush3.msra.mxu1 %v9278_v22 }
0x1130   :  { %7374 = vmatprep.subr.mxu1 %v8378_v7 }
0x1131   :  { %7375 = vmatpush3.msra.mxu1 %v9285_v23 }
0x1132   :  { %7376 = vmatprep.subr.mxu1 %v8378_v7 }
0x1133   :  { %7377 = vmatpush3.msra.mxu1 %v9292_v27 }
0x1134   :  { %7379 = vmatmul.mubr.msk.f32.vlgmr.msra.gmra.mxu1 %vm181_vm2, %v2492_v46  ;;  %7400 = vmatprep.subr.mxu1 %v8378_v7 }
0x1135   :  { %7401 = vmatpush3.msra.mxu1 %v8892_v25  ;;  %7416 = vmatprep.mubr.msk.f32.mxu1 %vm8381_vm7, %v8378_v7 }
0x1136   :  { %7402 = vmatprep.subr.mxu1 %v8378_v7 }
0x1137   :  { %7403 = vmatpush3.msra.mxu1 %v8897_v26 }
0x1138   :  { %7404 = vmatprep.subr.mxu1 %v8378_v7 }
0x1139   :  { %7405 = vmatpush3.msra.mxu1 %v8905_v29 }
0x113a   :  { %7406 = vmatprep.subr.mxu1 %v8378_v7 }
0x113b   :  { %7407 = vmatpush3.msra.mxu1 %v8914_v30 }
0x113c   :  { %7408 = vmatprep.subr.mxu1 %v8378_v7 }
0x113d   :  { %7409 = vmatpush3.msra.mxu1 %v8923_v31 }
0x113e   :  { %7410 = vmatprep.subr.mxu1 %v8378_v7 }
0x113f   :  { %7411 = vmatpush3.msra.mxu1 %v8932_v32  ;;  %v9319_v32 = vld [vmem:[%s10525_s10 + $0x1] ss:$0 sm:$0xff] }
0x1140   :  { %7412 = vmatprep.subr.mxu1 %v8378_v7 }
0x1141   :  { %7413 = vmatpush3.msra.mxu1 %v8941_v34 }
0x1142   :  { %7414 = vmatprep.subr.mxu1 %v8378_v7 }
0x1143   :  { %7415 = vmatpush3.msra.mxu1 %v8950_v35  ;;  %v2702_v35 = vld [vmem:[#allocation3 + $0xa] sm:$0x3] }
0x1144   :  { %7430 = vmatprep.subr.mxu1 %v8378_v7 }
0x11dc   :  { %v2363_v25 = vpop.f32.mrf.mxu1 }
0x11dd   :  { %v2364_v26 = vadd.f32 %v9020_v54, %v2363_v25 }
0x11de   :  { %v7320_v29 = vpop.f32.mrf.mxu1 }
0x11df   :  { %8024 = vtanh.f32 %v2364_v26  ;;  %v6509_v14 = vmul.f32 -1.442695, %v2364_v26 }
0x11ec   :  { %v8025_v30 = vpop.eup %8024  ;;  %v2567_v31 = vpop.f32.mrf.mxu1 }
0x11ed   :  { %v2568_v34 = vadd.f32 %v9319_v32, %v2567_v31  ;;  %2376 = vrot.lane.b32.xlu0 %v8025_v30, %s8379_s25 }
0x11ee   :  { %v7350_v33 = vpop.f32.mrf.mxu1 }
0x11ef   :  { %8026 = vtanh.f32 %v2568_v34  ;;  %v6513_v41 = vmul.f32 -1.442695, %v2568_v34  ;;  %v9383_v33 = vld [vmem:[%s10524_s9 + $0x78] sm:$0xff] }
0x11f4   :  { %v2771_v36 = vpop.f32.mrf.mxu1 }
0x11f5   :  { %v2775_v37 = vadd.f32 %v2771_v36, %v2702_v35  ;;  %v9392_v35 = vld [vmem:[%s10524_s9 + $0x70] sm:$0xff]  ;;  %v9399_v36 = vld [vmem:[%s10524_s9 + $0x68] sm:$0xff] }
0x11f6   :  { %v7380_v58 = vpop.f32.mrf.mxu1 }
0x11f7   :  { %8028 = vtanh.f32 %v2775_v37  ;;  %v6517_v28 = vmul.f32 -1.442695, %v2775_v37  ;;  %v9406_v37 = vld [vmem:[%s10524_s9 + $0x60] sm:$0xff]  ;;  %v9413_v58 = vld [vmem:[%s10524_s9 + $0x58] sm:$0xff] }
0x11f8   :  { %8030 = vpow2.f32 %v6509_v14  ;;  %v9434_v14 = vld [vmem:[%s10524_s9 + $0x40] sm:$0xff] }
0x11f9   :  { %8032 = vpow2.f32 %v6513_v41 }
0x11fc   :  { %v8027_v38 = vpop.eup %8026 }
0x11fd   :  { %2580 = vrot.lane.b32.xlu1 %v8027_v38, %s8379_s25  ;;  %v9420_v38 = vld [vmem:[%s10524_s9 + $0x50] sm:$0xff] }
0x1204   :  { %v8029_v40 = vpop.eup %8028 }
0x1205   :  { %2785 = vrot.lane.b32.xlu0 %v8029_v40, %s8379_s25  ;;  %v8031_v49 = vpop.eup %8030  ;;  %v9427_v40 = vld [vmem:[%s10524_s9 + $0x48] sm:$0xff] }
0x1206   :  { %v2370_v55 = vadd.f32 1.0, %v8031_v49  ;;  %v8033_v59 = vpop.eup %8032 }
0x1207   :  { %v2574_v21 = vadd.f32 1.0, %v8033_v59 }
0x1208   :  { %8034 = vrcp.f32 %v2370_v55 }
0x1209   :  { %8036 = vpow2.f32 %v6517_v28 }
0x120a   :  { %8038 = vrcp.f32 %v2574_v21 }
0x1215   :  { %v8035_v60 = vpop.eup %8034 }
0x1216   :  { %v8037_v24 = vpop.eup %8036  ;;  %v2374_v42 = vmul.f32 %v8035_v60, %v9186_v3 }
0x1217   :  { %v2779_v63 = vadd.f32 1.0, %v8037_v24  ;;  %v8039_v0 = vpop.eup %8038 }
0x1218   :  { %v2578_v5 = vmul.f32 %v8039_v0, %v9190_v39 }
0x1219   :  { %8040 = vrcp.f32 %v2779_v63 }
0x1226   :  { %v8041_v6 = vpop.eup %8040 }
0x1227   :  { %v2783_v9 = vmul.f32 %v8041_v6, %v9195_v11 }
0x125f   :  { %v2377_v61 = vpop.permute.xlu0 %2376 }
0x1260   :  { %v2379_v62 = vmul.f32 %v8035_v60, %v2377_v61  ;;  %v3012_v61 = vld [vmem:[#allocation3 + $0xc] sm:$0x3] }
0x1262   :  { %2381 = vrot.lane.b32.xlu1 %v2379_v62, %s8380_s26 }
0x126f   :  { %v2581_v2 = vpop.permute.xlu1 %2580 }
0x1270   :  { %v2583_v4 = vmul.f32 %v8039_v0, %v2581_v2 }
0x1272   :  { %2585 = vrot.lane.b32.xlu0 %v2583_v4, %s8380_s26 }
0x1277   :  { %v2786_v8 = vpop.permute.xlu0 %2785 }
0x1278   :  { %v2788_v10 = vmul.f32 %v8041_v6, %v2786_v8 }
0x127a   :  { %2790 = vrot.lane.b32.xlu1 %v2788_v10, %s8380_s26 }
0x12d4   :  { %v2382_v1 = vpop.permute.xlu1 %2381 }
0x12d5   :  { %v9329_v12 = vadd.f32 %v2382_v1, %v2374_v42 }
0x12d7   :  { %8042 = vtanh.f32 %v9329_v12 }
0x12e4   :  { %v8043_v13 = vpop.eup %8042  ;;  %v2586_v57 = vpop.permute.xlu0 %2585 }
0x12e5   :  { %v9333_v15 = vadd.f32 %v2586_v57, %v2578_v5  ;;  %2387 = vrot.lane.b32.xlu0 %v8043_v13, %s8379_s25 }
0x12e7   :  { %8044 = vtanh.f32 %v9333_v15 }
0x12ec   :  { %v2791_v16 = vpop.permute.xlu1 %2790 }
0x12ed   :  { %v9338_v17 = vadd.f32 %v2791_v16, %v2783_v9 }
0x12ef   :  { %8046 = vtanh.f32 %v9338_v17 }
0x12f4   :  { %v8045_v3 = vpop.eup %8044 }
0x12f5   :  { %2591 = vrot.lane.b32.xlu1 %v8045_v3, %s8379_s25 }
0x12fc   :  { %v8047_v19 = vpop.eup %8046 }
0x12fd   :  { %2796 = vrot.lane.b32.xlu0 %v8047_v19, %s8379_s25 }
0x1357   :  { %v2388_v39 = vpop.permute.xlu0 %2387 }
0x1358   :  { %v2390_v43 = vmul.f32 %v8035_v60, %v2388_v39 }
0x135a   :  { %2600 = vrot.lane.b32.xlu0 %v2390_v43, %s8379_s25 }
0x1367   :  { %v2592_v46 = vpop.permute.xlu1 %2591 }
0x1368   :  { %v2594_v48 = vmul.f32 %v8039_v0, %v2592_v46 }
0x136a   :  { %2596 = vrot.lane.b32.xlu1 %v2594_v48, %s8380_s26  ;;  %2804 = vrot.lane.b32.xlu0 %v2594_v48, %s8379_s25 }
0x136f   :  { %v2797_v11 = vpop.permute.xlu0 %2796 }
0x1370   :  { %v2799_v52 = vmul.f32 %v8041_v6, %v2797_v11 }
0x1372   :  { %2801 = vrot.lane.b32.xlu1 %v2799_v52, %s8380_s26 }
0x13cc   :  { %v2601_v25 = vpop.permute.xlu0 %2600 }
0x13dc   :  { %v2597_v26 = vpop.permute.xlu1 %2596  ;;  %v2805_v31 = vpop.permute.xlu0 %2804 }
0x13dd   :  { %v2603_v29 = vsel %vm181_vm2, %v2597_v26, %v2601_v25 }
0x13de   :  { %7368 = vmatmul.mubr.msk.f32.vlgmr.msra.gmra.mxu0 %vm242_vm3, %v2603_v29 }
0x13df   :  { %7382 = vmatpush3.msra.mxu0 %v9209_v44  ;;  %7397 = vmatprep.mubr.msk.f32.mxu0 %vm8381_vm7, %v8378_v7 }
0x13e0   :  { %7383 = vmatprep.subr.mxu0 %v8378_v7 }
0x13e1   :  { %7384 = vmatpush3.msra.mxu0 %v9218_v45 }
0x13e2   :  { %7385 = vmatprep.subr.mxu0 %v8378_v7 }
0x13e3   :  { %7386 = vmatpush3.msra.mxu0 %v9225_v50 }
0x13e4   :  { %7387 = vmatprep.subr.mxu0 %v8378_v7  ;;  %v2802_v30 = vpop.permute.xlu1 %2801 }
0x13e5   :  { %7388 = vmatpush3.msra.mxu0 %v9232_v51  ;;  %v2807_v34 = vsel %vm181_vm2, %v2802_v30, %v2805_v31 }
0x13e6   :  { %7389 = vmatprep.subr.mxu0 %v8378_v7 }
0x13e7   :  { %7390 = vmatpush3.msra.mxu0 %v9239_v18 }
0x13e8   :  { %7391 = vmatprep.subr.mxu0 %v8378_v7 }
0x13e9   :  { %7392 = vmatpush3.msra.mxu0 %v9246_v56 }
0x13ea   :  { %7393 = vmatprep.subr.mxu0 %v8378_v7 }
0x13eb   :  { %7394 = vmatpush3.msra.mxu0 %v9253_v47 }
0x13ec   :  { %7395 = vmatprep.subr.mxu0 %v8378_v7 }
0x13ed   :  { %7396 = vmatpush3.msra.mxu0 %v9261_v53 }
0x13ee   :  { %7398 = vmatmul.mubr.msk.f32.vlgmr.msra.gmra.mxu0 %vm242_vm3, %v2807_v34  ;;  %7419 = vmatprep.subr.mxu0 %v8378_v7 }
0x13ef   :  { %7420 = vmatpush3.msra.mxu0 %v9269_v20  ;;  %7427 = vmatprep.mubr.msk.f32.mxu0 %vm8381_vm7, %v8378_v7 }
0x13f0   :  { %7421 = vmatprep.subr.mxu0 %v8378_v7 }
0x13f1   :  { %7422 = vmatpush3.msra.mxu0 %v9278_v22 }
0x13f2   :  { %7423 = vmatprep.subr.mxu0 %v8378_v7 }
0x13f3   :  { %7424 = vmatpush3.msra.mxu0 %v9285_v23 }
0x13f4   :  { %7425 = vmatprep.subr.mxu0 %v8378_v7 }
0x13f5   :  { %7426 = vmatpush3.msra.mxu0 %v9292_v27 }
0x13f6   :  { %7428 = vmatmul.mubr.msk.f32.vlgmr.msra.gmra.mxu0 %vm181_vm2, %v2802_v30  ;;  %7449 = vmatprep.subr.mxu0 %v8378_v7 }
0x13f7   :  { %7450 = vmatpush3.msra.mxu0 %v9383_v33  ;;  %7465 = vmatprep.mubr.msk.f32.mxu0 %vm8381_vm7, %v8378_v7 }
0x13f8   :  { %7451 = vmatprep.subr.mxu0 %v8378_v7 }
0x13f9   :  { %7452 = vmatpush3.msra.mxu0 %v9392_v35 }
0x13fa   :  { %7453 = vmatprep.subr.mxu0 %v8378_v7 }
0x13fb   :  { %7454 = vmatpush3.msra.mxu0 %v9399_v36 }
0x13fc   :  { %7455 = vmatprep.subr.mxu0 %v8378_v7 }
0x13fd   :  { %7456 = vmatpush3.msra.mxu0 %v9406_v37 }
0x13fe   :  { %7457 = vmatprep.subr.mxu0 %v8378_v7 }
0x13ff   :  { %7458 = vmatpush3.msra.mxu0 %v9413_v58 }
0x1400   :  { %7459 = vmatprep.subr.mxu0 %v8378_v7 }
0x1401   :  { %7460 = vmatpush3.msra.mxu0 %v9420_v38 }
0x1402   :  { %7461 = vmatprep.subr.mxu0 %v8378_v7 }
0x1403   :  { %7462 = vmatpush3.msra.mxu0 %v9427_v40 }
0x1404   :  { %7463 = vmatprep.subr.mxu0 %v8378_v7 }
0x1405   :  { %7464 = vmatpush3.msra.mxu0 %v9434_v14 }
0x1406   :  { %7479 = vmatprep.subr.mxu0 %v8378_v7 }
0x149e   :  { %v2673_v41 = vpop.f32.mrf.mxu0 }
0x149f   :  { %v2674_v49 = vadd.f32 %v9020_v54, %v2673_v41 }
0x14a0   :  { %v7369_v55 = vpop.f32.mrf.mxu0 }
0x14a1   :  { %8048 = vtanh.f32 %v2674_v49  ;;  %v6515_v54 = vmul.f32 -1.442695, %v2674_v49 }
0x14ae   :  { %v8049_v28 = vpop.eup %8048  ;;  %v2877_v59 = vpop.f32.mrf.mxu0 }
0x14af   :  { %v2878_v21 = vadd.f32 %v9319_v32, %v2877_v59  ;;  %2686 = vrot.lane.b32.xlu1 %v8049_v28, %s8379_s25 }
0x14b0   :  { %v7399_v60 = vpop.f32.mrf.mxu0 }
0x14b1   :  { %8050 = vtanh.f32 %v2878_v21  ;;  %v6519_v4 = vmul.f32 -1.442695, %v2878_v21 }
0x14b6   :  { %v3081_v62 = vpop.f32.mrf.mxu0 }
0x14b7   :  { %v3085_v24 = vadd.f32 %v3081_v62, %v3012_v61 }
0x14b8   :  { %v7429_v63 = vpop.f32.mrf.mxu0 }
0x14b9   :  { %8052 = vtanh.f32 %v3085_v24  ;;  %v6523_v10 = vmul.f32 -1.442695, %v3085_v24 }
0x14ba   :  { %8054 = vpow2.f32 %v6515_v54 }
0x14bb   :  { %8056 = vpow2.f32 %v6519_v4 }
0x14be   :  { %v8051_v0 = vpop.eup %8050 }
0x14bf   :  { %2890 = vrot.lane.b32.xlu0 %v8051_v0, %s8379_s25 }
0x14c6   :  { %v8053_v2 = vpop.eup %8052 }
0x14c7   :  { %3095 = vrot.lane.b32.xlu1 %v8053_v2, %s8379_s25  ;;  %v8055_v6 = vpop.eup %8054 }
0x14c8   :  { %v2680_v8 = vadd.f32 1.0, %v8055_v6  ;;  %v8057_v42 = vpop.eup %8056 }
0x14c9   :  { %v2884_v1 = vadd.f32 1.0, %v8057_v42 }
0x14ca   :  { %8058 = vrcp.f32 %v2680_v8 }
0x14cb   :  { %8060 = vpow2.f32 %v6523_v10 }
0x14cc   :  { %8062 = vrcp.f32 %v2884_v1 }
0x14d7   :  { %v8059_v5 = vpop.eup %8058 }
0x14d8   :  { %v8061_v9 = vpop.eup %8060  ;;  %v2684_v11 = vmul.f32 %v8059_v5, %v9329_v12 }
0x14d9   :  { %v3089_v16 = vadd.f32 1.0, %v8061_v9  ;;  %v8063_v3 = vpop.eup %8062 }
0x14da   :  { %v2888_v26 = vmul.f32 %v8063_v3, %v9333_v15 }
0x14db   :  { %8064 = vrcp.f32 %v3089_v16 }
0x14e8   :  { %v8065_v43 = vpop.eup %8064 }
0x14e9   :  { %v3093_v34 = vmul.f32 %v8065_v43, %v9338_v17 }
0x1521   :  { %v2687_v13 = vpop.permute.xlu1 %2686 }
0x1522   :  { %v2689_v57 = vmul.f32 %v8059_v5, %v2687_v13 }
0x1524   :  { %2691 = vrot.lane.b32.xlu0 %v2689_v57, %s8380_s26 }
0x1531   :  { %v2891_v19 = vpop.permute.xlu0 %2890 }
0x1532   :  { %v2893_v39 = vmul.f32 %v8063_v3, %v2891_v19 }
0x1534   :  { %2895 = vrot.lane.b32.xlu1 %v2893_v39, %s8380_s26 }
0x1539   :  { %v3096_v46 = vpop.permute.xlu1 %3095 }
0x153a   :  { %v3098_v48 = vmul.f32 %v8065_v43, %v3096_v46 }
0x153c   :  { %3100 = vrot.lane.b32.xlu0 %v3098_v48, %s8380_s26 }
0x1596   :  { %v2692_v52 = vpop.permute.xlu0 %2691 }
0x1597   :  { %v9447_v25 = vadd.f32 %v2692_v52, %v2684_v11 }
0x1599   :  { %8066 = vtanh.f32 %v9447_v25 }
0x15a6   :  { %v8067_v29 = vpop.eup %8066  ;;  %v2896_v30 = vpop.permute.xlu1 %2895 }
0x15a7   :  { %v9451_v31 = vadd.f32 %v2896_v30, %v2888_v26  ;;  %2697 = vrot.lane.b32.xlu1 %v8067_v29, %s8379_s25 }
0x15a9   :  { %8068 = vtanh.f32 %v9451_v31 }
0x15ae   :  { %v3101_v41 = vpop.permute.xlu0 %3100 }
0x15af   :  { %v9456_v49 = vadd.f32 %v3101_v41, %v3093_v34 }
0x15b1   :  { %8070 = vtanh.f32 %v9456_v49 }
0x15b6   :  { %v8069_v12 = vpop.eup %8068 }
0x15b7   :  { %2901 = vrot.lane.b32.xlu0 %v8069_v12, %s8379_s25 }
0x15be   :  { %v8071_v55 = vpop.eup %8070 }
0x15bf   :  { %3106 = vrot.lane.b32.xlu1 %v8071_v55, %s8379_s25 }
0x1619   :  { %v2698_v15 = vpop.permute.xlu1 %2697 }
0x161a   :  { %v2700_v28 = vmul.f32 %v8059_v5, %v2698_v15 }
0x161c   :  { %2910 = vrot.lane.b32.xlu1 %v2700_v28, %s8379_s25 }
0x1629   :  { %v2902_v59 = vpop.permute.xlu0 %2901 }
0x162a   :  { %v2904_v21 = vmul.f32 %v8063_v3, %v2902_v59 }
0x162c   :  { %2906 = vrot.lane.b32.xlu0 %v2904_v21, %s8380_s26  ;;  %3114 = vrot.lane.b32.xlu1 %v2904_v21, %s8379_s25 }
0x1631   :  { %v3107_v17 = vpop.permute.xlu1 %3106 }
0x1632   :  { %v3109_v60 = vmul.f32 %v8065_v43, %v3107_v17 }
0x1634   :  { %3111 = vrot.lane.b32.xlu0 %v3109_v60, %s8380_s26 }
0x168e   :  { %v2911_v61 = vpop.permute.xlu1 %2910 }
0x169e   :  { %v2907_v62 = vpop.permute.xlu0 %2906  ;;  %v3115_v0 = vpop.permute.xlu1 %3114 }
0x169f   :  { %v2913_v24 = vsel %vm181_vm2, %v2907_v62, %v2911_v61 }
0x16a0   :  { %7417 = vmatmul.mubr.msk.f32.vlgmr.msra.gmra.mxu1 %vm242_vm3, %v2913_v24 }
0x16a1   :  { %7431 = vmatpush3.msra.mxu1 %v9209_v44  ;;  %7446 = vmatprep.mubr.msk.f32.mxu1 %vm8381_vm7, %v8378_v7 }
0x16a2   :  { %7432 = vmatprep.subr.mxu1 %v8378_v7 }
0x16a3   :  { %7433 = vmatpush3.msra.mxu1 %v9218_v45 }
0x16a4   :  { %7434 = vmatprep.subr.mxu1 %v8378_v7 }
0x16a5   :  { %7435 = vmatpush3.msra.mxu1 %v9225_v50 }
0x16a6   :  { %7436 = vmatprep.subr.mxu1 %v8378_v7  ;;  %v3112_v63 = vpop.permute.xlu0 %3111 }
0x16a7   :  { %7437 = vmatpush3.msra.mxu1 %v9232_v51  ;;  %v3117_v2 = vsel %vm181_vm2, %v3112_v63, %v3115_v0 }
0x16a8   :  { %7438 = vmatprep.subr.mxu1 %v8378_v7 }
0x16a9   :  { %7439 = vmatpush3.msra.mxu1 %v9239_v18 }
0x16aa   :  { %7440 = vmatprep.subr.mxu1 %v8378_v7 }
0x16ab   :  { %7441 = vmatpush3.msra.mxu1 %v9246_v56 }
0x16ac   :  { %7442 = vmatprep.subr.mxu1 %v8378_v7 }
0x16ad   :  { %7443 = vmatpush3.msra.mxu1 %v9253_v47 }
0x16ae   :  { %7444 = vmatprep.subr.mxu1 %v8378_v7 }
0x16af   :  { %7445 = vmatpush3.msra.mxu1 %v9261_v53 }
0x16b0   :  { %7447 = vmatmul.mubr.msk.f32.vlgmr.msra.gmra.mxu1 %vm242_vm3, %v3117_v2  ;;  %7468 = vmatprep.subr.mxu1 %v8378_v7 }
0x16b1   :  { %7469 = vmatpush3.msra.mxu1 %v9269_v20  ;;  %7476 = vmatprep.mubr.msk.f32.mxu1 %vm8381_vm7, %v8378_v7 }
0x16b2   :  { %7470 = vmatprep.subr.mxu1 %v8378_v7 }
0x16b3   :  { %7471 = vmatpush3.msra.mxu1 %v9278_v22  ;;  %v9519_v22 = vld [vmem:[%s10525_s10 + $0x2] ss:$0 sm:$0xff] }
0x16b4   :  { %7472 = vmatprep.subr.mxu1 %v8378_v7 }
0x16b5   :  { %7473 = vmatpush3.msra.mxu1 %v9285_v23 }
0x16b6   :  { %7474 = vmatprep.subr.mxu1 %v8378_v7 }
0x16b7   :  { %7475 = vmatpush3.msra.mxu1 %v9292_v27 }
0x16b8   :  { %7477 = vmatmul.mubr.msk.f32.vlgmr.msra.gmra.mxu1 %vm181_vm2, %v3112_v63  ;;  %7498 = vmatprep.subr.mxu1 %v8378_v7 }
0x16b9   :  { %7499 = vmatpush3.msra.mxu1 %v9383_v33  ;;  %7514 = vmatprep.mubr.msk.f32.mxu1 %vm8381_vm7, %v8378_v7 }
0x16ba   :  { %7500 = vmatprep.subr.mxu1 %v8378_v7 }
0x16bb   :  { %7501 = vmatpush3.msra.mxu1 %v9392_v35 }
0x16bc   :  { %7502 = vmatprep.subr.mxu1 %v8378_v7 }
0x16bd   :  { %7503 = vmatpush3.msra.mxu1 %v9399_v36 }
0x16be   :  { %7504 = vmatprep.subr.mxu1 %v8378_v7 }
0x16bf   :  { %7505 = vmatpush3.msra.mxu1 %v9406_v37 }
0x16c0   :  { %7506 = vmatprep.subr.mxu1 %v8378_v7 }
0x16c1   :  { %7507 = vmatpush3.msra.mxu1 %v9413_v58  ;;  %v3322_v58 = vld [vmem:[#allocation3 + $0xe] sm:$0x3] }
0x16c2   :  { %7508 = vmatprep.subr.mxu1 %v8378_v7 }
0x16c3   :  { %7509 = vmatpush3.msra.mxu1 %v9420_v38 }
0x16c4   :  { %7510 = vmatprep.subr.mxu1 %v8378_v7 }
0x16c5   :  { %7511 = vmatpush3.msra.mxu1 %v9427_v40 }
0x16c6   :  { %7512 = vmatprep.subr.mxu1 %v8378_v7 }
0x16c7   :  { %7513 = vmatpush3.msra.mxu1 %v9434_v14 }
0x16c8   :  { %7528 = vmatprep.subr.mxu1 %v8378_v7 }
0x1760   :  { %v2983_v20 = vpop.f32.mrf.mxu1 }
0x1761   :  { %v2984_v23 = vadd.f32 %v9519_v22, %v2983_v20 }
0x1762   :  { %v7418_v27 = vpop.f32.mrf.mxu1 }
0x1763   :  { %8072 = vtanh.f32 %v2984_v23  ;;  %v6521_v6 = vmul.f32 -1.442695, %v2984_v23 }
0x1770   :  { %v8073_v33 = vpop.eup %8072  ;;  %v3187_v35 = vpop.f32.mrf.mxu1 }
0x1771   :  { %v3188_v36 = vadd.f32 %v9319_v32, %v3187_v35  ;;  %2996 = vrot.lane.b32.xlu0 %v8073_v33, %s8379_s25 }
0x1772   :  { %v7448_v37 = vpop.f32.mrf.mxu1 }
0x1773   :  { %8074 = vtanh.f32 %v3188_v36  ;;  %v6525_v8 = vmul.f32 -1.442695, %v3188_v36  ;;  %v3654_v36 = vld [vmem:[#allocation4] sm:$0x3] }
0x1778   :  { %v3391_v38 = vpop.f32.mrf.mxu1 }
0x1779   :  { %v3395_v40 = vadd.f32 %v3391_v38, %v3322_v58 }
0x177a   :  { %v7478_v14 = vpop.f32.mrf.mxu1 }
0x177b   :  { %8076 = vtanh.f32 %v3395_v40  ;;  %v6529_v1 = vmul.f32 -1.442695, %v3395_v40 }
0x177c   :  { %8078 = vpow2.f32 %v6521_v6 }
0x177d   :  { %8080 = vpow2.f32 %v6525_v8 }
0x1780   :  { %v8075_v54 = vpop.eup %8074 }
0x1781   :  { %3200 = vrot.lane.b32.xlu1 %v8075_v54, %s8379_s25 }
0x1788   :  { %v8077_v4 = vpop.eup %8076 }
0x1789   :  { %3405 = vrot.lane.b32.xlu0 %v8077_v4, %s8379_s25  ;;  %v8079_v10 = vpop.eup %8078 }
0x178a   :  { %v2990_v42 = vadd.f32 1.0, %v8079_v10  ;;  %v8081_v5 = vpop.eup %8080 }
0x178b   :  { %v3194_v13 = vadd.f32 1.0, %v8081_v5 }
0x178c   :  { %8082 = vrcp.f32 %v2990_v42 }
0x178d   :  { %8084 = vpow2.f32 %v6529_v1 }
0x178e   :  { %8086 = vrcp.f32 %v3194_v13 }
0x1799   :  { %v8083_v57 = vpop.eup %8082 }
0x179a   :  { %v8085_v3 = vpop.eup %8084  ;;  %v2994_v26 = vmul.f32 %v8083_v57, %v9447_v25 }
0x179b   :  { %v3399_v19 = vadd.f32 1.0, %v8085_v3  ;;  %v8087_v39 = vpop.eup %8086 }
0x179c   :  { %v3198_v34 = vmul.f32 %v8087_v39, %v9451_v31 }
0x179d   :  { %8088 = vrcp.f32 %v3399_v19 }
0x17aa   :  { %v8089_v48 = vpop.eup %8088 }
0x17ab   :  { %v3403_v15 = vmul.f32 %v8089_v48, %v9456_v49 }
0x17e3   :  { %v2997_v9 = vpop.permute.xlu0 %2996 }
0x17e4   :  { %v2999_v16 = vmul.f32 %v8083_v57, %v2997_v9 }
0x17e6   :  { %3001 = vrot.lane.b32.xlu1 %v2999_v16, %s8380_s26 }
0x17f3   :  { %v3201_v43 = vpop.permute.xlu1 %3200 }
0x17f4   :  { %v3203_v46 = vmul.f32 %v8087_v39, %v3201_v43 }
0x17f6   :  { %3205 = vrot.lane.b32.xlu0 %v3203_v46, %s8380_s26 }
0x17fb   :  { %v3406_v11 = vpop.permute.xlu0 %3405 }
0x17fc   :  { %v3408_v52 = vmul.f32 %v8089_v48, %v3406_v11 }
0x17fe   :  { %3410 = vrot.lane.b32.xlu1 %v3408_v52, %s8380_s26 }
0x1858   :  { %v3002_v29 = vpop.permute.xlu1 %3001 }
0x1859   :  { %v9530_v30 = vadd.f32 %v3002_v29, %v2994_v26 }
0x185b   :  { %8090 = vtanh.f32 %v9530_v30 }
0x1868   :  { %v8091_v41 = vpop.eup %8090  ;;  %v3206_v12 = vpop.permute.xlu0 %3205 }
0x1869   :  { %v9534_v55 = vadd.f32 %v3206_v12, %v3198_v34  ;;  %3007 = vrot.lane.b32.xlu0 %v8091_v41, %s8379_s25 }
0x186b   :  { %8092 = vtanh.f32 %v9534_v55 }
0x1870   :  { %v3411_v28 = vpop.permute.xlu1 %3410 }
0x1871   :  { %v9539_v59 = vadd.f32 %v3411_v28, %v3403_v15 }
0x1873   :  { %8094 = vtanh.f32 %v9539_v59 }
0x1878   :  { %v8093_v25 = vpop.eup %8092 }
0x1879   :  { %3211 = vrot.lane.b32.xlu1 %v8093_v25, %s8379_s25 }
0x1880   :  { %v8095_v21 = vpop.eup %8094 }
0x1881   :  { %3416 = vrot.lane.b32.xlu0 %v8095_v21, %s8379_s25 }
0x18db   :  { %v3008_v31 = vpop.permute.xlu0 %3007 }
0x18dc   :  { %v3010_v17 = vmul.f32 %v8083_v57, %v3008_v31 }
0x18de   :  { %3220 = vrot.lane.b32.xlu0 %v3010_v17, %s8379_s25 }
0x18eb   :  { %v3212_v60 = vpop.permute.xlu1 %3211 }
0x18ec   :  { %v3214_v61 = vmul.f32 %v8087_v39, %v3212_v60 }
0x18ee   :  { %3216 = vrot.lane.b32.xlu1 %v3214_v61, %s8380_s26  ;;  %3424 = vrot.lane.b32.xlu0 %v3214_v61, %s8379_s25 }
0x18f3   :  { %v3417_v49 = vpop.permute.xlu0 %3416 }
0x18f4   :  { %v3419_v62 = vmul.f32 %v8089_v48, %v3417_v49 }
0x18f6   :  { %3421 = vrot.lane.b32.xlu1 %v3419_v62, %s8380_s26  ;;  %v9633_v62 = vld [vmem:[%s10528_s13 + $0x38] sm:$0xff] }
0x1950   :  { %v3221_v24 = vpop.permute.xlu0 %3220 }
0x1960   :  { %v3217_v63 = vpop.permute.xlu1 %3216 }
0x1961   :  { %v3223_v0 = vsel %vm181_vm2, %v3217_v63, %v3221_v24  ;;  %v9640_v63 = vld [vmem:[%s10528_s13 + $0x30] sm:$0xff] }
0x1962   :  { %7466 = vmatmul.mubr.msk.f32.vlgmr.msra.gmra.mxu0 %vm242_vm3, %v3223_v0  ;;  %v9649_v0 = vld [vmem:[%s10528_s13 + $0x28] sm:$0xff] }
0x1963   :  { %7480 = vmatpush3.msra.mxu0 %v9209_v44  ;;  %7495 = vmatprep.mubr.msk.f32.mxu0 %vm8381_vm7, %v8378_v7 }
0x1964   :  { %7481 = vmatprep.subr.mxu0 %v8378_v7 }
0x1965   :  { %7482 = vmatpush3.msra.mxu0 %v9218_v45  ;;  %v3425_v45 = vpop.permute.xlu0 %3424 }
0x1966   :  { %7483 = vmatprep.subr.mxu0 %v8378_v7 }
0x1967   :  { %7484 = vmatpush3.msra.mxu0 %v9225_v50  ;;  %v9569_v50 = vld [vmem:[%s10527_s12 + $0x18] sm:$0xff] }
0x1968   :  { %7485 = vmatprep.subr.mxu0 %v8378_v7  ;;  %v3422_v44 = vpop.permute.xlu1 %3421 }
0x1969   :  { %7486 = vmatpush3.msra.mxu0 %v9232_v51  ;;  %v3427_v51 = vsel %vm181_vm2, %v3422_v44, %v3425_v45  ;;  %v9663_v45 = vld [vmem:[%s10528_s13 + $0x18] sm:$0xff] }
0x196a   :  { %7487 = vmatprep.subr.mxu0 %v8378_v7 }
0x196b   :  { %7488 = vmatpush3.msra.mxu0 %v9239_v18  ;;  %v9578_v18 = vld [vmem:[%s10527_s12 + $0x10] sm:$0xff] }
0x196c   :  { %7489 = vmatprep.subr.mxu0 %v8378_v7 }
0x196d   :  { %7490 = vmatpush3.msra.mxu0 %v9246_v56  ;;  %v9587_v56 = vld [vmem:[%s10527_s12 + $0x8] sm:$0xff] }
0x196e   :  { %7491 = vmatprep.subr.mxu0 %v8378_v7 }
0x196f   :  { %7492 = vmatpush3.msra.mxu0 %v9253_v47  ;;  %v9594_v47 = vld [vmem:[%s10527_s12] sm:$0xff] }
0x1970   :  { %7493 = vmatprep.subr.mxu0 %v8378_v7 }
0x1971   :  { %7494 = vmatpush3.msra.mxu0 %v9261_v53 }
0x1972   :  { %7496 = vmatmul.mubr.msk.f32.vlgmr.msra.gmra.mxu0 %vm242_vm3, %v3427_v51  ;;  %7517 = vmatprep.subr.mxu0 %v8378_v7  ;;  %v9670_v51 = vld [vmem:[%s10528_s13 + $0x10] sm:$0xff] }
0x1973   :  { %7518 = vmatpush3.msra.mxu0 %v9569_v50  ;;  %7525 = vmatprep.mubr.msk.f32.mxu0 %vm8381_vm7, %v8378_v7 }
0x1974   :  { %7519 = vmatprep.subr.mxu0 %v8378_v7 }
0x1975   :  { %7520 = vmatpush3.msra.mxu0 %v9578_v18 }
0x1976   :  { %7521 = vmatprep.subr.mxu0 %v8378_v7 }
0x1977   :  { %7522 = vmatpush3.msra.mxu0 %v9587_v56 }
0x1978   :  { %7523 = vmatprep.subr.mxu0 %v8378_v7 }
0x1979   :  { %7524 = vmatpush3.msra.mxu0 %v9594_v47 }
0x197a   :  { %7526 = vmatmul.mubr.msk.f32.vlgmr.msra.gmra.mxu0 %vm181_vm2, %v3422_v44  ;;  %7547 = vmatprep.subr.mxu0 %v8378_v7  ;;  %v9656_v44 = vld [vmem:[%s10528_s13 + $0x20] sm:$0xff] }
0x197b   :  { %7563 = vmatprep.mubr.msk.f32.mxu0 %vm8381_vm7, %v8378_v7 }
0x1a22   :  { %v3293_v53 = vpop.f32.mrf.mxu0 }
0x1a23   :  { %v3294_v2 = vadd.f32 %v9519_v22, %v3293_v53  ;;  %v9677_v53 = vld [vmem:[%s10528_s13 + $0x8] sm:$0xff] }
0x1a24   :  { %v7467_v20 = vpop.f32.mrf.mxu0 }
0x1a25   :  { %8096 = vtanh.f32 %v3294_v2  ;;  %v6527_v54 = vmul.f32 -1.442695, %v3294_v2  ;;  %v9684_v20 = vld [vmem:[%s10528_s13] sm:$0xff] }
0x1a32   :  { %v8097_v23 = vpop.eup %8096  ;;  %v3497_v27 = vpop.f32.mrf.mxu0 }
0x1a33   :  { %v3498_v33 = vadd.f32 %v9319_v32, %v3497_v27  ;;  %3306 = vrot.lane.b32.xlu1 %v8097_v23, %s8379_s25 }
0x1a34   :  { %v7497_v35 = vpop.f32.mrf.mxu0 }
0x1a35   :  { %8098 = vtanh.f32 %v3498_v33  ;;  %v6531_v4 = vmul.f32 -1.442695, %v3498_v33 }
0x1a3a   :  { %v3723_v37 = vpop.f32.mrf.mxu0 }
0x1a3b   :  { %v3727_v58 = vadd.f32 %v3723_v37, %v3654_v36  ;;  %v9709_v37 = vld [vmem:[%s10529_s14 + $0x1] ss:$0 sm:$0xff] }
0x1a3c   :  { %v7527_v38 = vpop.f32.mrf.mxu0 }
0x1a3d   :  { %8100 = vtanh.f32 %v3727_v58  ;;  %v6543_v8 = vmul.f32 -1.442695, %v3727_v58 }
0x1a3e   :  { %8102 = vpow2.f32 %v6527_v54  ;;  %v3978_v54 = vld [vmem:[#allocation4 + $0x2] sm:$0x3] }
0x1a3f   :  { %8104 = vpow2.f32 %v6531_v4 }
0x1a42   :  { %v8099_v40 = vpop.eup %8098 }
0x1a43   :  { %3510 = vrot.lane.b32.xlu0 %v8099_v40, %s8379_s25 }
0x1a4a   :  { %v8101_v14 = vpop.eup %8100 }
0x1a4b   :  { %3737 = vrot.lane.b32.xlu1 %v8101_v14, %s8379_s25  ;;  %v8103_v6 = vpop.eup %8102 }
0x1a4c   :  { %v3300_v32 = vadd.f32 1.0, %v8103_v6  ;;  %v8105_v10 = vpop.eup %8104 }
0x1a4d   :  { %v3504_v42 = vadd.f32 1.0, %v8105_v10 }
0x1a4e   :  { %8106 = vrcp.f32 %v3300_v32 }
0x1a4f   :  { %8108 = vpow2.f32 %v6543_v8 }
0x1a50   :  { %8110 = vrcp.f32 %v3504_v42 }
0x1a5b   :  { %v8107_v1 = vpop.eup %8106 }
0x1a5c   :  { %v8109_v57 = vpop.eup %8108  ;;  %v3304_v48 = vmul.f32 %v8107_v1, %v9530_v30 }
0x1a5d   :  { %v3731_v9 = vadd.f32 1.0, %v8109_v57  ;;  %v8111_v16 = vpop.eup %8110 }
0x1a5e   :  { %v3508_v26 = vmul.f32 %v8111_v16, %v9534_v55 }
0x1a5f   :  { %8112 = vrcp.f32 %v3731_v9 }
0x1a6c   :  { %v8113_v39 = vpop.eup %8112 }
0x1a6d   :  { %v3735_v12 = vmul.f32 %v8113_v39, %v9539_v59 }
0x1aa5   :  { %v3307_v5 = vpop.permute.xlu1 %3306 }
0x1aa6   :  { %v3309_v13 = vmul.f32 %v8107_v1, %v3307_v5 }
0x1aa8   :  { %3311 = vrot.lane.b32.xlu0 %v3309_v13, %s8380_s26 }
0x1ab5   :  { %v3511_v3 = vpop.permute.xlu0 %3510 }
0x1ab6   :  { %v3513_v19 = vmul.f32 %v8111_v16, %v3511_v3 }
0x1ab8   :  { %3515 = vrot.lane.b32.xlu1 %v3513_v19, %s8380_s26 }
0x1abd   :  { %v3738_v43 = vpop.permute.xlu1 %3737 }
0x1abe   :  { %v3740_v46 = vmul.f32 %v8113_v39, %v3738_v43 }
0x1ac0   :  { %3742 = vrot.lane.b32.xlu0 %v3740_v46, %s8380_s26 }
0x1b1a   :  { %v3312_v11 = vpop.permute.xlu0 %3311 }
0x1b1b   :  { %v9612_v52 = vadd.f32 %v3312_v11, %v3304_v48 }
0x1b1d   :  { %8114 = vtanh.f32 %v9612_v52 }
0x1b2a   :  { %v8115_v29 = vpop.eup %8114  ;;  %v3516_v34 = vpop.permute.xlu1 %3515 }
0x1b2b   :  { %v9616_v41 = vadd.f32 %v3516_v34, %v3508_v26  ;;  %3317 = vrot.lane.b32.xlu1 %v8115_v29, %s8379_s25 }
0x1b2d   :  { %8116 = vtanh.f32 %v9616_v41 }
0x1b32   :  { %v3743_v15 = vpop.permute.xlu0 %3742 }
0x1b33   :  { %v9621_v28 = vadd.f32 %v3743_v15, %v3735_v12 }
0x1b35   :  { %8118 = vtanh.f32 %v9621_v28 }
0x1b3a   :  { %v8117_v30 = vpop.eup %8116 }
0x1b3b   :  { %3521 = vrot.lane.b32.xlu0 %v8117_v30, %s8379_s25 }
0x1b42   :  { %v8119_v25 = vpop.eup %8118 }
0x1b43   :  { %3748 = vrot.lane.b32.xlu1 %v8119_v25, %s8379_s25 }
0x1b9d   :  { %v3318_v55 = vpop.permute.xlu1 %3317 }
0x1b9e   :  { %v3320_v21 = vmul.f32 %v8107_v1, %v3318_v55 }
0x1ba0   :  { %3530 = vrot.lane.b32.xlu1 %v3320_v21, %s8379_s25 }
0x1bad   :  { %v3522_v31 = vpop.permute.xlu0 %3521 }
0x1bae   :  { %v3524_v17 = vmul.f32 %v8111_v16, %v3522_v31 }
0x1bb0   :  { %3526 = vrot.lane.b32.xlu0 %v3524_v17, %s8380_s26  ;;  %3756 = vrot.lane.b32.xlu1 %v3524_v17, %s8379_s25 }
0x1bb5   :  { %v3749_v59 = vpop.permute.xlu1 %3748 }
0x1bb6   :  { %v3751_v60 = vmul.f32 %v8113_v39, %v3749_v59 }
0x1bb8   :  { %3753 = vrot.lane.b32.xlu0 %v3751_v60, %s8380_s26 }
0x1c12   :  { %v3531_v61 = vpop.permute.xlu1 %3530 }
0x1c22   :  { %v3527_v49 = vpop.permute.xlu0 %3526  ;;  %v3757_v23 = vpop.permute.xlu1 %3756 }
0x1c23   :  { %v3533_v24 = vsel %vm181_vm2, %v3527_v49, %v3531_v61  ;;  %v9748_v61 = vld [vmem:[%s10528_s13 + $0x78] sm:$0xff]  ;;  %v9761_v49 = vld [vmem:[%s10528_s13 + $0x68] sm:$0xff] }
0x1c24   :  { %7515 = vmatmul.mubr.msk.f32.vlgmr.msra.gmra.mxu1 %vm242_vm3, %v3533_v24  ;;  %7548 = vmatpush3.msra.mxu0 %v9748_v61  ;;  %v9770_v24 = vld [vmem:[%s10528_s13 + $0x60] sm:$0xff] }
0x1c25   :  { %7529 = vmatpush3.msra.mxu1 %v9633_v62  ;;  %7544 = vmatprep.mubr.msk.f32.mxu1 %vm8381_vm7, %v8378_v7 }
0x1c26   :  { %7530 = vmatprep.subr.mxu1 %v8378_v7  ;;  %7549 = vmatprep.subr.mxu0 %v8378_v7 }
0x1c27   :  { %7531 = vmatpush3.msra.mxu1 %v9640_v63 }
0x1c28   :  { %7532 = vmatprep.subr.mxu1 %v8378_v7 }
0x1c29   :  { %7533 = vmatpush3.msra.mxu1 %v9649_v0 }
0x1c2a   :  { %7534 = vmatprep.subr.mxu1 %v8378_v7  ;;  %v3754_v2 = vpop.permute.xlu0 %3753 }
0x1c2b   :  { %7535 = vmatpush3.msra.mxu1 %v9656_v44  ;;  %v3759_v27 = vsel %vm181_vm2, %v3754_v2, %v3757_v23  ;;  %v9788_v23 = vld [vmem:[%s10528_s13 + $0x50] sm:$0xff] }
0x1c2c   :  { %7536 = vmatprep.subr.mxu1 %v8378_v7 }
0x1c2d   :  { %7537 = vmatpush3.msra.mxu1 %v9663_v45 }
0x1c2e   :  { %7538 = vmatprep.subr.mxu1 %v8378_v7 }
0x1c2f   :  { %7539 = vmatpush3.msra.mxu1 %v9670_v51 }
0x1c30   :  { %7540 = vmatprep.subr.mxu1 %v8378_v7 }
0x1c31   :  { %7541 = vmatpush3.msra.mxu1 %v9677_v53 }
0x1c32   :  { %7542 = vmatprep.subr.mxu1 %v8378_v7 }
0x1c33   :  { %7543 = vmatpush3.msra.mxu1 %v9684_v20 }
0x1c34   :  { %7545 = vmatmul.mubr.msk.f32.vlgmr.msra.gmra.mxu1 %vm242_vm3, %v3759_v27  ;;  %7566 = vmatprep.subr.mxu1 %v8378_v7  ;;  %v9797_v27 = vld [vmem:[%s10528_s13 + $0x48] sm:$0xff] }
0x1c35   :  { %7567 = vmatpush3.msra.mxu1 %v9569_v50  ;;  %7574 = vmatprep.mubr.msk.f32.mxu1 %vm8381_vm7, %v8378_v7 }
0x1c36   :  { %7568 = vmatprep.subr.mxu1 %v8378_v7 }
0x1c37   :  { %7569 = vmatpush3.msra.mxu1 %v9578_v18 }
0x1c38   :  { %7570 = vmatprep.subr.mxu1 %v8378_v7 }
0x1c39   :  { %7571 = vmatpush3.msra.mxu1 %v9587_v56 }
0x1c3a   :  { %7572 = vmatprep.subr.mxu1 %v8378_v7 }
0x1c3b   :  { %7573 = vmatpush3.msra.mxu1 %v9594_v47 }
0x1c3c   :  { %7575 = vmatmul.mubr.msk.f32.vlgmr.msra.gmra.mxu1 %vm181_vm2, %v3754_v2  ;;  %7596 = vmatprep.subr.mxu1 %v8378_v7  ;;  %v9779_v2 = vld [vmem:[%s10528_s13 + $0x58] sm:$0xff] }
0x1c3d   :  { %7612 = vmatprep.mubr.msk.f32.mxu1 %vm8381_vm7, %v8378_v7  ;;  %7597 = vmatpush3.msra.mxu1 %v9748_v61 }
0x1c3e   :  { %7598 = vmatprep.subr.mxu1 %v8378_v7 }
0x1ce4   :  { %v3603_v33 = vpop.f32.mrf.mxu1 }
0x1ce5   :  { %v3604_v35 = vadd.f32 %v9519_v22, %v3603_v33 }
0x1ce6   :  { %v7516_v36 = vpop.f32.mrf.mxu1 }
0x1ce7   :  { %8120 = vtanh.f32 %v3604_v35  ;;  %v6533_v10 = vmul.f32 -1.442695, %v3604_v35  ;;  %v9807_v36 = vld [vmem:[%s10528_s13 + $0x40] sm:$0xff] }
0x1cf4   :  { %v8121_v58 = vpop.eup %8120  ;;  %v3833_v38 = vpop.f32.mrf.mxu1 }
0x1cf5   :  { %v3834_v40 = vadd.f32 %v9709_v37, %v3833_v38  ;;  %3616 = vrot.lane.b32.xlu0 %v8121_v58, %s8379_s25 }
0x1cf6   :  { %v7546_v14 = vpop.f32.mrf.mxu1 }
0x1cf7   :  { %8122 = vtanh.f32 %v3834_v40  ;;  %v6546_v42 = vmul.f32 -1.442695, %v3834_v40 }
0x1cfc   :  { %v4047_v4 = vpop.f32.mrf.mxu1 }
0x1cfd   :  { %v4051_v6 = vadd.f32 %v4047_v4, %v3978_v54 }
0x1cfe   :  { %v7576_v32 = vpop.f32.mrf.mxu1 }
0x1cff   :  { %8124 = vtanh.f32 %v4051_v6  ;;  %v6551_v13 = vmul.f32 -1.442695, %v4051_v6 }
0x1d00   :  { %8126 = vpow2.f32 %v6533_v10  ;;  %v9878_v10 = vld [vmem:[%s10529_s14 + $0x2] ss:$0 sm:$0xff] }
0x1d01   :  { %8128 = vpow2.f32 %v6546_v42 }
0x1d04   :  { %v8123_v22 = vpop.eup %8122 }
0x1d05   :  { %3846 = vrot.lane.b32.xlu1 %v8123_v22, %s8379_s25 }
0x1d0c   :  { %v8125_v8 = vpop.eup %8124 }
0x1d0d   :  { %4061 = vrot.lane.b32.xlu0 %v8125_v8, %s8379_s25  ;;  %v8127_v1 = vpop.eup %8126 }
0x1d0e   :  { %v3610_v5 = vadd.f32 1.0, %v8127_v1  ;;  %v8129_v57 = vpop.eup %8128 }
0x1d0f   :  { %v3840_v9 = vadd.f32 1.0, %v8129_v57 }
0x1d10   :  { %8130 = vrcp.f32 %v3610_v5 }
0x1d11   :  { %8132 = vpow2.f32 %v6551_v13 }
0x1d12   :  { %8134 = vrcp.f32 %v3840_v9 }
0x1d1d   :  { %v9715_v16 = vpop.eup %8130 }
0x1d1e   :  { %v8133_v39 = vpop.eup %8132  ;;  %v3614_v12 = vmul.f32 %v9715_v16, %v9612_v52 }
0x1d1f   :  { %v4055_v43 = vadd.f32 1.0, %v8133_v39  ;;  %v9719_v46 = vpop.eup %8134 }
0x1d20   :  { %v3844_v25 = vmul.f32 %v9719_v46, %v9616_v41 }
0x1d21   :  { %8136 = vrcp.f32 %v4055_v43 }
0x1d2e   :  { %v9723_v26 = vpop.eup %8136 }
0x1d2f   :  { %v4059_v17 = vmul.f32 %v9723_v26, %v9621_v28  ;;  %v9753_v28 = vld [vmem:[%s10528_s13 + $0x70] sm:$0xff] }
0x1d30   :  { %7550 = vmatpush3.msra.mxu0 %v9753_v28  ;;  %7599 = vmatpush3.msra.mxu1 %v9753_v28 }
0x1d31   :  { %7551 = vmatprep.subr.mxu0 %v8378_v7  ;;  %7600 = vmatprep.subr.mxu1 %v8378_v7 }
0x1d32   :  { %7552 = vmatpush3.msra.mxu0 %v9761_v49  ;;  %7601 = vmatpush3.msra.mxu1 %v9761_v49 }
0x1d33   :  { %7553 = vmatprep.subr.mxu0 %v8378_v7  ;;  %7602 = vmatprep.subr.mxu1 %v8378_v7 }
0x1d34   :  { %7554 = vmatpush3.msra.mxu0 %v9770_v24  ;;  %7603 = vmatpush3.msra.mxu1 %v9770_v24 }
0x1d35   :  { %7555 = vmatprep.subr.mxu0 %v8378_v7  ;;  %7604 = vmatprep.subr.mxu1 %v8378_v7 }
0x1d36   :  { %7556 = vmatpush3.msra.mxu0 %v9779_v2  ;;  %7605 = vmatpush3.msra.mxu1 %v9779_v2 }
0x1d37   :  { %7557 = vmatprep.subr.mxu0 %v8378_v7  ;;  %7606 = vmatprep.subr.mxu1 %v8378_v7 }
0x1d38   :  { %7558 = vmatpush3.msra.mxu0 %v9788_v23  ;;  %7607 = vmatpush3.msra.mxu1 %v9788_v23 }
0x1d39   :  { %7559 = vmatprep.subr.mxu0 %v8378_v7  ;;  %7608 = vmatprep.subr.mxu1 %v8378_v7 }
0x1d3a   :  { %7560 = vmatpush3.msra.mxu0 %v9797_v27  ;;  %7609 = vmatpush3.msra.mxu1 %v9797_v27 }
0x1d3b   :  { %7561 = vmatprep.subr.mxu0 %v8378_v7  ;;  %7610 = vmatprep.subr.mxu1 %v8378_v7 }
0x1d3c   :  { %7562 = vmatpush3.msra.mxu0 %v9807_v36  ;;  %7611 = vmatpush3.msra.mxu1 %v9807_v36 }
0x1d3d   :  { %7577 = vmatprep.subr.mxu0 %v8378_v7  ;;  %7626 = vmatprep.subr.mxu1 %v8378_v7 }
0x1d67   :  { %v3617_v3 = vpop.permute.xlu0 %3616 }
0x1d68   :  { %v3619_v19 = vmul.f32 %v9715_v16, %v3617_v3  ;;  %v4293_v3 = vld [vmem:[#allocation4 + $0x4] sm:$0x3] }
0x1d6a   :  { %3621 = vrot.lane.b32.xlu1 %v3619_v19, %s8380_s26 }
0x1d77   :  { %v3847_v48 = vpop.permute.xlu1 %3846 }
0x1d78   :  { %v3849_v11 = vmul.f32 %v9719_v46, %v3847_v48 }
0x1d7a   :  { %3851 = vrot.lane.b32.xlu0 %v3849_v11, %s8380_s26 }
0x1d7f   :  { %v4062_v29 = vpop.permute.xlu0 %4061 }
0x1d80   :  { %v4064_v34 = vmul.f32 %v9723_v26, %v4062_v29 }
0x1d82   :  { %4066 = vrot.lane.b32.xlu1 %v4064_v34, %s8380_s26 }
0x1ddc   :  { %v3622_v15 = vpop.permute.xlu1 %3621 }
0x1ddd   :  { %v9729_v30 = vadd.f32 %v3622_v15, %v3614_v12 }
0x1ddf   :  { %8138 = vtanh.f32 %v9729_v30 }
0x1dec   :  { %v8139_v55 = vpop.eup %8138  ;;  %v3852_v21 = vpop.permute.xlu0 %3851 }
0x1ded   :  { %v9734_v31 = vadd.f32 %v3852_v21, %v3844_v25  ;;  %3627 = vrot.lane.b32.xlu0 %v8139_v55, %s8379_s25 }
0x1def   :  { %8140 = vtanh.f32 %v9734_v31 }
0x1df4   :  { %v4067_v52 = vpop.permute.xlu1 %4066 }
0x1df5   :  { %v9740_v59 = vadd.f32 %v4067_v52, %v4059_v17 }
0x1df7   :  { %8142 = vtanh.f32 %v9740_v59 }
0x1dfc   :  { %v8141_v60 = vpop.eup %8140 }
0x1dfd   :  { %3857 = vrot.lane.b32.xlu1 %v8141_v60, %s8379_s25 }
0x1e04   :  { %v8143_v41 = vpop.eup %8142 }
0x1e05   :  { %4072 = vrot.lane.b32.xlu0 %v8143_v41, %s8379_s25 }
0x1e5f   :  { %v3628_v33 = vpop.permute.xlu0 %3627 }
0x1e60   :  { %v3630_v35 = vmul.f32 %v9715_v16, %v3628_v33 }
0x1e62   :  { %3866 = vrot.lane.b32.xlu0 %v3630_v35, %s8379_s25 }
0x1e6f   :  { %v3858_v58 = vpop.permute.xlu1 %3857 }
0x1e70   :  { %v3860_v38 = vmul.f32 %v9719_v46, %v3858_v58 }
0x1e72   :  { %3862 = vrot.lane.b32.xlu1 %v3860_v38, %s8380_s26  ;;  %4080 = vrot.lane.b32.xlu0 %v3860_v38, %s8379_s25 }
0x1e77   :  { %v4073_v40 = vpop.permute.xlu0 %4072 }
0x1e78   :  { %v4075_v14 = vmul.f32 %v9723_v26, %v4073_v40 }
0x1e7a   :  { %4077 = vrot.lane.b32.xlu1 %v4075_v14, %s8380_s26 }
0x1ed4   :  { %v3867_v54 = vpop.permute.xlu0 %3866 }
0x1ee4   :  { %v3863_v4 = vpop.permute.xlu1 %3862  ;;  %v4081_v22 = vpop.permute.xlu0 %4080 }
0x1ee5   :  { %v3869_v6 = vsel %vm181_vm2, %v3863_v4, %v3867_v54 }
0x1ee6   :  { %7564 = vmatmul.mubr.msk.f32.vlgmr.msra.gmra.mxu0 %vm242_vm3, %v3869_v6 }
0x1ee7   :  { %7578 = vmatpush3.msra.mxu0 %v9633_v62  ;;  %7593 = vmatprep.mubr.msk.f32.mxu0 %vm8381_vm7, %v8378_v7 }
0x1ee8   :  { %7579 = vmatprep.subr.mxu0 %v8378_v7 }
0x1ee9   :  { %7580 = vmatpush3.msra.mxu0 %v9640_v63 }
0x1eea   :  { %7581 = vmatprep.subr.mxu0 %v8378_v7 }
0x1eeb   :  { %7582 = vmatpush3.msra.mxu0 %v9649_v0 }
0x1eec   :  { %7583 = vmatprep.subr.mxu0 %v8378_v7  ;;  %v4078_v32 = vpop.permute.xlu1 %4077 }
0x1eed   :  { %7584 = vmatpush3.msra.mxu0 %v9656_v44  ;;  %v4083_v8 = vsel %vm181_vm2, %v4078_v32, %v4081_v22 }
0x1eee   :  { %7585 = vmatprep.subr.mxu0 %v8378_v7 }
0x1eef   :  { %7586 = vmatpush3.msra.mxu0 %v9663_v45 }
0x1ef0   :  { %7587 = vmatprep.subr.mxu0 %v8378_v7 }
0x1ef1   :  { %7588 = vmatpush3.msra.mxu0 %v9670_v51 }
0x1ef2   :  { %7589 = vmatprep.subr.mxu0 %v8378_v7 }
0x1ef3   :  { %7590 = vmatpush3.msra.mxu0 %v9677_v53 }
0x1ef4   :  { %7591 = vmatprep.subr.mxu0 %v8378_v7 }
0x1ef5   :  { %7592 = vmatpush3.msra.mxu0 %v9684_v20 }
0x1ef6   :  { %7594 = vmatmul.mubr.msk.f32.vlgmr.msra.gmra.mxu0 %vm242_vm3, %v4083_v8  ;;  %7615 = vmatprep.subr.mxu0 %v8378_v7 }
0x1ef7   :  { %7616 = vmatpush3.msra.mxu0 %v9569_v50  ;;  %7623 = vmatprep.mubr.msk.f32.mxu0 %vm8381_vm7, %v8378_v7 }
0x1ef8   :  { %7617 = vmatprep.subr.mxu0 %v8378_v7 }
0x1ef9   :  { %7618 = vmatpush3.msra.mxu0 %v9578_v18 }
0x1efa   :  { %7619 = vmatprep.subr.mxu0 %v8378_v7 }
0x1efb   :  { %7620 = vmatpush3.msra.mxu0 %v9587_v56 }
0x1efc   :  { %7621 = vmatprep.subr.mxu0 %v8378_v7 }
0x1efd   :  { %7622 = vmatpush3.msra.mxu0 %v9594_v47 }
0x1efe   :  { %7624 = vmatmul.mubr.msk.f32.vlgmr.msra.gmra.mxu0 %vm181_vm2, %v4078_v32  ;;  %7645 = vmatprep.subr.mxu0 %v8378_v7 }
0x1eff   :  { %7646 = vmatpush3.msra.mxu0 %v9748_v61  ;;  %7661 = vmatprep.mubr.msk.f32.mxu0 %vm8381_vm7, %v8378_v7 }
0x1f00   :  { %7647 = vmatprep.subr.mxu0 %v8378_v7 }
0x1f01   :  { %7648 = vmatpush3.msra.mxu0 %v9753_v28 }
0x1f02   :  { %7649 = vmatprep.subr.mxu0 %v8378_v7 }
0x1f03   :  { %7650 = vmatpush3.msra.mxu0 %v9761_v49 }
0x1f04   :  { %7651 = vmatprep.subr.mxu0 %v8378_v7 }
0x1f05   :  { %7652 = vmatpush3.msra.mxu0 %v9770_v24 }
0x1f06   :  { %7653 = vmatprep.subr.mxu0 %v8378_v7 }
0x1f07   :  { %7654 = vmatpush3.msra.mxu0 %v9779_v2 }
0x1f08   :  { %7655 = vmatprep.subr.mxu0 %v8378_v7 }
0x1f09   :  { %7656 = vmatpush3.msra.mxu0 %v9788_v23 }
0x1f0a   :  { %7657 = vmatprep.subr.mxu0 %v8378_v7 }
0x1f0b   :  { %7658 = vmatpush3.msra.mxu0 %v9797_v27 }
0x1f0c   :  { %7659 = vmatprep.subr.mxu0 %v8378_v7 }
0x1f0d   :  { %7660 = vmatpush3.msra.mxu0 %v9807_v36 }
0x1f0e   :  { %7675 = vmatprep.subr.mxu0 %v8378_v7 }
0x1fa6   :  { %v3943_v42 = vpop.f32.mrf.mxu0 }
0x1fa7   :  { %v3944_v1 = vadd.f32 %v9878_v10, %v3943_v42 }
0x1fa8   :  { %v7565_v5 = vpop.f32.mrf.mxu0 }
0x1fa9   :  { %8144 = vtanh.f32 %v3944_v1  ;;  %v6549_v11 = vmul.f32 -1.442695, %v3944_v1 }
0x1fb6   :  { %v8145_v13 = vpop.eup %8144  ;;  %v4153_v57 = vpop.f32.mrf.mxu0 }
0x1fb7   :  { %v4154_v9 = vadd.f32 %v9709_v37, %v4153_v57  ;;  %3956 = vrot.lane.b32.xlu1 %v8145_v13, %s8379_s25 }
0x1fb8   :  { %v7595_v16 = vpop.f32.mrf.mxu0 }
0x1fb9   :  { %8146 = vtanh.f32 %v4154_v9  ;;  %v6553_v26 = vmul.f32 -1.442695, %v4154_v9 }
0x1fbe   :  { %v4362_v19 = vpop.f32.mrf.mxu0 }
0x1fbf   :  { %v4366_v39 = vadd.f32 %v4362_v19, %v4293_v3 }
0x1fc0   :  { %v7625_v43 = vpop.f32.mrf.mxu0 }
0x1fc1   :  { %8148 = vtanh.f32 %v4366_v39  ;;  %v6557_v12 = vmul.f32 -1.442695, %v4366_v39 }
0x1fc2   :  { %8150 = vpow2.f32 %v6549_v11 }
0x1fc3   :  { %8152 = vpow2.f32 %v6553_v26 }
0x1fc6   :  { %v8147_v46 = vpop.eup %8146 }
0x1fc7   :  { %4166 = vrot.lane.b32.xlu0 %v8147_v46, %s8379_s25 }
0x1fce   :  { %v8149_v48 = vpop.eup %8148 }
0x1fcf   :  { %4376 = vrot.lane.b32.xlu1 %v8149_v48, %s8379_s25  ;;  %v8151_v29 = vpop.eup %8150 }
0x1fd0   :  { %v3950_v34 = vadd.f32 1.0, %v8151_v29  ;;  %v8153_v15 = vpop.eup %8152 }
0x1fd1   :  { %v4160_v25 = vadd.f32 1.0, %v8153_v15 }
0x1fd2   :  { %8154 = vrcp.f32 %v3950_v34 }
0x1fd3   :  { %8156 = vpow2.f32 %v6557_v12  ;;  %v4608_v12 = vld [vmem:[#allocation4 + $0x6] sm:$0x3] }
0x1fd4   :  { %8158 = vrcp.f32 %v4160_v25 }
0x1fdf   :  { %v8155_v55 = vpop.eup %8154 }
0x1fe0   :  { %v8157_v52 = vpop.eup %8156  ;;  %v3954_v14 = vmul.f32 %v8155_v55, %v9729_v30 }
0x1fe1   :  { %v4370_v60 = vadd.f32 1.0, %v8157_v52  ;;  %v8159_v41 = vpop.eup %8158 }
0x1fe2   :  { %v4164_v6 = vmul.f32 %v8159_v41, %v9734_v31 }
0x1fe3   :  { %8160 = vrcp.f32 %v4370_v60 }
0x1ff0   :  { %v8161_v58 = vpop.eup %8160 }
0x1ff1   :  { %v4374_v42 = vmul.f32 %v8161_v58, %v9740_v59 }
0x2029   :  { %v3957_v21 = vpop.permute.xlu1 %3956 }
0x202a   :  { %v3959_v17 = vmul.f32 %v8155_v55, %v3957_v21 }
0x202c   :  { %3961 = vrot.lane.b32.xlu0 %v3959_v17, %s8380_s26 }
0x2039   :  { %v4167_v33 = vpop.permute.xlu0 %4166 }
0x203a   :  { %v4169_v35 = vmul.f32 %v8159_v41, %v4167_v33 }
0x203c   :  { %4171 = vrot.lane.b32.xlu1 %v4169_v35, %s8380_s26 }
0x2041   :  { %v4377_v38 = vpop.permute.xlu1 %4376 }
0x2042   :  { %v4379_v40 = vmul.f32 %v8161_v58, %v4377_v38 }
0x2044   :  { %4381 = vrot.lane.b32.xlu0 %v4379_v40, %s8380_s26 }
0x209e   :  { %v3962_v54 = vpop.permute.xlu0 %3961 }
0x209f   :  { %v9889_v4 = vadd.f32 %v3962_v54, %v3954_v14 }
0x20a1   :  { %8162 = vtanh.f32 %v9889_v4 }
0x20ae   :  { %v8163_v32 = vpop.eup %8162  ;;  %v4172_v22 = vpop.permute.xlu1 %4171 }
0x20af   :  { %v9893_v8 = vadd.f32 %v4172_v22, %v4164_v6  ;;  %3967 = vrot.lane.b32.xlu1 %v8163_v32, %s8379_s25 }
0x20b1   :  { %8164 = vtanh.f32 %v9893_v8 }
0x20b6   :  { %v4382_v1 = vpop.permute.xlu0 %4381 }
0x20b7   :  { %v9898_v5 = vadd.f32 %v4382_v1, %v4374_v42 }
0x20b9   :  { %8166 = vtanh.f32 %v9898_v5 }
0x20be   :  { %v8165_v30 = vpop.eup %8164 }
0x20bf   :  { %4177 = vrot.lane.b32.xlu0 %v8165_v30, %s8379_s25 }
0x20c6   :  { %v8167_v13 = vpop.eup %8166 }
0x20c7   :  { %4387 = vrot.lane.b32.xlu1 %v8167_v13, %s8379_s25 }
0x2121   :  { %v3968_v31 = vpop.permute.xlu1 %3967 }
0x2122   :  { %v9903_v57 = vmul.f32 %v8155_v55, %v3968_v31 }
0x2124   :  { %4185 = vrot.lane.b32.xlu1 %v9903_v57, %s8379_s25 }
0x2131   :  { %v4178_v9 = vpop.permute.xlu0 %4177 }
0x2132   :  { %v4180_v16 = vmul.f32 %v8159_v41, %v4178_v9 }
0x2134   :  { %4182 = vrot.lane.b32.xlu0 %v4180_v16, %s8380_s26  ;;  %4395 = vrot.lane.b32.xlu1 %v4180_v16, %s8379_s25 }
0x2139   :  { %v4388_v59 = vpop.permute.xlu1 %4387 }
0x213a   :  { %v4390_v3 = vmul.f32 %v8161_v58, %v4388_v59 }
0x213c   :  { %4392 = vrot.lane.b32.xlu0 %v4390_v3, %s8380_s26 }
0x2196   :  { %v4186_v19 = vpop.permute.xlu1 %4185 }
0x21a6   :  { %v4183_v39 = vpop.permute.xlu0 %4182  ;;  %v4396_v48 = vpop.permute.xlu1 %4395 }
0x21a7   :  { %v4188_v43 = vsel %vm181_vm2, %v4183_v39, %v4186_v19 }
0x21a8   :  { %7613 = vmatmul.mubr.msk.f32.vlgmr.msra.gmra.mxu1 %vm242_vm3, %v4188_v43 }
0x21a9   :  { %7627 = vmatpush3.msra.mxu1 %v9633_v62  ;;  %7642 = vmatprep.mubr.msk.f32.mxu1 %vm8381_vm7, %v8378_v7 }
0x21aa   :  { %7628 = vmatprep.subr.mxu1 %v8378_v7 }
0x21ab   :  { %7629 = vmatpush3.msra.mxu1 %v9640_v63 }
0x21ac   :  { %7630 = vmatprep.subr.mxu1 %v8378_v7 }
0x21ad   :  { %7631 = vmatpush3.msra.mxu1 %v9649_v0 }
0x21ae   :  { %7632 = vmatprep.subr.mxu1 %v8378_v7  ;;  %v4393_v46 = vpop.permute.xlu0 %4392 }
0x21af   :  { %7633 = vmatpush3.msra.mxu1 %v9656_v44  ;;  %v4398_v11 = vsel %vm181_vm2, %v4393_v46, %v4396_v48 }
0x21b0   :  { %7634 = vmatprep.subr.mxu1 %v8378_v7 }
0x21b1   :  { %7635 = vmatpush3.msra.mxu1 %v9663_v45 }
0x21b2   :  { %7636 = vmatprep.subr.mxu1 %v8378_v7 }
0x21b3   :  { %7637 = vmatpush3.msra.mxu1 %v9670_v51 }
0x21b4   :  { %7638 = vmatprep.subr.mxu1 %v8378_v7 }
0x21b5   :  { %7639 = vmatpush3.msra.mxu1 %v9677_v53 }
0x21b6   :  { %7640 = vmatprep.subr.mxu1 %v8378_v7 }
0x21b7   :  { %7641 = vmatpush3.msra.mxu1 %v9684_v20 }
0x21b8   :  { %7643 = vmatmul.mubr.msk.f32.vlgmr.msra.gmra.mxu1 %vm242_vm3, %v4398_v11  ;;  %7664 = vmatprep.subr.mxu1 %v8378_v7 }
0x21b9   :  { %7665 = vmatpush3.msra.mxu1 %v9569_v50  ;;  %7672 = vmatprep.mubr.msk.f32.mxu1 %vm8381_vm7, %v8378_v7 }
0x21ba   :  { %7666 = vmatprep.subr.mxu1 %v8378_v7 }
0x21bb   :  { %7667 = vmatpush3.msra.mxu1 %v9578_v18 }
0x21bc   :  { %7668 = vmatprep.subr.mxu1 %v8378_v7 }
0x21bd   :  { %7669 = vmatpush3.msra.mxu1 %v9587_v56 }
0x21be   :  { %7670 = vmatprep.subr.mxu1 %v8378_v7 }
0x21bf   :  { %7671 = vmatpush3.msra.mxu1 %v9594_v47 }
0x21c0   :  { %7673 = vmatmul.mubr.msk.f32.vlgmr.msra.gmra.mxu1 %vm181_vm2, %v4393_v46  ;;  %7694 = vmatprep.subr.mxu1 %v8378_v7 }
0x21c1   :  { %7695 = vmatpush3.msra.mxu1 %v9748_v61  ;;  %7710 = vmatprep.mubr.msk.f32.mxu1 %vm8381_vm7, %v8378_v7 }
0x21c2   :  { %7696 = vmatprep.subr.mxu1 %v8378_v7 }
0x21c3   :  { %7697 = vmatpush3.msra.mxu1 %v9753_v28 }
0x21c4   :  { %7698 = vmatprep.subr.mxu1 %v8378_v7 }
0x21c5   :  { %7699 = vmatpush3.msra.mxu1 %v9761_v49 }
0x21c6   :  { %7700 = vmatprep.subr.mxu1 %v8378_v7 }
0x21c7   :  { %7701 = vmatpush3.msra.mxu1 %v9770_v24 }
0x21c8   :  { %7702 = vmatprep.subr.mxu1 %v8378_v7 }
0x21c9   :  { %7703 = vmatpush3.msra.mxu1 %v9779_v2 }
0x21ca   :  { %7704 = vmatprep.subr.mxu1 %v8378_v7 }
0x21cb   :  { %7705 = vmatpush3.msra.mxu1 %v9788_v23 }
0x21cc   :  { %7706 = vmatprep.subr.mxu1 %v8378_v7 }
0x21cd   :  { %7707 = vmatpush3.msra.mxu1 %v9797_v27 }
0x21ce   :  { %7708 = vmatprep.subr.mxu1 %v8378_v7 }
0x21cf   :  { %7709 = vmatpush3.msra.mxu1 %v9807_v36 }
0x21d0   :  { %7724 = vmatprep.subr.mxu1 %v8378_v7 }
0x2268   :  { %v4258_v50 = vpop.f32.mrf.mxu1 }
0x2269   :  { %v4259_v18 = vadd.f32 %v9878_v10, %v4258_v50 }
0x226a   :  { %v7614_v56 = vpop.f32.mrf.mxu1 }
0x226b   :  { %8168 = vtanh.f32 %v4259_v18  ;;  %v6555_v52 = vmul.f32 -1.442695, %v4259_v18 }
0x2278   :  { %v8169_v47 = vpop.eup %8168  ;;  %v4468_v26 = vpop.f32.mrf.mxu1 }
0x2279   :  { %v4469_v29 = vadd.f32 %v9709_v37, %v4468_v26  ;;  %4271 = vrot.lane.b32.xlu0 %v8169_v47, %s8379_s25 }
0x227a   :  { %v7644_v34 = vpop.f32.mrf.mxu1 }
0x227b   :  { %8170 = vtanh.f32 %v4469_v29  ;;  %v6559_v60 = vmul.f32 -1.442695, %v4469_v29 }
0x2280   :  { %v4677_v15 = vpop.f32.mrf.mxu1 }
0x2281   :  { %v4681_v25 = vadd.f32 %v4677_v15, %v4608_v12 }
0x2282   :  { %v7674_v55 = vpop.f32.mrf.mxu1 }
0x2283   :  { %8172 = vtanh.f32 %v4681_v25  ;;  %v6563_v35 = vmul.f32 -1.442695, %v4681_v25 }
0x2284   :  { %8174 = vpow2.f32 %v6555_v52 }
0x2285   :  { %8176 = vpow2.f32 %v6559_v60  ;;  %v4923_v60 = vld [vmem:[#allocation4 + $0x8] sm:$0x3] }
0x2288   :  { %v8171_v21 = vpop.eup %8170 }
0x2289   :  { %4481 = vrot.lane.b32.xlu1 %v8171_v21, %s8379_s25 }
0x2290   :  { %v8173_v17 = vpop.eup %8172 }
0x2291   :  { %4691 = vrot.lane.b32.xlu0 %v8173_v17, %s8379_s25  ;;  %v8175_v41 = vpop.eup %8174 }
0x2292   :  { %v4265_v33 = vadd.f32 1.0, %v8175_v41  ;;  %v8177_v58 = vpop.eup %8176 }
0x2293   :  { %v4475_v38 = vadd.f32 1.0, %v8177_v58 }
0x2294   :  { %8178 = vrcp.f32 %v4265_v33 }
0x2295   :  { %8180 = vpow2.f32 %v6563_v35 }
0x2296   :  { %8182 = vrcp.f32 %v4475_v38 }
0x22a1   :  { %v8179_v40 = vpop.eup %8178 }
0x22a2   :  { %v8181_v6 = vpop.eup %8180  ;;  %v4269_v9 = vmul.f32 %v8179_v40, %v9889_v4 }
0x22a3   :  { %v4685_v32 = vadd.f32 1.0, %v8181_v6  ;;  %v8183_v22 = vpop.eup %8182 }
0x22a4   :  { %v4479_v3 = vmul.f32 %v8183_v22, %v9893_v8 }
0x22a5   :  { %8184 = vrcp.f32 %v4685_v32 }
0x22b2   :  { %v8185_v30 = vpop.eup %8184 }
0x22b3   :  { %v4689_v46 = vmul.f32 %v8185_v30, %v9898_v5 }
0x22eb   :  { %v4272_v14 = vpop.permute.xlu0 %4271 }
0x22ec   :  { %v4274_v54 = vmul.f32 %v8179_v40, %v4272_v14 }
0x22ee   :  { %4276 = vrot.lane.b32.xlu1 %v4274_v54, %s8380_s26 }
0x22fb   :  { %v4482_v42 = vpop.permute.xlu1 %4481 }
0x22fc   :  { %v4484_v1 = vmul.f32 %v8183_v22, %v4482_v42 }
0x22fe   :  { %4486 = vrot.lane.b32.xlu0 %v4484_v1, %s8380_s26 }
0x2303   :  { %v4692_v13 = vpop.permute.xlu0 %4691 }
0x2304   :  { %v4694_v31 = vmul.f32 %v8185_v30, %v4692_v13 }
0x2306   :  { %4696 = vrot.lane.b32.xlu1 %v4694_v31, %s8380_s26 }
0x2360   :  { %v4277_v16 = vpop.permute.xlu1 %4276 }
0x2361   :  { %v9970_v59 = vadd.f32 %v4277_v16, %v4269_v9 }
0x2363   :  { %8186 = vtanh.f32 %v9970_v59 }
0x2370   :  { %v8187_v19 = vpop.eup %8186  ;;  %v4487_v39 = vpop.permute.xlu0 %4486 }
0x2371   :  { %v9974_v43 = vadd.f32 %v4487_v39, %v4479_v3  ;;  %4282 = vrot.lane.b32.xlu0 %v8187_v19, %s8379_s25 }
0x2373   :  { %8188 = vtanh.f32 %v9974_v43 }
0x2378   :  { %v4697_v48 = vpop.permute.xlu1 %4696 }
0x2379   :  { %v9979_v11 = vadd.f32 %v4697_v48, %v4689_v46 }
0x237b   :  { %8190 = vtanh.f32 %v9979_v11 }
0x2380   :  { %v8189_v4 = vpop.eup %8188 }
0x2381   :  { %4492 = vrot.lane.b32.xlu1 %v8189_v4, %s8379_s25 }
0x2388   :  { %v8191_v50 = vpop.eup %8190 }
0x2389   :  { %4702 = vrot.lane.b32.xlu0 %v8191_v50, %s8379_s25 }
0x23e3   :  { %v4283_v8 = vpop.permute.xlu0 %4282 }
0x23e4   :  { %v9984_v18 = vmul.f32 %v8179_v40, %v4283_v8 }
0x23e6   :  { %4500 = vrot.lane.b32.xlu0 %v9984_v18, %s8379_s25 }
0x23f3   :  { %v4493_v56 = vpop.permute.xlu1 %4492 }
0x23f4   :  { %v4495_v47 = vmul.f32 %v8183_v22, %v4493_v56 }
0x23f6   :  { %4497 = vrot.lane.b32.xlu1 %v4495_v47, %s8380_s26  ;;  %4710 = vrot.lane.b32.xlu0 %v4495_v47, %s8379_s25 }
0x23fb   :  { %v4703_v5 = vpop.permute.xlu0 %4702 }
0x23fc   :  { %v4705_v26 = vmul.f32 %v8185_v30, %v4703_v5 }
0x23fe   :  { %4707 = vrot.lane.b32.xlu1 %v4705_v26, %s8380_s26 }
0x2458   :  { %v4501_v29 = vpop.permute.xlu0 %4500 }
0x2468   :  { %v4498_v34 = vpop.permute.xlu1 %4497 }
0x2469   :  { %v4503_v12 = vsel %vm181_vm2, %v4498_v34, %v4501_v29 }
0x246a   :  { %7662 = vmatmul.mubr.msk.f32.vlgmr.msra.gmra.mxu0 %vm242_vm3, %v4503_v12 }
0x246b   :  { %7676 = vmatpush3.msra.mxu0 %v9633_v62  ;;  %7691 = vmatprep.mubr.msk.f32.mxu0 %vm8381_vm7, %v8378_v7 }
0x246c   :  { %7677 = vmatprep.subr.mxu0 %v8378_v7 }
0x246d   :  { %7678 = vmatpush3.msra.mxu0 %v9640_v63  ;;  %v4711_v63 = vpop.permute.xlu0 %4710 }
0x246e   :  { %7679 = vmatprep.subr.mxu0 %v8378_v7 }
0x246f   :  { %7680 = vmatpush3.msra.mxu0 %v9649_v0 }
0x2470   :  { %7681 = vmatprep.subr.mxu0 %v8378_v7  ;;  %v4708_v62 = vpop.permute.xlu1 %4707 }
0x2471   :  { %7682 = vmatpush3.msra.mxu0 %v9656_v44  ;;  %v4713_v0 = vsel %vm181_vm2, %v4708_v62, %v4711_v63  ;;  %v10016_v44 = vld [vmem:[%s10527_s12 + $0x18] sm:$0xff] }
0x2472   :  { %7683 = vmatprep.subr.mxu0 %v8378_v7 }
0x2473   :  { %7684 = vmatpush3.msra.mxu0 %v9663_v45  ;;  %v10025_v45 = vld [vmem:[%s10527_s12 + $0x10] sm:$0xff] }
0x2474   :  { %7685 = vmatprep.subr.mxu0 %v8378_v7 }
0x2475   :  { %7686 = vmatpush3.msra.mxu0 %v9670_v51  ;;  %v10032_v51 = vld [vmem:[%s10527_s12 + $0x8] sm:$0xff] }
0x2476   :  { %7687 = vmatprep.subr.mxu0 %v8378_v7 }
0x2477   :  { %7688 = vmatpush3.msra.mxu0 %v9677_v53  ;;  %v10039_v53 = vld [vmem:[%s10527_s12] sm:$0xff] }
0x2478   :  { %7689 = vmatprep.subr.mxu0 %v8378_v7 }
0x2479   :  { %7690 = vmatpush3.msra.mxu0 %v9684_v20 }
0x247a   :  { %7692 = vmatmul.mubr.msk.f32.vlgmr.msra.gmra.mxu0 %vm242_vm3, %v4713_v0  ;;  %7713 = vmatprep.subr.mxu0 %v8378_v7 }
0x247b   :  { %7714 = vmatpush3.msra.mxu0 %v10016_v44  ;;  %7721 = vmatprep.mubr.msk.f32.mxu0 %vm8381_vm7, %v8378_v7 }
0x247c   :  { %7715 = vmatprep.subr.mxu0 %v8378_v7 }
0x247d   :  { %7716 = vmatpush3.msra.mxu0 %v10025_v45 }
0x247e   :  { %7717 = vmatprep.subr.mxu0 %v8378_v7 }
0x247f   :  { %7718 = vmatpush3.msra.mxu0 %v10032_v51 }
0x2480   :  { %7719 = vmatprep.subr.mxu0 %v8378_v7 }
0x2481   :  { %7720 = vmatpush3.msra.mxu0 %v10039_v53 }
0x2482   :  { %7722 = vmatmul.mubr.msk.f32.vlgmr.msra.gmra.mxu0 %vm181_vm2, %v4708_v62  ;;  %7743 = vmatprep.subr.mxu0 %v8378_v7 }
0x2483   :  { %7744 = vmatpush3.msra.mxu0 %v9748_v61  ;;  %7759 = vmatprep.mubr.msk.f32.mxu0 %vm8381_vm7, %v8378_v7 }
0x2484   :  { %7745 = vmatprep.subr.mxu0 %v8378_v7 }
0x2485   :  { %7746 = vmatpush3.msra.mxu0 %v9753_v28 }
0x2486   :  { %7747 = vmatprep.subr.mxu0 %v8378_v7 }
0x2487   :  { %7748 = vmatpush3.msra.mxu0 %v9761_v49 }
0x2488   :  { %7749 = vmatprep.subr.mxu0 %v8378_v7 }
0x2489   :  { %7750 = vmatpush3.msra.mxu0 %v9770_v24 }
0x248a   :  { %7751 = vmatprep.subr.mxu0 %v8378_v7 }
0x248b   :  { %7752 = vmatpush3.msra.mxu0 %v9779_v2 }
0x248c   :  { %7753 = vmatprep.subr.mxu0 %v8378_v7 }
0x248d   :  { %7754 = vmatpush3.msra.mxu0 %v9788_v23 }
0x248e   :  { %7755 = vmatprep.subr.mxu0 %v8378_v7 }
0x248f   :  { %7756 = vmatpush3.msra.mxu0 %v9797_v27 }
0x2490   :  { %7757 = vmatprep.subr.mxu0 %v8378_v7 }
0x2491   :  { %7758 = vmatpush3.msra.mxu0 %v9807_v36 }
0x2492   :  { %7773 = vmatprep.subr.mxu0 %v8378_v7 }
0x252a   :  { %v4573_v20 = vpop.f32.mrf.mxu0 }
0x252b   :  { %v4574_v15 = vadd.f32 %v9878_v10, %v4573_v20 }
0x252c   :  { %v7663_v25 = vpop.f32.mrf.mxu0 }
0x252d   :  { %8192 = vtanh.f32 %v4574_v15  ;;  %v6561_v40 = vmul.f32 -1.442695, %v4574_v15 }
0x253a   :  { %v8193_v55 = vpop.eup %8192  ;;  %v4783_v21 = vpop.f32.mrf.mxu0 }
0x253b   :  { %v4784_v17 = vadd.f32 %v9709_v37, %v4783_v21  ;;  %4586 = vrot.lane.b32.xlu1 %v8193_v55, %s8379_s25  ;;  %v10097_v21 = vld [vmem:[%s10528_s13 + $0x38] sm:$0xff] }
0x253c   :  { %v7693_v52 = vpop.f32.mrf.mxu0 }
0x253d   :  { %8194 = vtanh.f32 %v4784_v17  ;;  %v6565_v14 = vmul.f32 -1.442695, %v4784_v17  ;;  %v10106_v17 = vld [vmem:[%s10528_s13 + $0x30] sm:$0xff]  ;;  %v10113_v52 = vld [vmem:[%s10528_s13 + $0x28] sm:$0xff] }
0x2542   :  { %v4992_v41 = vpop.f32.mrf.mxu0 }
0x2543   :  { %v4996_v33 = vadd.f32 %v4992_v41, %v4923_v60  ;;  %v10120_v60 = vld [vmem:[%s10528_s13 + $0x20] sm:$0xff]  ;;  %v10127_v41 = vld [vmem:[%s10528_s13 + $0x18] sm:$0xff] }
0x2544   :  { %v7723_v35 = vpop.f32.mrf.mxu0 }
0x2545   :  { %8196 = vtanh.f32 %v4996_v33  ;;  %v6569_v6 = vmul.f32 -1.442695, %v4996_v33  ;;  %v10134_v33 = vld [vmem:[%s10528_s13 + $0x10] sm:$0xff] }
0x2546   :  { %8198 = vpow2.f32 %v6561_v40 }
0x2547   :  { %8200 = vpow2.f32 %v6565_v14  ;;  %v10149_v14 = vld [vmem:[%s10528_s13] sm:$0xff] }
0x254a   :  { %v8195_v58 = vpop.eup %8194 }
0x254b   :  { %4796 = vrot.lane.b32.xlu0 %v8195_v58, %s8379_s25  ;;  %v10141_v58 = vld [vmem:[%s10528_s13 + $0x8] sm:$0xff] }
0x2552   :  { %v8197_v38 = vpop.eup %8196 }
0x2553   :  { %5006 = vrot.lane.b32.xlu1 %v8197_v38, %s8379_s25  ;;  %v8199_v54 = vpop.eup %8198 }
0x2554   :  { %v4580_v37 = vadd.f32 1.0, %v8199_v54  ;;  %v8201_v32 = vpop.eup %8200 }
0x2555   :  { %v4790_v22 = vadd.f32 1.0, %v8201_v32 }
0x2556   :  { %8202 = vrcp.f32 %v4580_v37 }
0x2557   :  { %8204 = vpow2.f32 %v6569_v6 }
0x2558   :  { %8206 = vrcp.f32 %v4790_v22 }
0x2563   :  { %v8203_v42 = vpop.eup %8202 }
0x2564   :  { %v8205_v13 = vpop.eup %8204  ;;  %v4584_v48 = vmul.f32 %v8203_v42, %v9970_v59 }
0x2565   :  { %v5000_v31 = vadd.f32 1.0, %v8205_v13  ;;  %v8207_v9 = vpop.eup %8206 }
0x2566   :  { %v4794_v8 = vmul.f32 %v8207_v9, %v9974_v43 }
0x2567   :  { %8208 = vrcp.f32 %v5000_v31 }
0x2574   :  { %v8209_v19 = vpop.eup %8208 }
0x2575   :  { %v5004_v26 = vmul.f32 %v8209_v19, %v9979_v11 }
0x25ad   :  { %v4587_v1 = vpop.permute.xlu1 %4586 }
0x25ae   :  { %v4589_v30 = vmul.f32 %v8203_v42, %v4587_v1 }
0x25b0   :  { %4591 = vrot.lane.b32.xlu0 %v4589_v30, %s8380_s26 }
0x25bd   :  { %v4797_v16 = vpop.permute.xlu0 %4796 }
0x25be   :  { %v4799_v3 = vmul.f32 %v8207_v9, %v4797_v16 }
0x25c0   :  { %4801 = vrot.lane.b32.xlu1 %v4799_v3, %s8380_s26 }
0x25c5   :  { %v5007_v39 = vpop.permute.xlu1 %5006 }
0x25c6   :  { %v5009_v46 = vmul.f32 %v8209_v19, %v5007_v39 }
0x25c8   :  { %5011 = vrot.lane.b32.xlu0 %v5009_v46, %s8380_s26 }
0x2622   :  { %v4592_v4 = vpop.permute.xlu0 %4591 }
0x2623   :  { %v10071_v50 = vadd.f32 %v4592_v4, %v4584_v48 }
0x2625   :  { %8210 = vtanh.f32 %v10071_v50 }
0x2632   :  { %v8211_v56 = vpop.eup %8210  ;;  %v4802_v47 = vpop.permute.xlu1 %4801 }
0x2633   :  { %v10075_v5 = vadd.f32 %v4802_v47, %v4794_v8  ;;  %4597 = vrot.lane.b32.xlu1 %v8211_v56, %s8379_s25 }
0x2635   :  { %8212 = vtanh.f32 %v10075_v5 }
0x263a   :  { %v5012_v29 = vpop.permute.xlu0 %5011 }
0x263b   :  { %v10080_v34 = vadd.f32 %v5012_v29, %v5004_v26 }
0x263d   :  { %8214 = vtanh.f32 %v10080_v34 }
0x2642   :  { %v8213_v59 = vpop.eup %8212 }
0x2643   :  { %4807 = vrot.lane.b32.xlu0 %v8213_v59, %s8379_s25 }
0x264a   :  { %v8215_v12 = vpop.eup %8214 }
0x264b   :  { %5017 = vrot.lane.b32.xlu1 %v8215_v12, %s8379_s25 }
0x26a5   :  { %v4598_v43 = vpop.permute.xlu1 %4597 }
0x26a6   :  { %v10085_v62 = vmul.f32 %v8203_v42, %v4598_v43 }
0x26a8   :  { %4815 = vrot.lane.b32.xlu1 %v10085_v62, %s8379_s25 }
0x26b5   :  { %v4808_v63 = vpop.permute.xlu0 %4807 }
0x26b6   :  { %v4810_v0 = vmul.f32 %v8207_v9, %v4808_v63 }
0x26b8   :  { %4812 = vrot.lane.b32.xlu0 %v4810_v0, %s8380_s26  ;;  %5025 = vrot.lane.b32.xlu1 %v4810_v0, %s8379_s25 }
0x26bd   :  { %v5018_v11 = vpop.permute.xlu1 %5017 }
0x26be   :  { %v5020_v20 = vmul.f32 %v8209_v19, %v5018_v11 }
0x26c0   :  { %5022 = vrot.lane.b32.xlu0 %v5020_v20, %s8380_s26 }
0x271a   :  { %v4816_v15 = vpop.permute.xlu1 %4815 }
0x272a   :  { %v4813_v25 = vpop.permute.xlu0 %4812  ;;  %v5026_v38 = vpop.permute.xlu1 %5025 }
0x272b   :  { %v4818_v55 = vsel %vm181_vm2, %v4813_v25, %v4816_v15 }
0x272c   :  { %7711 = vmatmul.mubr.msk.f32.vlgmr.msra.gmra.mxu1 %vm242_vm3, %v4818_v55 }
0x272d   :  { %7725 = vmatpush3.msra.mxu1 %v10097_v21  ;;  %7740 = vmatprep.mubr.msk.f32.mxu1 %vm8381_vm7, %v8378_v7 }
0x272e   :  { %7726 = vmatprep.subr.mxu1 %v8378_v7 }
0x272f   :  { %7727 = vmatpush3.msra.mxu1 %v10106_v17 }
0x2730   :  { %7728 = vmatprep.subr.mxu1 %v8378_v7 }
0x2731   :  { %7729 = vmatpush3.msra.mxu1 %v10113_v52 }
0x2732   :  { %7730 = vmatprep.subr.mxu1 %v8378_v7  ;;  %v5023_v35 = vpop.permute.xlu0 %5022 }
0x2733   :  { %7731 = vmatpush3.msra.mxu1 %v10120_v60  ;;  %v5028_v40 = vsel %vm181_vm2, %v5023_v35, %v5026_v38 }
0x2734   :  { %7732 = vmatprep.subr.mxu1 %v8378_v7 }
0x2735   :  { %7733 = vmatpush3.msra.mxu1 %v10127_v41 }
0x2736   :  { %7734 = vmatprep.subr.mxu1 %v8378_v7 }
0x2737   :  { %7735 = vmatpush3.msra.mxu1 %v10134_v33 }
0x2738   :  { %7736 = vmatprep.subr.mxu1 %v8378_v7 }
0x2739   :  { %7737 = vmatpush3.msra.mxu1 %v10141_v58 }
0x273a   :  { %7738 = vmatprep.subr.mxu1 %v8378_v7 }
0x273b   :  { %7739 = vmatpush3.msra.mxu1 %v10149_v14 }
0x273c   :  { %7741 = vmatmul.mubr.msk.f32.vlgmr.msra.gmra.mxu1 %vm242_vm3, %v5028_v40  ;;  %7762 = vmatprep.subr.mxu1 %v8378_v7 }
0x273d   :  { %7763 = vmatpush3.msra.mxu1 %v10016_v44  ;;  %7770 = vmatprep.mubr.msk.f32.mxu1 %vm8381_vm7, %v8378_v7 }
0x273e   :  { %7764 = vmatprep.subr.mxu1 %v8378_v7 }
0x273f   :  { %7765 = vmatpush3.msra.mxu1 %v10025_v45 }
0x2740   :  { %7766 = vmatprep.subr.mxu1 %v8378_v7 }
0x2741   :  { %7767 = vmatpush3.msra.mxu1 %v10032_v51 }
0x2742   :  { %7768 = vmatprep.subr.mxu1 %v8378_v7 }
0x2743   :  { %7769 = vmatpush3.msra.mxu1 %v10039_v53 }
0x2744   :  { %7771 = vmatmul.mubr.msk.f32.vlgmr.msra.gmra.mxu1 %vm181_vm2, %v5023_v35  ;;  %7792 = vmatprep.subr.mxu1 %v8378_v7 }
0x2745   :  { %7793 = vmatpush3.msra.mxu1 %v9748_v61  ;;  %7808 = vmatprep.mubr.msk.f32.mxu1 %vm8381_vm7, %v8378_v7 }
0x2746   :  { %7794 = vmatprep.subr.mxu1 %v8378_v7 }
0x2747   :  { %7795 = vmatpush3.msra.mxu1 %v9753_v28 }
0x2748   :  { %7796 = vmatprep.subr.mxu1 %v8378_v7 }
0x2749   :  { %7797 = vmatpush3.msra.mxu1 %v9761_v49 }
0x274a   :  { %7798 = vmatprep.subr.mxu1 %v8378_v7 }
0x274b   :  { %7799 = vmatpush3.msra.mxu1 %v9770_v24 }
0x274c   :  { %7800 = vmatprep.subr.mxu1 %v8378_v7 }
0x274d   :  { %7801 = vmatpush3.msra.mxu1 %v9779_v2 }
0x274e   :  { %7802 = vmatprep.subr.mxu1 %v8378_v7 }
0x274f   :  { %7803 = vmatpush3.msra.mxu1 %v9788_v23  ;;  %v10187_v23 = vld [vmem:[%s10529_s14 + $0x1] ss:$0 sm:$0xff] }
0x2750   :  { %7804 = vmatprep.subr.mxu1 %v8378_v7 }
0x2751   :  { %7805 = vmatpush3.msra.mxu1 %v9797_v27 }
0x2752   :  { %7806 = vmatprep.subr.mxu1 %v8378_v7 }
0x2753   :  { %7807 = vmatpush3.msra.mxu1 %v9807_v36  ;;  %v5238_v36 = vld [vmem:[#allocation4 + $0xa] sm:$0x3] }
0x2754   :  { %7822 = vmatprep.subr.mxu1 %v8378_v7 }
0x27ec   :  { %v4888_v61 = vpop.f32.mrf.mxu1 }
0x27ed   :  { %v4889_v28 = vadd.f32 %v9878_v10, %v4888_v61 }
0x27ee   :  { %v7712_v49 = vpop.f32.mrf.mxu1 }
0x27ef   :  { %8216 = vtanh.f32 %v4889_v28  ;;  %v6567_v1 = vmul.f32 -1.442695, %v4889_v28 }
0x27fc   :  { %v8217_v24 = vpop.eup %8216  ;;  %v5098_v2 = vpop.f32.mrf.mxu1 }
0x27fd   :  { %v5099_v27 = vadd.f32 %v10187_v23, %v5098_v2  ;;  %4901 = vrot.lane.b32.xlu0 %v8217_v24, %s8379_s25 }
0x27fe   :  { %v7742_v54 = vpop.f32.mrf.mxu1 }
0x27ff   :  { %8218 = vtanh.f32 %v5099_v27  ;;  %v6571_v30 = vmul.f32 -1.442695, %v5099_v27 }
0x2804   :  { %v5307_v37 = vpop.f32.mrf.mxu1 }
0x2805   :  { %v5311_v6 = vadd.f32 %v5307_v37, %v5238_v36 }
0x2806   :  { %v7772_v32 = vpop.f32.mrf.mxu1 }
0x2807   :  { %8220 = vtanh.f32 %v5311_v6  ;;  %v6575_v9 = vmul.f32 -1.442695, %v5311_v6  ;;  %v10254_v6 = vld [vmem:[%s10528_s13 + $0x78] sm:$0xff]  ;;  %v10263_v32 = vld [vmem:[%s10528_s13 + $0x70] sm:$0xff] }
0x2808   :  { %8222 = vpow2.f32 %v6567_v1  ;;  %v10284_v1 = vld [vmem:[%s10528_s13 + $0x58] sm:$0xff] }
0x2809   :  { %8224 = vpow2.f32 %v6571_v30  ;;  %v10291_v30 = vld [vmem:[%s10528_s13 + $0x50] sm:$0xff] }
0x280c   :  { %v8219_v22 = vpop.eup %8218 }
0x280d   :  { %5111 = vrot.lane.b32.xlu1 %v8219_v22, %s8379_s25  ;;  %v10270_v22 = vld [vmem:[%s10528_s13 + $0x68] sm:$0xff] }
0x2814   :  { %v8221_v42 = vpop.eup %8220 }
0x2815   :  { %5321 = vrot.lane.b32.xlu0 %v8221_v42, %s8379_s25  ;;  %v8223_v13 = vpop.eup %8222  ;;  %v10277_v42 = vld [vmem:[%s10528_s13 + $0x60] sm:$0xff] }
0x2816   :  { %v4895_v31 = vadd.f32 1.0, %v8223_v13  ;;  %v8225_v16 = vpop.eup %8224  ;;  %v10298_v13 = vld [vmem:[%s10528_s13 + $0x48] sm:$0xff] }
0x2817   :  { %v5105_v3 = vadd.f32 1.0, %v8225_v16 }
0x2818   :  { %8226 = vrcp.f32 %v4895_v31  ;;  %v10305_v31 = vld [vmem:[%s10528_s13 + $0x40] sm:$0xff] }
0x2819   :  { %8228 = vpow2.f32 %v6575_v9 }
0x281a   :  { %8230 = vrcp.f32 %v5105_v3 }
0x2825   :  { %v8227_v19 = vpop.eup %8226 }
0x2826   :  { %v8229_v48 = vpop.eup %8228  ;;  %v4899_v12 = vmul.f32 %v8227_v19, %v10071_v50 }
0x2827   :  { %v5315_v4 = vadd.f32 1.0, %v8229_v48  ;;  %v8231_v8 = vpop.eup %8230 }
0x2828   :  { %v5109_v0 = vmul.f32 %v8231_v8, %v10075_v5 }
0x2829   :  { %8232 = vrcp.f32 %v5315_v4  ;;  %v5553_v4 = vld [vmem:[#allocation4 + $0xc] sm:$0x3] }
0x2836   :  { %v8233_v26 = vpop.eup %8232 }
0x2837   :  { %v5319_v25 = vmul.f32 %v8233_v26, %v10080_v34 }
0x286f   :  { %v4902_v39 = vpop.permute.xlu0 %4901 }
0x2870   :  { %v4904_v46 = vmul.f32 %v8227_v19, %v4902_v39 }
0x2872   :  { %4906 = vrot.lane.b32.xlu1 %v4904_v46, %s8380_s26 }
0x287f   :  { %v5112_v56 = vpop.permute.xlu1 %5111 }
0x2880   :  { %v5114_v47 = vmul.f32 %v8231_v8, %v5112_v56 }
0x2882   :  { %5116 = vrot.lane.b32.xlu0 %v5114_v47, %s8380_s26 }
0x2887   :  { %v5322_v29 = vpop.permute.xlu0 %5321 }
0x2888   :  { %v5324_v59 = vmul.f32 %v8233_v26, %v5322_v29 }
0x288a   :  { %5326 = vrot.lane.b32.xlu1 %v5324_v59, %s8380_s26 }
0x28e4   :  { %v4907_v43 = vpop.permute.xlu1 %4906 }
0x28e5   :  { %v10197_v63 = vadd.f32 %v4907_v43, %v4899_v12 }
0x28e7   :  { %8234 = vtanh.f32 %v10197_v63 }
0x28f4   :  { %v8235_v11 = vpop.eup %8234  ;;  %v5117_v20 = vpop.permute.xlu0 %5116 }
0x28f5   :  { %v10201_v15 = vadd.f32 %v5117_v20, %v5109_v0  ;;  %4912 = vrot.lane.b32.xlu0 %v8235_v11, %s8379_s25 }
0x28f7   :  { %8236 = vtanh.f32 %v10201_v15 }
0x28fc   :  { %v5327_v55 = vpop.permute.xlu1 %5326 }
0x28fd   :  { %v10206_v35 = vadd.f32 %v5327_v55, %v5319_v25 }
0x28ff   :  { %8238 = vtanh.f32 %v10206_v35 }
0x2904   :  { %v8237_v50 = vpop.eup %8236 }
0x2905   :  { %5122 = vrot.lane.b32.xlu1 %v8237_v50, %s8379_s25 }
0x290c   :  { %v8239_v38 = vpop.eup %8238 }
0x290d   :  { %5332 = vrot.lane.b32.xlu0 %v8239_v38, %s8379_s25 }
0x2967   :  { %v4913_v5 = vpop.permute.xlu0 %4912 }
0x2968   :  { %v10211_v40 = vmul.f32 %v8227_v19, %v4913_v5 }
0x296a   :  { %5130 = vrot.lane.b32.xlu0 %v10211_v40, %s8379_s25 }
0x2977   :  { %v5123_v61 = vpop.permute.xlu1 %5122 }
0x2978   :  { %v5125_v28 = vmul.f32 %v8231_v8, %v5123_v61 }
0x297a   :  { %5127 = vrot.lane.b32.xlu1 %v5125_v28, %s8380_s26  ;;  %5340 = vrot.lane.b32.xlu0 %v5125_v28, %s8379_s25 }
0x297f   :  { %v5333_v34 = vpop.permute.xlu0 %5332 }
0x2980   :  { %v5335_v49 = vmul.f32 %v8233_v26, %v5333_v34 }
0x2982   :  { %5337 = vrot.lane.b32.xlu1 %v5335_v49, %s8380_s26 }
0x29dc   :  { %v5131_v24 = vpop.permute.xlu0 %5130 }
0x29ec   :  { %v5128_v2 = vpop.permute.xlu1 %5127  ;;  %v5341_v36 = vpop.permute.xlu0 %5340 }
0x29ed   :  { %v5133_v27 = vsel %vm181_vm2, %v5128_v2, %v5131_v24 }
0x29ee   :  { %7760 = vmatmul.mubr.msk.f32.vlgmr.msra.gmra.mxu0 %vm242_vm3, %v5133_v27 }
0x29ef   :  { %7774 = vmatpush3.msra.mxu0 %v10097_v21  ;;  %7789 = vmatprep.mubr.msk.f32.mxu0 %vm8381_vm7, %v8378_v7 }
0x29f0   :  { %7775 = vmatprep.subr.mxu0 %v8378_v7 }
0x29f1   :  { %7776 = vmatpush3.msra.mxu0 %v10106_v17 }
0x29f2   :  { %7777 = vmatprep.subr.mxu0 %v8378_v7 }
0x29f3   :  { %7778 = vmatpush3.msra.mxu0 %v10113_v52 }
0x29f4   :  { %7779 = vmatprep.subr.mxu0 %v8378_v7  ;;  %v5338_v54 = vpop.permute.xlu1 %5337 }
0x29f5   :  { %7780 = vmatpush3.msra.mxu0 %v10120_v60  ;;  %v5343_v37 = vsel %vm181_vm2, %v5338_v54, %v5341_v36 }
0x29f6   :  { %7781 = vmatprep.subr.mxu0 %v8378_v7 }
0x29f7   :  { %7782 = vmatpush3.msra.mxu0 %v10127_v41 }
0x29f8   :  { %7783 = vmatprep.subr.mxu0 %v8378_v7 }
0x29f9   :  { %7784 = vmatpush3.msra.mxu0 %v10134_v33 }
0x29fa   :  { %7785 = vmatprep.subr.mxu0 %v8378_v7 }
0x29fb   :  { %7786 = vmatpush3.msra.mxu0 %v10141_v58 }
0x29fc   :  { %7787 = vmatprep.subr.mxu0 %v8378_v7 }
0x29fd   :  { %7788 = vmatpush3.msra.mxu0 %v10149_v14 }
0x29fe   :  { %7790 = vmatmul.mubr.msk.f32.vlgmr.msra.gmra.mxu0 %vm242_vm3, %v5343_v37  ;;  %7811 = vmatprep.subr.mxu0 %v8378_v7 }
0x29ff   :  { %7812 = vmatpush3.msra.mxu0 %v10016_v44  ;;  %7819 = vmatprep.mubr.msk.f32.mxu0 %vm8381_vm7, %v8378_v7 }
0x2a00   :  { %7813 = vmatprep.subr.mxu0 %v8378_v7 }
0x2a01   :  { %7814 = vmatpush3.msra.mxu0 %v10025_v45 }
0x2a02   :  { %7815 = vmatprep.subr.mxu0 %v8378_v7 }
0x2a03   :  { %7816 = vmatpush3.msra.mxu0 %v10032_v51 }
0x2a04   :  { %7817 = vmatprep.subr.mxu0 %v8378_v7 }
0x2a05   :  { %7818 = vmatpush3.msra.mxu0 %v10039_v53 }
0x2a06   :  { %7820 = vmatmul.mubr.msk.f32.vlgmr.msra.gmra.mxu0 %vm181_vm2, %v5338_v54  ;;  %7841 = vmatprep.subr.mxu0 %v8378_v7 }
0x2a07   :  { %7842 = vmatpush3.msra.mxu0 %v10254_v6  ;;  %7857 = vmatprep.mubr.msk.f32.mxu0 %vm8381_vm7, %v8378_v7 }
0x2a08   :  { %7843 = vmatprep.subr.mxu0 %v8378_v7 }
0x2a09   :  { %7844 = vmatpush3.msra.mxu0 %v10263_v32 }
0x2a0a   :  { %7845 = vmatprep.subr.mxu0 %v8378_v7 }
0x2a0b   :  { %7846 = vmatpush3.msra.mxu0 %v10270_v22 }
0x2a0c   :  { %7847 = vmatprep.subr.mxu0 %v8378_v7 }
0x2a0d   :  { %7848 = vmatpush3.msra.mxu0 %v10277_v42 }
0x2a0e   :  { %7849 = vmatprep.subr.mxu0 %v8378_v7 }
0x2a0f   :  { %7850 = vmatpush3.msra.mxu0 %v10284_v1 }
0x2a10   :  { %7851 = vmatprep.subr.mxu0 %v8378_v7 }
0x2a11   :  { %7852 = vmatpush3.msra.mxu0 %v10291_v30 }
0x2a12   :  { %7853 = vmatprep.subr.mxu0 %v8378_v7 }
0x2a13   :  { %7854 = vmatpush3.msra.mxu0 %v10298_v13 }
0x2a14   :  { %7855 = vmatprep.subr.mxu0 %v8378_v7 }
0x2a15   :  { %7856 = vmatpush3.msra.mxu0 %v10305_v31 }
0x2a16   :  { %7871 = vmatprep.subr.mxu0 %v8378_v7 }
0x2aae   :  { %v5203_v9 = vpop.f32.mrf.mxu0 }
0x2aaf   :  { %v5204_v16 = vadd.f32 %v9878_v10, %v5203_v9 }
0x2ab0   :  { %v7761_v3 = vpop.f32.mrf.mxu0 }
0x2ab1   :  { %8240 = vtanh.f32 %v5204_v16  ;;  %v6573_v10 = vmul.f32 -1.442695, %v5204_v16 }
0x2abe   :  { %v8241_v19 = vpop.eup %8240  ;;  %v5413_v39 = vpop.f32.mrf.mxu0 }
0x2abf   :  { %v5414_v46 = vadd.f32 %v10187_v23, %v5413_v39  ;;  %5216 = vrot.lane.b32.xlu1 %v8241_v19, %s8379_s25 }
0x2ac0   :  { %v7791_v48 = vpop.f32.mrf.mxu0 }
0x2ac1   :  { %8242 = vtanh.f32 %v5414_v46  ;;  %v6577_v59 = vmul.f32 -1.442695, %v5414_v46 }
0x2ac6   :  { %v5622_v8 = vpop.f32.mrf.mxu0 }
0x2ac7   :  { %v5626_v56 = vadd.f32 %v5622_v8, %v5553_v4 }
0x2ac8   :  { %v7821_v47 = vpop.f32.mrf.mxu0 }
0x2ac9   :  { %8244 = vtanh.f32 %v5626_v56  ;;  %v6581_v0 = vmul.f32 -1.442695, %v5626_v56 }
0x2aca   :  { %8246 = vpow2.f32 %v6573_v10 }
0x2acb   :  { %8248 = vpow2.f32 %v6577_v59 }
0x2ace   :  { %v8243_v26 = vpop.eup %8242 }
0x2acf   :  { %5426 = vrot.lane.b32.xlu0 %v8243_v26, %s8379_s25 }
0x2ad6   :  { %v8245_v29 = vpop.eup %8244 }
0x2ad7   :  { %5636 = vrot.lane.b32.xlu1 %v8245_v29, %s8379_s25  ;;  %v8247_v12 = vpop.eup %8246 }
0x2ad8   :  { %v5210_v43 = vadd.f32 1.0, %v8247_v12  ;;  %v8249_v11 = vpop.eup %8248 }
0x2ad9   :  { %v5420_v20 = vadd.f32 1.0, %v8249_v11 }
0x2ada   :  { %8250 = vrcp.f32 %v5210_v43 }
0x2adb   :  { %8252 = vpow2.f32 %v6581_v0 }
0x2adc   :  { %8254 = vrcp.f32 %v5420_v20 }
0x2ae7   :  { %v8251_v25 = vpop.eup %8250 }
0x2ae8   :  { %v8253_v38 = vpop.eup %8252  ;;  %v5214_v27 = vmul.f32 %v8251_v25, %v10197_v63 }
0x2ae9   :  { %v5630_v5 = vadd.f32 1.0, %v8253_v38  ;;  %v8255_v61 = vpop.eup %8254 }
0x2aea   :  { %v5424_v37 = vmul.f32 %v8255_v61, %v10201_v15 }
0x2aeb   :  { %8256 = vrcp.f32 %v5630_v5 }
0x2af8   :  { %v8257_v49 = vpop.eup %8256 }
0x2af9   :  { %v5634_v19 = vmul.f32 %v8257_v49, %v10206_v35 }
0x2b31   :  { %v5217_v55 = vpop.permute.xlu1 %5216 }
0x2b32   :  { %v5219_v50 = vmul.f32 %v8251_v25, %v5217_v55 }
0x2b34   :  { %5221 = vrot.lane.b32.xlu0 %v5219_v50, %s8380_s26 }
0x2b41   :  { %v5427_v28 = vpop.permute.xlu0 %5426 }
0x2b42   :  { %v5429_v34 = vmul.f32 %v8255_v61, %v5427_v28 }
0x2b44   :  { %5431 = vrot.lane.b32.xlu1 %v5429_v34, %s8380_s26 }
0x2b49   :  { %v5637_v24 = vpop.permute.xlu1 %5636 }
0x2b4a   :  { %v5639_v2 = vmul.f32 %v8257_v49, %v5637_v24 }
0x2b4c   :  { %5641 = vrot.lane.b32.xlu0 %v5639_v2, %s8380_s26 }
0x2ba6   :  { %v5222_v54 = vpop.permute.xlu0 %5221 }
0x2ba7   :  { %v10318_v36 = vadd.f32 %v5222_v54, %v5214_v27 }
0x2ba9   :  { %8258 = vtanh.f32 %v10318_v36 }
0x2bb6   :  { %v8259_v9 = vpop.eup %8258  ;;  %v5432_v16 = vpop.permute.xlu1 %5431 }
0x2bb7   :  { %v10322_v3 = vadd.f32 %v5432_v16, %v5424_v37  ;;  %5227 = vrot.lane.b32.xlu1 %v8259_v9, %s8379_s25 }
0x2bb9   :  { %8260 = vtanh.f32 %v10322_v3 }
0x2bbe   :  { %v5642_v39 = vpop.permute.xlu0 %5641 }
0x2bbf   :  { %v10327_v46 = vadd.f32 %v5642_v39, %v5634_v19 }
0x2bc1   :  { %8262 = vtanh.f32 %v10327_v46 }
0x2bc6   :  { %v8261_v63 = vpop.eup %8260 }
0x2bc7   :  { %5437 = vrot.lane.b32.xlu0 %v8261_v63, %s8379_s25 }
0x2bce   :  { %v8263_v48 = vpop.eup %8262 }
0x2bcf   :  { %5647 = vrot.lane.b32.xlu1 %v8263_v48, %s8379_s25 }
0x2c29   :  { %v5228_v15 = vpop.permute.xlu1 %5227 }
0x2c2a   :  { %v10332_v4 = vmul.f32 %v8251_v25, %v5228_v15 }
0x2c2c   :  { %5445 = vrot.lane.b32.xlu1 %v10332_v4, %s8379_s25 }
0x2c39   :  { %v5438_v8 = vpop.permute.xlu0 %5437 }
0x2c3a   :  { %v5440_v56 = vmul.f32 %v8255_v61, %v5438_v8 }
0x2c3c   :  { %5442 = vrot.lane.b32.xlu0 %v5440_v56, %s8380_s26  ;;  %5655 = vrot.lane.b32.xlu1 %v5440_v56, %s8379_s25 }
0x2c41   :  { %v5648_v35 = vpop.permute.xlu1 %5647 }
0x2c42   :  { %v5650_v47 = vmul.f32 %v8257_v49, %v5648_v35 }
0x2c44   :  { %5652 = vrot.lane.b32.xlu0 %v5650_v47, %s8380_s26 }
0x2c9e   :  { %v5446_v26 = vpop.permute.xlu1 %5445 }
0x2cae   :  { %v5443_v29 = vpop.permute.xlu0 %5442  ;;  %v5656_v12 = vpop.permute.xlu1 %5655 }
0x2caf   :  { %v5448_v10 = vsel %vm181_vm2, %v5443_v29, %v5446_v26 }
0x2cb0   :  { %7809 = vmatmul.mubr.msk.f32.vlgmr.msra.gmra.mxu1 %vm242_vm3, %v5448_v10 }
0x2cb1   :  { %7823 = vmatpush3.msra.mxu1 %v10097_v21  ;;  %7838 = vmatprep.mubr.msk.f32.mxu1 %vm8381_vm7, %v8378_v7 }
0x2cb2   :  { %7824 = vmatprep.subr.mxu1 %v8378_v7 }
0x2cb3   :  { %7825 = vmatpush3.msra.mxu1 %v10106_v17 }
0x2cb4   :  { %7826 = vmatprep.subr.mxu1 %v8378_v7 }
0x2cb5   :  { %7827 = vmatpush3.msra.mxu1 %v10113_v52 }
0x2cb6   :  { %7828 = vmatprep.subr.mxu1 %v8378_v7  ;;  %v5653_v59 = vpop.permute.xlu0 %5652 }
0x2cb7   :  { %7829 = vmatpush3.msra.mxu1 %v10120_v60  ;;  %v5658_v43 = vsel %vm181_vm2, %v5653_v59, %v5656_v12 }
0x2cb8   :  { %7830 = vmatprep.subr.mxu1 %v8378_v7 }
0x2cb9   :  { %7831 = vmatpush3.msra.mxu1 %v10127_v41 }
0x2cba   :  { %7832 = vmatprep.subr.mxu1 %v8378_v7 }
0x2cbb   :  { %7833 = vmatpush3.msra.mxu1 %v10134_v33 }
0x2cbc   :  { %7834 = vmatprep.subr.mxu1 %v8378_v7 }
0x2cbd   :  { %7835 = vmatpush3.msra.mxu1 %v10141_v58 }
0x2cbe   :  { %7836 = vmatprep.subr.mxu1 %v8378_v7 }
0x2cbf   :  { %7837 = vmatpush3.msra.mxu1 %v10149_v14 }
0x2cc0   :  { %7839 = vmatmul.mubr.msk.f32.vlgmr.msra.gmra.mxu1 %vm242_vm3, %v5658_v43  ;;  %7860 = vmatprep.subr.mxu1 %v8378_v7 }
0x2cc1   :  { %7861 = vmatpush3.msra.mxu1 %v10016_v44  ;;  %7868 = vmatprep.mubr.msk.f32.mxu1 %vm8381_vm7, %v8378_v7 }
0x2cc2   :  { %7862 = vmatprep.subr.mxu1 %v8378_v7 }
0x2cc3   :  { %7863 = vmatpush3.msra.mxu1 %v10025_v45  ;;  %v10392_v45 = vld [vmem:[%s10529_s14 + $0x2] ss:$0 sm:$0xff] }
0x2cc4   :  { %7864 = vmatprep.subr.mxu1 %v8378_v7 }
0x2cc5   :  { %7865 = vmatpush3.msra.mxu1 %v10032_v51 }
0x2cc6   :  { %7866 = vmatprep.subr.mxu1 %v8378_v7 }
0x2cc7   :  { %7867 = vmatpush3.msra.mxu1 %v10039_v53 }
0x2cc8   :  { %7869 = vmatmul.mubr.msk.f32.vlgmr.msra.gmra.mxu1 %vm181_vm2, %v5653_v59  ;;  %7890 = vmatprep.subr.mxu1 %v8378_v7 }
0x2cc9   :  { %7891 = vmatpush3.msra.mxu1 %v10254_v6  ;;  %7906 = vmatprep.mubr.msk.f32.mxu1 %vm8381_vm7, %v8378_v7 }
0x2cca   :  { %7892 = vmatprep.subr.mxu1 %v8378_v7 }
0x2ccb   :  { %7893 = vmatpush3.msra.mxu1 %v10263_v32 }
0x2ccc   :  { %7894 = vmatprep.subr.mxu1 %v8378_v7 }
0x2ccd   :  { %7895 = vmatpush3.msra.mxu1 %v10270_v22 }
0x2cce   :  { %7896 = vmatprep.subr.mxu1 %v8378_v7 }
0x2ccf   :  { %7897 = vmatpush3.msra.mxu1 %v10277_v42 }
0x2cd0   :  { %7898 = vmatprep.subr.mxu1 %v8378_v7 }
0x2cd1   :  { %7899 = vmatpush3.msra.mxu1 %v10284_v1  ;;  %v5868_v1 = vld [vmem:[#allocation4 + $0xe] sm:$0x3] }
0x2cd2   :  { %7900 = vmatprep.subr.mxu1 %v8378_v7 }
0x2cd3   :  { %7901 = vmatpush3.msra.mxu1 %v10291_v30 }
0x2cd4   :  { %7902 = vmatprep.subr.mxu1 %v8378_v7 }
0x2cd5   :  { %7903 = vmatpush3.msra.mxu1 %v10298_v13 }
0x2cd6   :  { %7904 = vmatprep.subr.mxu1 %v8378_v7 }
0x2cd7   :  { %7905 = vmatpush3.msra.mxu1 %v10305_v31 }
0x2d70   :  { %v5518_v44 = vpop.f32.mrf.mxu1 }
0x2d71   :  { %v5519_v51 = vadd.f32 %v10392_v45, %v5518_v44 }
0x2d72   :  { %v7810_v53 = vpop.f32.mrf.mxu1 }
0x2d73   :  { %8264 = vtanh.f32 %v5519_v51  ;;  %v6579_v20 = vmul.f32 -1.442695, %v5519_v51 }
0x2d80   :  { %v8265_v6 = vpop.eup %8264  ;;  %v5728_v32 = vpop.f32.mrf.mxu1 }
0x2d81   :  { %v5729_v22 = vadd.f32 %v10187_v23, %v5728_v32  ;;  %5531 = vrot.lane.b32.xlu0 %v8265_v6, %s8379_s25 }
0x2d82   :  { %v7840_v42 = vpop.f32.mrf.mxu1 }
0x2d83   :  { %8266 = vtanh.f32 %v5729_v22  ;;  %v6583_v25 = vmul.f32 -1.442695, %v5729_v22 }
0x2d88   :  { %v5937_v30 = vpop.f32.mrf.mxu1 }
0x2d89   :  { %v5941_v13 = vadd.f32 %v5937_v30, %v5868_v1 }
0x2d8a   :  { %v7870_v31 = vpop.f32.mrf.mxu1 }
0x2d8b   :  { %8268 = vtanh.f32 %v5941_v13  ;;  %v6587_v38 = vmul.f32 -1.442695, %v5941_v13 }
0x2d8c   :  { %8270 = vpow2.f32 %v6579_v20 }
0x2d8d   :  { %8272 = vpow2.f32 %v6583_v25 }
0x2d90   :  { %v8267_v0 = vpop.eup %8266 }
0x2d91   :  { %5741 = vrot.lane.b32.xlu1 %v8267_v0, %s8379_s25 }
0x2d98   :  { %v8269_v11 = vpop.eup %8268 }
0x2d99   :  { %5951 = vrot.lane.b32.xlu0 %v8269_v11, %s8379_s25  ;;  %v8271_v55 = vpop.eup %8270 }
0x2d9a   :  { %v5525_v50 = vadd.f32 1.0, %v8271_v55  ;;  %v8273_v5 = vpop.eup %8272 }
0x2d9b   :  { %v5735_v61 = vadd.f32 1.0, %v8273_v5 }
0x2d9c   :  { %8274 = vrcp.f32 %v5525_v50 }
0x2d9d   :  { %8276 = vpow2.f32 %v6587_v38 }
0x2d9e   :  { %8278 = vrcp.f32 %v5735_v61 }
0x2da9   :  { %v8275_v28 = vpop.eup %8274 }
0x2daa   :  { %v8277_v24 = vpop.eup %8276  ;;  %v5529_v39 = vmul.f32 %v8275_v28, %v10318_v36 }
0x2dab   :  { %v5945_v2 = vadd.f32 1.0, %v8277_v24  ;;  %v8279_v27 = vpop.eup %8278 }
0x2dac   :  { %v5739_v15 = vmul.f32 %v8279_v27, %v10322_v3 }
0x2dad   :  { %8280 = vrcp.f32 %v5945_v2 }
0x2dba   :  { %v8281_v9 = vpop.eup %8280 }
0x2dbb   :  { %v5949_v47 = vmul.f32 %v8281_v9, %v10327_v46 }
0x2df3   :  { %v5532_v34 = vpop.permute.xlu0 %5531 }
0x2df4   :  { %v5534_v49 = vmul.f32 %v8275_v28, %v5532_v34 }
0x2df6   :  { %5536 = vrot.lane.b32.xlu1 %v5534_v49, %s8380_s26 }
0x2e03   :  { %v5742_v54 = vpop.permute.xlu1 %5741 }
0x2e04   :  { %v5744_v37 = vmul.f32 %v8279_v27, %v5742_v54 }
0x2e06   :  { %5746 = vrot.lane.b32.xlu0 %v5744_v37, %s8380_s26 }
0x2e0b   :  { %v5952_v16 = vpop.permute.xlu0 %5951 }
0x2e0c   :  { %v5954_v19 = vmul.f32 %v8281_v9, %v5952_v16 }
0x2e0e   :  { %5956 = vrot.lane.b32.xlu1 %v5954_v19, %s8380_s26 }
0x2e68   :  { %v5537_v63 = vpop.permute.xlu1 %5536 }
0x2e69   :  { %v10403_v48 = vadd.f32 %v5537_v63, %v5529_v39 }
0x2e6b   :  { %8282 = vtanh.f32 %v10403_v48 }
0x2e78   :  { %v8283_v8 = vpop.eup %8282  ;;  %v5747_v56 = vpop.permute.xlu0 %5746 }
0x2e79   :  { %v10407_v35 = vadd.f32 %v5747_v56, %v5739_v15  ;;  %5542 = vrot.lane.b32.xlu0 %v8283_v8, %s8379_s25 }
0x2e7b   :  { %8284 = vtanh.f32 %v10407_v35 }
0x2e80   :  { %v5957_v26 = vpop.permute.xlu1 %5956 }
0x2e81   :  { %v5959_v29 = vadd.f32 %v5957_v26, %v5949_v47 }
0x2e83   :  { %8286 = vtanh.f32 %v5959_v29 }
0x2e88   :  { %v8285_v36 = vpop.eup %8284 }
0x2e89   :  { %5752 = vrot.lane.b32.xlu1 %v8285_v36, %s8379_s25 }
0x2e90   :  { %v8287_v10 = vpop.eup %8286 }
0x2e91   :  { %5962 = vrot.lane.b32.xlu0 %v8287_v10, %s8379_s25 }
0x2eeb   :  { %v5543_v3 = vpop.permute.xlu0 %5542 }
0x2eec   :  { %v10414_v59 = vmul.f32 %v8275_v28, %v5543_v3 }
0x2eee   :  { %5760 = vrot.lane.b32.xlu0 %v10414_v59, %s8379_s25 }
0x2efb   :  { %v5753_v12 = vpop.permute.xlu1 %5752 }
0x2efc   :  { %v5755_v43 = vmul.f32 %v8279_v27, %v5753_v12 }
0x2efe   :  { %5757 = vrot.lane.b32.xlu1 %v5755_v43, %s8380_s26  ;;  %5970 = vrot.lane.b32.xlu0 %v5755_v43, %s8379_s25 }
0x2f03   :  { %v5963_v46 = vpop.permute.xlu0 %5962 }
0x2f04   :  { %v5965_v44 = vmul.f32 %v8281_v9, %v5963_v46 }
0x2f06   :  { %5967 = vrot.lane.b32.xlu1 %v5965_v44, %s8380_s26 }
0x2f60   :  { %v5761_v51 = vpop.permute.xlu0 %5760 }
0x2f70   :  { %v5758_v53 = vpop.permute.xlu1 %5757 }
0x2f71   :  { %v5763_v6 = vsel %vm181_vm2, %v5758_v53, %v5761_v51 }
0x2f72   :  { %7858 = vmatmul.mubr.msk.f32.vlgmr.msra.gmra.mxu0 %vm242_vm3, %v5763_v6 }
0x2f73   :  { %7872 = vmatpush3.msra.mxu0 %v10097_v21  ;;  %7887 = vmatprep.mubr.msk.f32.mxu0 %vm8381_vm7, %v8378_v7 }
0x2f74   :  { %7873 = vmatprep.subr.mxu0 %v8378_v7 }
0x2f75   :  { %7874 = vmatpush3.msra.mxu0 %v10106_v17  ;;  %v5971_v17 = vpop.permute.xlu0 %5970 }
0x2f76   :  { %7875 = vmatprep.subr.mxu0 %v8378_v7 }
0x2f77   :  { %7876 = vmatpush3.msra.mxu0 %v10113_v52 }
0x2f78   :  { %7877 = vmatprep.subr.mxu0 %v8378_v7  ;;  %v5968_v21 = vpop.permute.xlu1 %5967 }
0x2f79   :  { %7878 = vmatpush3.msra.mxu0 %v10120_v60  ;;  %v5973_v52 = vsel %vm181_vm2, %v5968_v21, %v5971_v17  ;;  %v6183_v21 = vld [vmem:[%s10531_s16] sm:$0xf] }
0x2f7a   :  { %7879 = vmatprep.subr.mxu0 %v8378_v7 }
0x2f7b   :  { %7880 = vmatpush3.msra.mxu0 %v10127_v41 }
0x2f7c   :  { %7881 = vmatprep.subr.mxu0 %v8378_v7 }
0x2f7d   :  { %7882 = vmatpush3.msra.mxu0 %v10134_v33 }
0x2f7e   :  { %7883 = vmatprep.subr.mxu0 %v8378_v7 }
0x2f7f   :  { %7884 = vmatpush3.msra.mxu0 %v10141_v58 }
0x2f80   :  { %7885 = vmatprep.subr.mxu0 %v8378_v7 }
0x2f81   :  { %7886 = vmatpush3.msra.mxu0 %v10149_v14 }
0x2f82   :  { %7888 = vmatmul.mubr.msk.f32.vlgmr.msra.gmra.mxu0 %vm242_vm3, %v5973_v52  ;;  %7909 = vmatprep.subr.mxu0 %v8378_v7 }
0x2f83   :  { %7911 = vmatprep.mubr.msk.f32.mxu0 %vm8381_vm7, %v8378_v7 }
0x3032   :  { %v5833_v60 = vpop.f32.mrf.mxu0 }
0x3033   :  { %v5834_v41 = vadd.f32 %v10392_v45, %v5833_v60 }
0x3034   :  { %v7859_v33 = vpop.f32.mrf.mxu0 }
0x3035   :  { %8288 = vtanh.f32 %v5834_v41  ;;  %v6585_v1 = vmul.f32 -1.442695, %v5834_v41 }
0x3042   :  { %v8289_v58 = vpop.eup %8288  ;;  %v6043_v32 = vpop.f32.mrf.mxu0 }
0x3043   :  { %v6044_v22 = vadd.f32 %v10187_v23, %v6043_v32  ;;  %5846 = vrot.lane.b32.xlu1 %v8289_v58, %s8379_s25 }
0x3044   :  { %v7889_v42 = vpop.f32.mrf.mxu0 }
0x3045   :  { %8290 = vtanh.f32 %v6044_v22  ;;  %v6589_v30 = vmul.f32 -1.442695, %v6044_v22 }
0x3046   :  { %8292 = vpow2.f32 %v6585_v1 }
0x3047   :  { %8294 = vpow2.f32 %v6589_v30 }
0x3052   :  { %v8291_v14 = vpop.eup %8290 }
0x3053   :  { %6056 = vrot.lane.b32.xlu0 %v8291_v14, %s8379_s25  ;;  %v8293_v13 = vpop.eup %8292 }
0x3054   :  { %v5840_v31 = vadd.f32 1.0, %v8293_v13  ;;  %v8295_v0 = vpop.eup %8294 }
0x3055   :  { %v6050_v11 = vadd.f32 1.0, %v8295_v0 }
0x3056   :  { %8296 = vrcp.f32 %v5840_v31 }
0x3057   :  { %8298 = vrcp.f32 %v6050_v11 }
0x3063   :  { %v8297_v20 = vpop.eup %8296 }
0x3064   :  { %v8299_v23 = vpop.eup %8298  ;;  %v5844_v5 = vmul.f32 %v8297_v20, %v10403_v48 }
0x3065   :  { %v6054_v34 = vmul.f32 %v8299_v23, %v10407_v35 }
0x30b5   :  { %v5847_v25 = vpop.permute.xlu1 %5846 }
0x30b6   :  { %v5849_v55 = vmul.f32 %v8297_v20, %v5847_v25 }
0x30b8   :  { %5851 = vrot.lane.b32.xlu1 %v5849_v55, %s8380_s26 }
0x30c5   :  { %v6057_v50 = vpop.permute.xlu0 %6056 }
0x30c6   :  { %v6059_v38 = vmul.f32 %v8299_v23, %v6057_v50 }
0x30c8   :  { %6061 = vrot.lane.b32.xlu0 %v6059_v38, %s8380_s26 }
0x312a   :  { %v5852_v61 = vpop.permute.xlu1 %5851 }
0x312b   :  { %v5854_v28 = vadd.f32 %v5852_v61, %v5844_v5 }
0x312d   :  { %8300 = vtanh.f32 %v5854_v28 }
0x313a   :  { %v8301_v49 = vpop.eup %8300  ;;  %v6062_v24 = vpop.permute.xlu0 %6061 }
0x313b   :  { %v6064_v2 = vadd.f32 %v6062_v24, %v6054_v34  ;;  %5857 = vrot.lane.b32.xlu1 %v8301_v49, %s8379_s25 }
0x313d   :  { %8302 = vtanh.f32 %v6064_v2 }
0x314a   :  { %v8303_v27 = vpop.eup %8302 }
0x314b   :  { %6067 = vrot.lane.b32.xlu0 %v8303_v27, %s8379_s25 }
0x31ad   :  { %v5858_v54 = vpop.permute.xlu1 %5857 }
0x31ae   :  { %v5860_v37 = vmul.f32 %v8297_v20, %v5858_v54 }
0x31b0   :  { %6075 = vrot.lane.b32.xlu0 %v5860_v37, %s8379_s25 }
0x31bd   :  { %v6068_v9 = vpop.permute.xlu0 %6067 }
0x31be   :  { %v6070_v16 = vmul.f32 %v8299_v23, %v6068_v9 }
0x31c0   :  { %6072 = vrot.lane.b32.xlu1 %v6070_v16, %s8380_s26 }
0x3222   :  { %v6076_v19 = vpop.permute.xlu0 %6075 }
0x3232   :  { %v6073_v39 = vpop.permute.xlu1 %6072 }
0x3233   :  { %v6078_v63 = vsel %vm181_vm2, %v6073_v39, %v6076_v19 }
0x3234   :  { %7907 = vmatmul.mubr.msk.f32.vlgmr.msra.gmra.mxu1 %vm242_vm3, %v6078_v63 }
0x32f4   :  { %v6148_v48 = vpop.f32.mrf.mxu1 }
0x32f5   :  { %v6149_v15 = vadd.f32 %v10392_v45, %v6148_v48 }
0x32f6   :  { %v7908_v8 = vpop.f32.mrf.mxu1 }
0x32f7   :  { %8304 = vtanh.f32 %v6149_v15  ;;  %v6591_v35 = vmul.f32 -1.442695, %v6149_v15 }
0x32f9   :  { %8306 = vpow2.f32 %v6591_v35  ;;  %v6182_v35 = vld [vmem:[%s10530_s15] sm:$0xf]  ;;  %s8384_s15 = smov [#allocation6]  }
0x32fa   :  { %s6412_s22 = sshll.u32 %s8384_s15, 4  ;;  %s6413_s22 = int_to_ptr.vmem [resolvable:$true] %s6412_s22 }
0x32fb   :  { %s8356_s6 = scalar_lea.vmem %s6413_s22, 128  ;;  %p8361_p1 = scmp.lt.s32.totalorder %s6413_s22, %s6413_s22 }
0x32fc   :  { %p8357_p0 = scmp.ne.s32.totalorder %s6413_s22, %s8356_s6  ;;  %p8362_p2 = scmp.lt.s32.totalorder %s8356_s6, %s8356_s6 }
0x32fe   :  { %p8363_p3 = por %p8362_p2, %p8361_p1 }
0x3300   :  { %p8364_p4 = pnand %p8363_p3, %p8357_p0 }
0x3304   :  { %v8305_v56 = vpop.eup %8304 }
0x3305   :  { %6161 = vrot.lane.b32.xlu1 %v8305_v56, %s8379_s25 }
0x3306   :  { %v8307_v47 = vpop.eup %8306 }
0x3307   :  { %v6155_v26 = vadd.f32 1.0, %v8307_v47 }
0x3309   :  { %8308 = vrcp.f32 %v6155_v26 }
0x3316   :  { %v8309_v29 = vpop.eup %8308 }
0x3317   :  { %v6159_v45 = vmul.f32 %v8309_v29, %v5854_v28 }
0x3377   :  { %v6162_v36 = vpop.permute.xlu1 %6161 }
0x3378   :  { %v6164_v10 = vmul.f32 %v8309_v29, %v6162_v36 }
0x337a   :  { %6166 = vrot.lane.b32.xlu0 %v6164_v10, %s8380_s26 }
0x337e   :  { %4287 = vrot.lane.b32.xlu0 %v9984_v18, %s8380_s26 }
0x3382   :  { %3972 = vrot.lane.b32.xlu0 %v9903_v57, %s8380_s26 }
0x3386   :  { %5232 = vrot.lane.b32.xlu0 %v10332_v4, %s8380_s26 }
0x338a   :  { %5862 = vrot.lane.b32.xlu0 %v5860_v37, %s8380_s26 }
0x33ec   :  { %v6167_v3 = vpop.permute.xlu0 %6166 }
0x33ed   :  { %v6169_v12 = vadd.f32 %v6167_v3, %v6159_v45 }
0x33ef   :  { %8310 = vtanh.f32 %v6169_v12 }
0x33f0   :  { %v4288_v43 = vpop.permute.xlu0 %4287 }
0x33f1   :  { %4291 = vst.msk [vmem:[#allocation5 + $0x2] sm:$0x3] %vm3975_vm8, %v4288_v43 }
0x33f4   :  { %v3973_v46 = vpop.permute.xlu0 %3972 }
0x33f5   :  { %3976 = vst.msk [vmem:[#allocation5] sm:$0x3] %vm3975_vm8, %v3973_v46 }
0x33f8   :  { %v5233_v18 = vpop.permute.xlu0 %5232  ;;  %v6185_v17 = vld [vmem:[#allocation5 + $0x2] sm:$0x1]  ;;  %v6304_v33 = vld [vmem:[#allocation5 + $0x3] sm:$0x1] }
0x33f9   :  { %5236 = vst.msk [vmem:[#allocation5 + $0x8] sm:$0x3] %vm3975_vm8, %v5233_v18  ;;  %v6205_v58 = vrot.slane %v6185_v17, 7  ;;  %v6319_v11 = vrot.slane %v6304_v33, 7 }
0x33fc   :  { %v8311_v57 = vpop.eup %8310  ;;  %v5863_v44 = vpop.permute.xlu0 %5862  ;;  %v6184_v60 = vld [vmem:[#allocation5] sm:$0x1]  ;;  %v6303_v0 = vld [vmem:[#allocation5 + $0x1] sm:$0x1] }
0x33fd   :  { %5866 = vst.msk [vmem:[#allocation5 + $0xc] sm:$0x3] %vm3975_vm8, %v5863_v44  ;;  %6172 = vrot.lane.b32.xlu1 %v8311_v57, %s8379_s25  ;;  %v6207_v13 = vsel %vm6206_vm9, %v6205_v58, %v6184_v60  ;;  %v6320_v28 = vsel %vm6206_vm9, %v6319_v11, %v6303_v0 }
0x3400   :  { %v6188_v30 = vld [vmem:[#allocation5 + $0x8] sm:$0x1]  ;;  %v6307_v23 = vld [vmem:[#allocation5 + $0x9] sm:$0x1] }
0x3401   :  { %4602 = vrot.lane.b32.xlu1 %v10085_v62, %s8380_s26  ;;  %v8383_v62 = vmov 0   ;;  %v6214_v38 = vrot.slane %v6188_v30, 4  ;;  %v6325_v24 = vrot.slane %v6307_v23, 4 }
0x3402   :  { %7927 = vset.pattern.permute.xlu0 %v8383_v62 }
0x3403   :  { %6194 = vperm.xlu0 %7927, %v6183_v21  }
0x3404   :  { %v6190_v61 = vld [vmem:[#allocation5 + $0xc] sm:$0x1]  ;;  %v6309_v39 = vld [vmem:[#allocation5 + $0xd] sm:$0x1] }
0x3405   :  { %4917 = vrot.lane.b32.xlu1 %v10211_v40, %s8380_s26  ;;  %v6220_v9 = vrot.slane %v6190_v61, 2  ;;  %v6329_v47 = vrot.slane %v6309_v39, 2 }
0x3409   :  { %5547 = vrot.lane.b32.xlu1 %v10414_v59, %s8380_s26 }
0x346f   :  { %v6173_v4 = vpop.permute.xlu1 %6172 }
0x3470   :  { %v6175_v51 = vmul.f32 %v8309_v29, %v6173_v4 }
0x3472   :  { %6177 = vrot.lane.b32.xlu1 %v6175_v51, %s8380_s26 }
0x3473   :  { %v4603_v53 = vpop.permute.xlu1 %4602 }
0x3474   :  { %4606 = vst.msk [vmem:[#allocation5 + $0x4] sm:$0x3] %vm3975_vm8, %v4603_v53 }
0x3477   :  { %v4918_v6 = vpop.permute.xlu1 %4917 }
0x3478   :  { %4921 = vst.msk [vmem:[#allocation5 + $0x6] sm:$0x3] %vm3975_vm8, %v4918_v6 }
0x347b   :  { %v5548_v40 = vpop.permute.xlu1 %5547  ;;  %v6186_v59 = vld [vmem:[#allocation5 + $0x4] sm:$0x1]  ;;  %v6305_v22 = vld [vmem:[#allocation5 + $0x5] sm:$0x1] }
0x347c   :  { %5551 = vst.msk [vmem:[#allocation5 + $0xa] sm:$0x3] %vm3975_vm8, %v5548_v40  ;;  %v6208_v41 = vrot.slane %v6186_v59, 6  ;;  %v6321_v20 = vrot.slane %v6305_v22, 6 }
0x347e   :  { %v6210_v31 = vsel %vm6209_vm10, %v6208_v41, %v6207_v13  ;;  %v6322_v49 = vsel %vm6209_vm10, %v6321_v20, %v6320_v28  ;;  %v6195_v36 = vpop.permute.xlu0 %6194 }
0x347f   :  { %v6187_v52 = vld [vmem:[#allocation5 + $0x6] sm:$0x1]  ;;  %v6306_v1 = vld [vmem:[#allocation5 + $0x7] sm:$0x1] }
0x3480   :  { %v6211_v32 = vrot.slane %v6187_v52, 5  ;;  %v6323_v50 = vrot.slane %v6306_v1, 5 }
0x3482   :  { %v6213_v25 = vsel %vm6212_vm11, %v6211_v32, %v6210_v31  ;;  %v6324_v27 = vsel %vm6212_vm11, %v6323_v50, %v6322_v49 }
0x3483   :  { %v6189_v14 = vld [vmem:[#allocation5 + $0xa] sm:$0x1]  ;;  %v6308_v5 = vld [vmem:[#allocation5 + $0xb] sm:$0x1]  ;;  %v6216_v34 = vsel %vm6215_vm12, %v6214_v38, %v6213_v25  ;;  %v6326_v48 = vsel %vm6215_vm12, %v6325_v24, %v6324_v27 }
0x3484   :  { %v6217_v55 = vrot.slane %v6189_v14, 3  ;;  %v6327_v54 = vrot.slane %v6308_v5, 3 }
0x3486   :  { %v6219_v2 = vsel %vm6218_vm13, %v6217_v55, %v6216_v34  ;;  %v6328_v8 = vsel %vm6218_vm13, %v6327_v54, %v6326_v48 }
0x3487   :  { %v6222_v63 = vsel %vm6221_vm14, %v6220_v9, %v6219_v2  ;;  %v6330_v26 = vsel %vm6221_vm14, %v6329_v47, %v6328_v8 }
0x34e4   :  { %v6178_v42 = vpop.permute.xlu1 %6177 }
0x34e5   :  { %6181 = vst.msk [vmem:[#allocation5 + $0xe] sm:$0x3] %vm3975_vm8, %v6178_v42 }
0x34ec   :  { %v6191_v37 = vld [vmem:[#allocation5 + $0xe] sm:$0x1]  ;;  %v6310_v16 = vld [vmem:[#allocation5 + $0xf] sm:$0x1] }
0x34ed   :  { %v6223_v19 = vrot.slane %v6191_v37, 1  ;;  %v6331_v56 = vrot.slane %v6310_v16, 1 }
0x34ef   :  { %v6225_v15 = vsel %vm6224_vm15, %v6223_v19, %v6222_v63  ;;  %v6332_v29 = vsel %vm6224_vm15, %v6331_v56, %v6330_v26 }
0x34f0   :  { %7910 = vmatpush3.xpose.msk.msra.mxu0 %vm181_vm2, %v6225_v15 }
0x34f1   :  { %7914 = vmatprep.subr.mxu0 %v8378_v7 }
0x34f3   :  { %7912 = vmatmul.mubr.msk.f32.vlgmr.msra.gmra.mxu0 %vm181_vm2, %v6182_v35 }
0x34f4   :  { %7915 = vmatpush3.xpose.msk.msra.mxu0 %vm181_vm2, %v6332_v29  ;;  %7916 = vmatprep.mubr.msk.f32.mxu0 %vm8381_vm7, %v8378_v7 }
0x34f7   :  { %7917 = vmatmul.mubr.msk.f32.vlgmr.msra.gmra.mxu0 %vm181_vm2, %v6182_v35 }
0x35b3   :  { %v6297_v10 = vpop.f32.mrf.mxu0 }
0x35b4   :  { %v6298_v45 = vadd.f32 %v6297_v10, %v6195_v36 }
0x35b5   :  { %v7913_v3 = vpop.f32.mrf.mxu0 }
0x35b6   :  { %6302 = vst.msk [vmem:[#allocation6] sm:$0xf] %vm6301_vm0, %v6298_v45 }
0x35b7   :  { %v6401_v12 = vpop.f32.mrf.mxu0 }
0x35b8   :  { %v6402_v43 = vadd.f32 %v6401_v12, %v6195_v36 }
0x35b9   :  { %v7918_v46 = vpop.f32.mrf.mxu0 }
0x35ba   :  { %6406 = vst.msk [vmem:[#allocation6 + $0x4] sm:$0xf] %vm6301_vm0, %v6402_v43 }
0x35bb   :  { %8367 = shalt.err (!%p8364_p4)
}
0x35bc   :  { %s8385_s23 = smov 4  }
0x35bd   :  { %6418 = dma.vmem_to_hbm [thread:$0]  %s6413_s22, 128, %s10532_s17, [#allocation7], %s8379_s25, %s8379_s25, %s8385_s23  }
0x35be   :  { %8376 = dma.done.wait [#allocation7], 128  }
0x35bf   :  { %8377 = vsyncadd [#allocation7], 4294967168 }
0x35c0   :  { %6422 = vsyncpa [#allocation7], 1 }

</bundles_post_ra>
